<compile_context>
chip_gen: v7x
topology: tpu7x:2x2x1
jax: 0.10.0
libtpu: 0.0.40
codegen_flags: <defaults>
</compile_context>

<pallas_src>
import functools

import numpy as np
import jax
import jax.numpy as jnp
from jax.experimental import pallas as pl
from jax.experimental.pallas import tpu as pltpu

jax.config.update("jax_default_matmul_precision", "highest")

BN_EPS = 1e-5


def _round_up(n, m):
    return (n + m - 1) // m * m


# ------------------------------- fused kernel --------------------------------

def _fused_actor_kernel(p1_ref, w1_ref, w2_ref, wl1_ref, wl2_ref, sp_ref, m2_ref,
                        o_ref, pool1_scr, a2_scr, flat_scr, *, B, P, R2, R3):
    """Row spaces use a per-batch pitch of 25 (the 5x5 post-pool1 grid):
         P  : padded pool1 rows      (>= 25*B, multiple of 8, +slack for shifts)
         R2 : conv2 output rows      (valid rows r = b*25 + oh*5 + ow, oh,ow<3)
         R3 : pool2/flatten rows     (valid rows r = b*25)
    """
    f32 = jnp.float32

    # ---- Conv2d(8,32,k=4,s=2): ONE (4P,128)@(128,32) MXU matmul over all pool offsets.
    y1 = jnp.dot(p1_ref[...], w1_ref[...], preferred_element_type=f32)       # (4P,32)

    # ---- BatchNorm2d(32), training mode, over the 100*B real conv-1 outputs.
    #      Zero-padded rows add 0 to the sum and mu^2 each to the squared sum -> exact.
    n1 = 100.0 * B
    mu1 = jnp.sum(y1, axis=0, keepdims=True) / n1                            # (1,32)
    ss1 = jnp.sum((y1 - mu1) ** 2, axis=0, keepdims=True)
    var1 = (ss1 - (4 * P - 100 * B) * mu1 * mu1) / n1
    scale1 = sp_ref[0:1, 0:32] * jax.lax.rsqrt(var1 + BN_EPS)                # folded BN
    shift1 = sp_ref[1:2, 0:32] - mu1 * scale1
    a1 = jnp.maximum(y1 * scale1 + shift1, 0.0)                              # (4P,32)

    # ---- MaxPool2d(2): elementwise max over the 4 pool-window-offset groups
    #      (P is a multiple of 8, so every slice is sublane-aligned).
    pool1_scr[...] = jnp.maximum(jnp.maximum(a1[0:P], a1[P:2 * P]),
                                 jnp.maximum(a1[2 * P:3 * P], a1[3 * P:4 * P]))

    # ---- Conv2d(32,64,k=3,s=1) as ONE K=288 matmul: 9 statically shifted window reads
    #      from the VMEM scratch, lane-concatenated into an (R2,288) im2col slab.
    cols = []
    for dy in range(3):
        for dx in range(3):
            cols.append(pool1_scr[pl.ds(dy * 5 + dx, R2), :])                # (R2,32)
    x2 = jnp.concatenate(cols, axis=1)                                       # (R2,288)
    y2 = jnp.dot(x2, w2_ref[...], preferred_element_type=f32)                # (R2,64)

    # ---- BatchNorm2d(64), training mode, over the 9*B valid positions (masked stats).
    m2 = m2_ref[...]                                                         # (R2,1)
    n2 = 9.0 * B
    mu2 = jnp.sum(y2 * m2, axis=0, keepdims=True) / n2
    var2 = jnp.sum(((y2 - mu2) ** 2) * m2, axis=0, keepdims=True) / n2
    scale2 = sp_ref[2:3, 0:64] * jax.lax.rsqrt(var2 + BN_EPS)
    shift2 = sp_ref[3:4, 0:64] - mu2 * scale2
    a2_scr[...] = jnp.maximum(y2 * scale2 + shift2, 0.0)                     # (R2,64)

    # ---- MaxPool2d(2, stride=1) + NCHW flatten folded into wl1's row order:
    #      per output slot (ph,pw), max over the 2x2 window via 4 shifted reads,
    #      then lane-concat -> (R3,256) with lane order (slot, channel).
    slots = []
    for ph in range(2):
        for pw in range(2):
            base = ph * 5 + pw
            w00 = a2_scr[pl.ds(base, R3), :]
            w01 = a2_scr[pl.ds(base + 1, R3), :]
            w10 = a2_scr[pl.ds(base + 5, R3), :]
            w11 = a2_scr[pl.ds(base + 6, R3), :]
            slots.append(jnp.maximum(jnp.maximum(w00, w01), jnp.maximum(w10, w11)))
    flat_scr[...] = jnp.concatenate(slots, axis=1)                           # (R3,256)

    # ---- One valid row per batch (row b*25) -> (B,256).
    flat = jnp.concatenate([flat_scr[pl.ds(b * 25, 1), :] for b in range(B)], axis=0)

    # ---- Linear(256,64)+ReLU, Linear(64,A)+softmax.  wl2/bias are lane-padded to 128
    #      (pad logits carry a -1e30 bias -> exp underflows to 0) so the final store is
    #      a dense (B,128) slab.
    h = jnp.maximum(jnp.dot(flat, wl1_ref[...], preferred_element_type=f32)
                    + sp_ref[4:5, 0:64], 0.0)                                # (B,64)
    logits = jnp.dot(h, wl2_ref[...], preferred_element_type=f32) + sp_ref[5:6, :]
    z = logits - jnp.max(logits, axis=-1, keepdims=True)
    e = jnp.exp(z)
    denom = jnp.sum(e, axis=-1, keepdims=True)
    inv = pl.reciprocal(denom, approx=True)
    inv = inv * (2.0 - denom * inv)             # one Newton step -> fp32 accuracy
    o_ref[...] = e * inv


# ------------------------- host-side (jitted) glue ----------------------------

def _conv1_patches(x, pad_rows):
    """(B,8,22,22) NCHW -> (4*P, 128) im2col patches.

    Rows ordered (pool-window offset w = i*2+j, b, ph, pw); the conv-1 output position
    is (2*ph+i, 2*pw+j).  Each offset group is zero-padded from B*25 to P rows so every
    in-kernel group slice is sublane-aligned.
      p1[w*P + b*25 + ph*5 + pw, c*16 + dy*4 + dx] = x[b, c, 2*(2ph+i)+dy, 2*(2pw+j)+dx]
    """
    B = x.shape[0]
    pats = []
    for dy in range(4):
        for dx in range(4):
            pats.append(x[:, :, dy:dy + 19:2, dx:dx + 19:2])            # (B,8,10,10)
    p = jnp.stack(pats, axis=0).reshape(4, 4, B, 8, 10, 10)             # (dy,dx,b,c,oh,ow)
    p = p.transpose(2, 4, 5, 3, 0, 1)                                   # (b,oh,ow,c,dy,dx)
    p = p.reshape(B, 5, 2, 5, 2, 128)                                   # oh=(ph,i), ow=(pw,j)
    p = p.transpose(2, 4, 0, 1, 3, 5).reshape(4, B * 25, 128)           # (w, b*25+ph*5+pw, K)
    p = jnp.pad(p, ((0, 0), (0, pad_rows - B * 25), (0, 0)))
    return p.reshape(4 * pad_rows, 128)


def _conv2_valid_mask(B, R2):
    """(R2,1) 0/1 mask of the rows r = b*25 + oh*5 + ow with oh,ow < 3 (valid conv2 outs)."""
    m = np.zeros((R2, 1), np.float32)
    for b in range(B):
        for oh in range(3):
            for ow in range(3):
                m[b * 25 + oh * 5 + ow, 0] = 1.0
    return jnp.asarray(m)


def _pack_small_params(params, A):
    """Pack g1, be1, g2, be2, bl1, bl2 into one (6,128) operand (bl2 padded with -1e30)."""
    def row(v):
        return jnp.zeros((128,), jnp.float32).at[:v.size].set(v.reshape(-1))
    bl2p = jnp.full((128,), -1e30, jnp.float32).at[:A].set(params["bl2"].reshape(-1))
    return jnp.stack([row(params["g1"]), row(params["be1"]),
                      row(params["g2"]), row(params["be2"]),
                      row(params["bl1"]), bl2p], axis=0)


def cnn_actor_forward(x, params):
    """x: (B, 8, 22, 22) float32 NCHW -> action probabilities (B, A)."""
    B = x.shape[0]
    A = params["wl2"].shape[1]
    assert A <= 128

    P = _round_up(25 * B, 8) + 8        # padded pool1 row space (pitch 25 per batch)
    R2 = P - 16                         # conv2 output row space
    R3 = P - 32                         # pool2 / flatten row space

    p1 = _conv1_patches(x.astype(jnp.float32), P)                     # (4P,128)
    w2f = params["w2"].reshape(288, 64)                               # rows (dy*3+dx)*32 + ci
    wl1f = params["wl1"].reshape(256, 64)                             # rows (ph*2+pw)*64 + c
    wl2p = jnp.zeros((64, 128), jnp.float32).at[:, :A].set(params["wl2"])
    smallp = _pack_small_params(params, A)                            # (6,128)
    mask2 = _conv2_valid_mask(B, R2)                                  # (R2,1)

    args = (p1, params["w1"], w2f, wl1f, wl2p, smallp, mask2)

    flops = 2 * (4 * P * 128 * 32 + R2 * 288 * 64 + B * 256 * 64 + B * 64 * 128)
    bytes_accessed = 4 * (sum(int(np.prod(a.shape)) for a in args) + B * 128)
    cost = pl.CostEstimate(flops=int(flops), transcendentals=int(96 + 129 * B),
                           bytes_accessed=int(bytes_accessed))

    kernel = functools.partial(_fused_actor_kernel, B=B, P=P, R2=R2, R3=R3)
    out = pl.pallas_call(
        kernel,
        out_shape=jax.ShapeDtypeStruct((B, 128), jnp.float32),
        in_specs=[pl.BlockSpec(a.shape, lambda *_, n=a.ndim: (0,) * n) for a in args],
        out_specs=pl.BlockSpec((B, 128), lambda *_: (0, 0)),
        scratch_shapes=[pltpu.VMEM((P, 32), jnp.float32),     # pool1
                        pltpu.VMEM((R2, 64), jnp.float32),    # conv2 post BN+ReLU
                        pltpu.VMEM((R3, 256), jnp.float32)],  # pooled+flattened
        cost_estimate=cost,
    )(*args)
    return out[:, :A]


# ------------------------------ parameter init --------------------------------

def init_params(key, action_space=4):
    """Random params in kernel-friendly layouts.

    Mapping to the PyTorch module:
      w1[c*16+dy*4+dx, co]  == conv1.weight[co, c, dy, dx]
      w2[dy*3+dx, ci, co]   == conv2.weight[co, ci, dy, dx]
      wl1[h*2+w, c, o]      == linear1.weight[o, c*4 + h*2 + w]
      wl2[i, o]             == linear2.weight[o, i]
    Conv biases are omitted: with train-mode BatchNorm right after each conv they
    cancel exactly (the per-channel mean subtraction removes any constant shift).
    """
    ks = jax.random.split(key, 12)
    f32 = jnp.float32
    return {
        "w1":  0.05 * jax.random.normal(ks[0], (8 * 4 * 4, 32), f32),
        "g1":  1.0 + 0.05 * jax.random.normal(ks[1], (1, 32), f32),
        "be1": 0.05 * jax.random.normal(ks[2], (1, 32), f32),
        "w2":  0.05 * jax.random.normal(ks[3], (9, 32, 64), f32),
        "g2":  1.0 + 0.05 * jax.random.normal(ks[4], (1, 64), f32),
        "be2": 0.05 * jax.random.normal(ks[5], (1, 64), f32),
        "wl1": 0.05 * jax.random.normal(ks[6], (4, 64, 64), f32),
        "bl1": 0.05 * jax.random.normal(ks[7], (1, 64), f32),
        "wl2": 0.05 * jax.random.normal(ks[8], (64, action_space), f32),
        "bl2": 0.05 * jax.random.normal(ks[9], (1, action_space), f32),
    }


# --------------------------- pure-JAX reference -------------------------------

def _bn_train(y, gamma, beta):
    mu = jnp.mean(y, axis=(0, 2, 3), keepdims=True)
    var = jnp.mean((y - mu) ** 2, axis=(0, 2, 3), keepdims=True)
    g = gamma.reshape(1, -1, 1, 1)
    b = beta.reshape(1, -1, 1, 1)
    return (y - mu) * jax.lax.rsqrt(var + BN_EPS) * g + b


def _maxpool_nchw(y, k, s):
    return jax.lax.reduce_window(y, -jnp.inf, jax.lax.max,
                                 (1, 1, k, k), (1, 1, s, s), "VALID")


def reference_forward(x, params):
    """Plain XLA reference mirroring the PyTorch module in train mode."""
    B = x.shape[0]
    w1 = params["w1"].T.reshape(32, 8, 4, 4)                              # OIHW
    y = jax.lax.conv_general_dilated(x, w1, (2, 2), "VALID",
                                     dimension_numbers=("NCHW", "OIHW", "NCHW"))
    y = jnp.maximum(_bn_train(y, params["g1"], params["be1"]), 0.0)
    y = _maxpool_nchw(y, 2, 2)
    w2 = jnp.transpose(params["w2"].reshape(3, 3, 32, 64), (3, 2, 0, 1))  # OIHW
    y = jax.lax.conv_general_dilated(y, w2, (1, 1), "VALID",
                                     dimension_numbers=("NCHW", "OIHW", "NCHW"))
    y = jnp.maximum(_bn_train(y, params["g2"], params["be2"]), 0.0)
    y = _maxpool_nchw(y, 2, 1)
    flat = y.reshape(B, 256)                                              # (c, h, w) order
    wl1_t = jnp.transpose(params["wl1"], (1, 0, 2)).reshape(256, 64)      # rows = c*4+s
    h = jnp.maximum(flat @ wl1_t + params["bl1"], 0.0)
    logits = h @ params["wl2"] + params["bl2"]
    return jax.nn.softmax(logits, axis=-1)


# ----------------------------------- main --------------------------------------

if __name__ == "__main__":
    key = jax.random.PRNGKey(0)
    k_param, k_x = jax.random.split(key)

    action_space = 4
    params = init_params(k_param, action_space=action_space)

    # 22x22 input is what makes the flatten produce 256 features:
    # 22 -conv4/2-> 10 -pool2/2-> 5 -conv3/1-> 3 -pool2/1-> 2;  64*2*2 = 256.
    B = 2
    x = jax.random.normal(k_x, (B, 8, 22, 22), jnp.float32)

    fwd = jax.jit(lambda xx: cnn_actor_forward(xx, params))
    probs = jax.block_until_ready(fwd(x))

    assert probs.shape == (B, action_space)
    assert bool(jnp.all(jnp.isfinite(probs)))
    assert bool(jnp.allclose(jnp.sum(probs, axis=-1), 1.0, atol=1e-4))

    ref = jax.block_until_ready(jax.jit(reference_forward)(x, params))
    assert bool(jnp.allclose(probs, ref, atol=1e-4, rtol=1e-4))

    print("KERNEL_OK")
</pallas_src>

<mosaic_0001>
module attributes {stable_mosaic.version = 11 : i64} {
  func.func @_fused_actor_kernel(%arg0: memref<256x128xf32, #tpu.memory_space<vmem>>, %arg1: memref<128x32xf32, #tpu.memory_space<vmem>>, %arg2: memref<288x64xf32, #tpu.memory_space<vmem>>, %arg3: memref<256x64xf32, #tpu.memory_space<vmem>>, %arg4: memref<64x128xf32, #tpu.memory_space<vmem>>, %arg5: memref<6x128xf32, #tpu.memory_space<vmem>>, %arg6: memref<48x1xf32, #tpu.memory_space<vmem>>, %arg7: memref<2x128xf32, #tpu.memory_space<vmem>>, %arg8: memref<64x32xf32, #tpu.memory_space<vmem>>, %arg9: memref<48x64xf32, #tpu.memory_space<vmem>>, %arg10: memref<32x256xf32, #tpu.memory_space<vmem>>) attributes {dimension_semantics = [], scalar_prefetch = 0 : i64, scratch_operands = 3 : i64, tpu.core_type = #tpu.core_type<tc>} {
    %c0 = arith.constant 0 : index
    %c0_0 = arith.constant 0 : index
    %0 = vector.load %arg0[%c0, %c0_0] : memref<256x128xf32, #tpu.memory_space<vmem>>, vector<256x128xf32>
    %c0_1 = arith.constant 0 : index
    %c0_2 = arith.constant 0 : index
    %1 = vector.load %arg1[%c0_1, %c0_2] : memref<128x32xf32, #tpu.memory_space<vmem>>, vector<128x32xf32>
    %cst = arith.constant dense<0.000000e+00> : vector<256x32xf32>
    %2 = tpu.matmul %0, %1, %cst {dimension_numbers = #tpu.dot_dimension_numbers<[1], [0], [0], [1], [0, 0, 1, 1], [], []>, precision = #tpu.contract_precision<fp32>} : vector<256x128xf32>, vector<128x32xf32>, vector<256x32xf32> -> vector<256x32xf32>
    %cst_3 = arith.constant dense<0.000000e+00> : vector<32xf32>
    %3 = vector.multi_reduction <add>, %2, %cst_3 [0] : vector<256x32xf32> to vector<32xf32>
    %4 = vector.shape_cast %3 : vector<32xf32> to vector<1x32xf32>
    %cst_4 = arith.constant 2.000000e+02 : f32
    %5 = vector.broadcast %cst_4 : f32 to vector<1x32xf32>
    %6 = arith.divf %4, %5 : vector<1x32xf32>
    %7 = vector.broadcast %6 : vector<1x32xf32> to vector<256x32xf32>
    %8 = arith.subf %2, %7 : vector<256x32xf32>
    %9 = arith.mulf %8, %8 : vector<256x32xf32>
    %cst_5 = arith.constant dense<0.000000e+00> : vector<32xf32>
    %10 = vector.multi_reduction <add>, %9, %cst_5 [0] : vector<256x32xf32> to vector<32xf32>
    %11 = vector.shape_cast %10 : vector<32xf32> to vector<1x32xf32>
    %cst_6 = arith.constant 5.600000e+01 : f32
    %12 = vector.broadcast %cst_6 : f32 to vector<1x32xf32>
    %13 = arith.mulf %12, %6 : vector<1x32xf32>
    %14 = arith.mulf %13, %6 : vector<1x32xf32>
    %15 = arith.subf %11, %14 : vector<1x32xf32>
    %cst_7 = arith.constant 2.000000e+02 : f32
    %16 = vector.broadcast %cst_7 : f32 to vector<1x32xf32>
    %17 = arith.divf %15, %16 : vector<1x32xf32>
    %c0_8 = arith.constant 0 : index
    %c0_9 = arith.constant 0 : index
    %18 = vector.load %arg5[%c0_8, %c0_9] : memref<6x128xf32, #tpu.memory_space<vmem>>, vector<1x32xf32>
    %cst_10 = arith.constant 9.99999974E-6 : f32
    %19 = vector.broadcast %cst_10 : f32 to vector<1x32xf32>
    %20 = arith.addf %17, %19 : vector<1x32xf32>
    %21 = math.rsqrt %20 : vector<1x32xf32>
    %22 = arith.mulf %18, %21 : vector<1x32xf32>
    %c1 = arith.constant 1 : index
    %c0_11 = arith.constant 0 : index
    %23 = vector.load %arg5[%c1, %c0_11] : memref<6x128xf32, #tpu.memory_space<vmem>>, vector<1x32xf32>
    %24 = arith.mulf %6, %22 : vector<1x32xf32>
    %25 = arith.subf %23, %24 : vector<1x32xf32>
    %26 = vector.broadcast %22 : vector<1x32xf32> to vector<256x32xf32>
    %27 = arith.mulf %2, %26 : vector<256x32xf32>
    %28 = vector.broadcast %25 : vector<1x32xf32> to vector<256x32xf32>
    %29 = arith.addf %27, %28 : vector<256x32xf32>
    %cst_12 = arith.constant 0.000000e+00 : f32
    %30 = vector.broadcast %cst_12 : f32 to vector<256x32xf32>
    %31 = arith.maximumf %29, %30 : vector<256x32xf32>
    %32 = vector.extract_strided_slice %31 {offsets = [0, 0], sizes = [64, 32], strides = [1, 1]} : vector<256x32xf32> to vector<64x32xf32>
    %33 = vector.extract_strided_slice %31 {offsets = [64, 0], sizes = [64, 32], strides = [1, 1]} : vector<256x32xf32> to vector<64x32xf32>
    %34 = arith.maximumf %32, %33 : vector<64x32xf32>
    %35 = vector.extract_strided_slice %31 {offsets = [128, 0], sizes = [64, 32], strides = [1, 1]} : vector<256x32xf32> to vector<64x32xf32>
    %36 = vector.extract_strided_slice %31 {offsets = [192, 0], sizes = [64, 32], strides = [1, 1]} : vector<256x32xf32> to vector<64x32xf32>
    %37 = arith.maximumf %35, %36 : vector<64x32xf32>
    %38 = arith.maximumf %34, %37 : vector<64x32xf32>
    %c0_13 = arith.constant 0 : index
    %c0_14 = arith.constant 0 : index
    %39 = vector.load %arg8[%c0_13, %c0_14] : memref<64x32xf32, #tpu.memory_space<vmem>>, vector<64x32xf32>
    tpu.vector_store %arg8[%c0_13, %c0_14], %38 {strides = array<i32>} : memref<64x32xf32, #tpu.memory_space<vmem>>, vector<64x32xf32>,
    %c0_15 = arith.constant 0 : index
    %c0_16 = arith.constant 0 : index
    %40 = vector.load %arg8[%c0_15, %c0_16] : memref<64x32xf32, #tpu.memory_space<vmem>>, vector<48x32xf32>
    %c1_17 = arith.constant 1 : index
    %c0_18 = arith.constant 0 : index
    %41 = vector.load %arg8[%c1_17, %c0_18] : memref<64x32xf32, #tpu.memory_space<vmem>>, vector<48x32xf32>
    %c2 = arith.constant 2 : index
    %c0_19 = arith.constant 0 : index
    %42 = vector.load %arg8[%c2, %c0_19] : memref<64x32xf32, #tpu.memory_space<vmem>>, vector<48x32xf32>
    %c5 = arith.constant 5 : index
    %c0_20 = arith.constant 0 : index
    %43 = vector.load %arg8[%c5, %c0_20] : memref<64x32xf32, #tpu.memory_space<vmem>>, vector<48x32xf32>
    %c6 = arith.constant 6 : index
    %c0_21 = arith.constant 0 : index
    %44 = vector.load %arg8[%c6, %c0_21] : memref<64x32xf32, #tpu.memory_space<vmem>>, vector<48x32xf32>
    %c7 = arith.constant 7 : index
    %c0_22 = arith.constant 0 : index
    %45 = vector.load %arg8[%c7, %c0_22] : memref<64x32xf32, #tpu.memory_space<vmem>>, vector<48x32xf32>
    %c10 = arith.constant 10 : index
    %c0_23 = arith.constant 0 : index
    %46 = vector.load %arg8[%c10, %c0_23] : memref<64x32xf32, #tpu.memory_space<vmem>>, vector<48x32xf32>
    %c11 = arith.constant 11 : index
    %c0_24 = arith.constant 0 : index
    %47 = vector.load %arg8[%c11, %c0_24] : memref<64x32xf32, #tpu.memory_space<vmem>>, vector<48x32xf32>
    %c12 = arith.constant 12 : index
    %c0_25 = arith.constant 0 : index
    %48 = vector.load %arg8[%c12, %c0_25] : memref<64x32xf32, #tpu.memory_space<vmem>>, vector<48x32xf32>
    %49 = tpu.concatenate %40, %41, %42, %43, %44, %45, %46, %47, %48 in 1 : vector<48x32xf32>, vector<48x32xf32>, vector<48x32xf32>, vector<48x32xf32>, vector<48x32xf32>, vector<48x32xf32>, vector<48x32xf32>, vector<48x32xf32>, vector<48x32xf32> -> vector<48x288xf32>
    %c0_26 = arith.constant 0 : index
    %c0_27 = arith.constant 0 : index
    %50 = vector.load %arg2[%c0_26, %c0_27] : memref<288x64xf32, #tpu.memory_space<vmem>>, vector<288x64xf32>
    %cst_28 = arith.constant dense<0.000000e+00> : vector<48x64xf32>
    %51 = tpu.matmul %49, %50, %cst_28 {dimension_numbers = #tpu.dot_dimension_numbers<[1], [0], [0], [1], [0, 0, 1, 1], [], []>, precision = #tpu.contract_precision<fp32>} : vector<48x288xf32>, vector<288x64xf32>, vector<48x64xf32> -> vector<48x64xf32>
    %c0_29 = arith.constant 0 : index
    %c0_30 = arith.constant 0 : index
    %52 = vector.load %arg6[%c0_29, %c0_30] : memref<48x1xf32, #tpu.memory_space<vmem>>, vector<48x1xf32>
    %53 = vector.broadcast %52 : vector<48x1xf32> to vector<48x64xf32>
    %54 = arith.mulf %51, %53 : vector<48x64xf32>
    %cst_31 = arith.constant dense<0.000000e+00> : vector<64xf32>
    %55 = vector.multi_reduction <add>, %54, %cst_31 [0] : vector<48x64xf32> to vector<64xf32>
    %56 = vector.shape_cast %55 : vector<64xf32> to vector<1x64xf32>
    %cst_32 = arith.constant 1.800000e+01 : f32
    %57 = vector.broadcast %cst_32 : f32 to vector<1x64xf32>
    %58 = arith.divf %56, %57 : vector<1x64xf32>
    %59 = vector.broadcast %58 : vector<1x64xf32> to vector<48x64xf32>
    %60 = arith.subf %51, %59 : vector<48x64xf32>
    %61 = arith.mulf %60, %60 : vector<48x64xf32>
    %62 = vector.broadcast %52 : vector<48x1xf32> to vector<48x64xf32>
    %63 = arith.mulf %61, %62 : vector<48x64xf32>
    %cst_33 = arith.constant dense<0.000000e+00> : vector<64xf32>
    %64 = vector.multi_reduction <add>, %63, %cst_33 [0] : vector<48x64xf32> to vector<64xf32>
    %65 = vector.shape_cast %64 : vector<64xf32> to vector<1x64xf32>
    %cst_34 = arith.constant 1.800000e+01 : f32
    %66 = vector.broadcast %cst_34 : f32 to vector<1x64xf32>
    %67 = arith.divf %65, %66 : vector<1x64xf32>
    %c2_35 = arith.constant 2 : index
    %c0_36 = arith.constant 0 : index
    %68 = vector.load %arg5[%c2_35, %c0_36] : memref<6x128xf32, #tpu.memory_space<vmem>>, vector<1x64xf32>
    %cst_37 = arith.constant 9.99999974E-6 : f32
    %69 = vector.broadcast %cst_37 : f32 to vector<1x64xf32>
    %70 = arith.addf %67, %69 : vector<1x64xf32>
    %71 = math.rsqrt %70 : vector<1x64xf32>
    %72 = arith.mulf %68, %71 : vector<1x64xf32>
    %c3 = arith.constant 3 : index
    %c0_38 = arith.constant 0 : index
    %73 = vector.load %arg5[%c3, %c0_38] : memref<6x128xf32, #tpu.memory_space<vmem>>, vector<1x64xf32>
    %74 = arith.mulf %58, %72 : vector<1x64xf32>
    %75 = arith.subf %73, %74 : vector<1x64xf32>
    %76 = vector.broadcast %72 : vector<1x64xf32> to vector<48x64xf32>
    %77 = arith.mulf %51, %76 : vector<48x64xf32>
    %78 = vector.broadcast %75 : vector<1x64xf32> to vector<48x64xf32>
    %79 = arith.addf %77, %78 : vector<48x64xf32>
    %cst_39 = arith.constant 0.000000e+00 : f32
    %80 = vector.broadcast %cst_39 : f32 to vector<48x64xf32>
    %81 = arith.maximumf %79, %80 : vector<48x64xf32>
    %c0_40 = arith.constant 0 : index
    %c0_41 = arith.constant 0 : index
    %82 = vector.load %arg9[%c0_40, %c0_41] : memref<48x64xf32, #tpu.memory_space<vmem>>, vector<48x64xf32>
    tpu.vector_store %arg9[%c0_40, %c0_41], %81 {strides = array<i32>} : memref<48x64xf32, #tpu.memory_space<vmem>>, vector<48x64xf32>,
    %c0_42 = arith.constant 0 : index
    %c0_43 = arith.constant 0 : index
    %83 = vector.load %arg9[%c0_42, %c0_43] : memref<48x64xf32, #tpu.memory_space<vmem>>, vector<32x64xf32>
    %c1_44 = arith.constant 1 : index
    %c0_45 = arith.constant 0 : index
    %84 = vector.load %arg9[%c1_44, %c0_45] : memref<48x64xf32, #tpu.memory_space<vmem>>, vector<32x64xf32>
    %c5_46 = arith.constant 5 : index
    %c0_47 = arith.constant 0 : index
    %85 = vector.load %arg9[%c5_46, %c0_47] : memref<48x64xf32, #tpu.memory_space<vmem>>, vector<32x64xf32>
    %c6_48 = arith.constant 6 : index
    %c0_49 = arith.constant 0 : index
    %86 = vector.load %arg9[%c6_48, %c0_49] : memref<48x64xf32, #tpu.memory_space<vmem>>, vector<32x64xf32>
    %87 = arith.maximumf %83, %84 : vector<32x64xf32>
    %88 = arith.maximumf %85, %86 : vector<32x64xf32>
    %89 = arith.maximumf %87, %88 : vector<32x64xf32>
    %c1_50 = arith.constant 1 : index
    %c0_51 = arith.constant 0 : index
    %90 = vector.load %arg9[%c1_50, %c0_51] : memref<48x64xf32, #tpu.memory_space<vmem>>, vector<32x64xf32>
    %c2_52 = arith.constant 2 : index
    %c0_53 = arith.constant 0 : index
    %91 = vector.load %arg9[%c2_52, %c0_53] : memref<48x64xf32, #tpu.memory_space<vmem>>, vector<32x64xf32>
    %c6_54 = arith.constant 6 : index
    %c0_55 = arith.constant 0 : index
    %92 = vector.load %arg9[%c6_54, %c0_55] : memref<48x64xf32, #tpu.memory_space<vmem>>, vector<32x64xf32>
    %c7_56 = arith.constant 7 : index
    %c0_57 = arith.constant 0 : index
    %93 = vector.load %arg9[%c7_56, %c0_57] : memref<48x64xf32, #tpu.memory_space<vmem>>, vector<32x64xf32>
    %94 = arith.maximumf %90, %91 : vector<32x64xf32>
    %95 = arith.maximumf %92, %93 : vector<32x64xf32>
    %96 = arith.maximumf %94, %95 : vector<32x64xf32>
    %c5_58 = arith.constant 5 : index
    %c0_59 = arith.constant 0 : index
    %97 = vector.load %arg9[%c5_58, %c0_59] : memref<48x64xf32, #tpu.memory_space<vmem>>, vector<32x64xf32>
    %c6_60 = arith.constant 6 : index
    %c0_61 = arith.constant 0 : index
    %98 = vector.load %arg9[%c6_60, %c0_61] : memref<48x64xf32, #tpu.memory_space<vmem>>, vector<32x64xf32>
    %c10_62 = arith.constant 10 : index
    %c0_63 = arith.constant 0 : index
    %99 = vector.load %arg9[%c10_62, %c0_63] : memref<48x64xf32, #tpu.memory_space<vmem>>, vector<32x64xf32>
    %c11_64 = arith.constant 11 : index
    %c0_65 = arith.constant 0 : index
    %100 = vector.load %arg9[%c11_64, %c0_65] : memref<48x64xf32, #tpu.memory_space<vmem>>, vector<32x64xf32>
    %101 = arith.maximumf %97, %98 : vector<32x64xf32>
    %102 = arith.maximumf %99, %100 : vector<32x64xf32>
    %103 = arith.maximumf %101, %102 : vector<32x64xf32>
    %c6_66 = arith.constant 6 : index
    %c0_67 = arith.constant 0 : index
    %104 = vector.load %arg9[%c6_66, %c0_67] : memref<48x64xf32, #tpu.memory_space<vmem>>, vector<32x64xf32>
    %c7_68 = arith.constant 7 : index
    %c0_69 = arith.constant 0 : index
    %105 = vector.load %arg9[%c7_68, %c0_69] : memref<48x64xf32, #tpu.memory_space<vmem>>, vector<32x64xf32>
    %c11_70 = arith.constant 11 : index
    %c0_71 = arith.constant 0 : index
    %106 = vector.load %arg9[%c11_70, %c0_71] : memref<48x64xf32, #tpu.memory_space<vmem>>, vector<32x64xf32>
    %c12_72 = arith.constant 12 : index
    %c0_73 = arith.constant 0 : index
    %107 = vector.load %arg9[%c12_72, %c0_73] : memref<48x64xf32, #tpu.memory_space<vmem>>, vector<32x64xf32>
    %108 = arith.maximumf %104, %105 : vector<32x64xf32>
    %109 = arith.maximumf %106, %107 : vector<32x64xf32>
    %110 = arith.maximumf %108, %109 : vector<32x64xf32>
    %111 = tpu.concatenate %89, %96, %103, %110 in 1 : vector<32x64xf32>, vector<32x64xf32>, vector<32x64xf32>, vector<32x64xf32> -> vector<32x256xf32>
    %c0_74 = arith.constant 0 : index
    %c0_75 = arith.constant 0 : index
    %112 = vector.load %arg10[%c0_74, %c0_75] : memref<32x256xf32, #tpu.memory_space<vmem>>, vector<32x256xf32>
    tpu.vector_store %arg10[%c0_74, %c0_75], %111 {strides = array<i32>} : memref<32x256xf32, #tpu.memory_space<vmem>>, vector<32x256xf32>,
    %c0_76 = arith.constant 0 : index
    %c0_77 = arith.constant 0 : index
    %113 = vector.load %arg10[%c0_76, %c0_77] : memref<32x256xf32, #tpu.memory_space<vmem>>, vector<1x256xf32>
    %c25 = arith.constant 25 : index
    %c0_78 = arith.constant 0 : index
    %114 = vector.load %arg10[%c25, %c0_78] : memref<32x256xf32, #tpu.memory_space<vmem>>, vector<1x256xf32>
    %115 = tpu.concatenate %113, %114 in 0 : vector<1x256xf32>, vector<1x256xf32> -> vector<2x256xf32>
    %c0_79 = arith.constant 0 : index
    %c0_80 = arith.constant 0 : index
    %116 = vector.load %arg3[%c0_79, %c0_80] : memref<256x64xf32, #tpu.memory_space<vmem>>, vector<256x64xf32>
    %cst_81 = arith.constant dense<0.000000e+00> : vector<2x64xf32>
    %117 = tpu.matmul %115, %116, %cst_81 {dimension_numbers = #tpu.dot_dimension_numbers<[1], [0], [0], [1], [0, 0, 1, 1], [], []>, precision = #tpu.contract_precision<fp32>} : vector<2x256xf32>, vector<256x64xf32>, vector<2x64xf32> -> vector<2x64xf32>
    %c4 = arith.constant 4 : index
    %c0_82 = arith.constant 0 : index
    %118 = vector.load %arg5[%c4, %c0_82] : memref<6x128xf32, #tpu.memory_space<vmem>>, vector<1x64xf32>
    %119 = vector.broadcast %118 : vector<1x64xf32> to vector<2x64xf32>
    %120 = arith.addf %117, %119 : vector<2x64xf32>
    %cst_83 = arith.constant 0.000000e+00 : f32
    %121 = vector.broadcast %cst_83 : f32 to vector<2x64xf32>
    %122 = arith.maximumf %120, %121 : vector<2x64xf32>
    %c0_84 = arith.constant 0 : index
    %c0_85 = arith.constant 0 : index
    %123 = vector.load %arg4[%c0_84, %c0_85] : memref<64x128xf32, #tpu.memory_space<vmem>>, vector<64x128xf32>
    %cst_86 = arith.constant dense<0.000000e+00> : vector<2x128xf32>
    %124 = tpu.matmul %122, %123, %cst_86 {dimension_numbers = #tpu.dot_dimension_numbers<[1], [0], [0], [1], [0, 0, 1, 1], [], []>, precision = #tpu.contract_precision<fp32>} : vector<2x64xf32>, vector<64x128xf32>, vector<2x128xf32> -> vector<2x128xf32>
    %c5_87 = arith.constant 5 : index
    %c0_88 = arith.constant 0 : index
    %125 = vector.load %arg5[%c5_87, %c0_88] : memref<6x128xf32, #tpu.memory_space<vmem>>, vector<1x128xf32>
    %126 = vector.broadcast %125 : vector<1x128xf32> to vector<2x128xf32>
    %127 = arith.addf %124, %126 : vector<2x128xf32>
    %cst_89 = arith.constant dense<0xFF800000> : vector<2xf32>
    %128 = vector.multi_reduction <maximumf>, %127, %cst_89 [1] : vector<2x128xf32> to vector<2xf32>
    %129 = vector.shape_cast %128 : vector<2xf32> to vector<2x1xf32>
    %130 = vector.broadcast %129 : vector<2x1xf32> to vector<2x128xf32>
    %131 = arith.subf %127, %130 : vector<2x128xf32>
    %132 = math.exp %131 : vector<2x128xf32>
    %cst_90 = arith.constant dense<0.000000e+00> : vector<2xf32>
    %133 = vector.multi_reduction <add>, %132, %cst_90 [1] : vector<2x128xf32> to vector<2xf32>
    %134 = vector.shape_cast %133 : vector<2xf32> to vector<2x1xf32>
    %135 = tpu.reciprocal %134 {approx = true} : vector<2x1xf32> -> vector<2x1xf32>
    %136 = arith.mulf %134, %135 : vector<2x1xf32>
    %cst_91 = arith.constant 2.000000e+00 : f32
    %137 = vector.broadcast %cst_91 : f32 to vector<2x1xf32>
    %138 = arith.subf %137, %136 : vector<2x1xf32>
    %139 = arith.mulf %135, %138 : vector<2x1xf32>
    %140 = vector.broadcast %139 : vector<2x1xf32> to vector<2x128xf32>
    %141 = arith.mulf %132, %140 : vector<2x128xf32>
    %c0_92 = arith.constant 0 : index
    %c0_93 = arith.constant 0 : index
    %142 = vector.load %arg7[%c0_92, %c0_93] : memref<2x128xf32, #tpu.memory_space<vmem>>, vector<2x128xf32>
    tpu.vector_store %arg7[%c0_92, %c0_93], %141 {strides = array<i32>} : memref<2x128xf32, #tpu.memory_space<vmem>>, vector<2x128xf32>,
    return
  }
}

</mosaic_0001>

<bundles_post_ra>
// kernel: _lambda_.1
= control target key start
LH: loop header
LB: loop body
LE: loop exit
PB: predicated region body
PF: predicated region fallthrough
CT: control target
= control target key end

     0   :  { %s12067_s0 = inlined_call_operand.vmem [shape: f32[256,128], index: 0, kind: input, shape index: {}]   ;;  %s12068_s1 = inlined_call_operand.vmem [shape: f32[128,32], index: 1, kind: input, shape index: {}]   ;;  %s12069_s2 = inlined_call_operand.vmem [shape: f32[288,64], index: 2, kind: input, shape index: {}]   ;;  %s12070_s3 = inlined_call_operand.vmem [shape: f32[256,64], index: 3, kind: input, shape index: {}]   ;;  %s12071_s4 = inlined_call_operand.vmem [shape: f32[64,128], index: 4, kind: input, shape index: {}]   ;;  %s12072_s5 = inlined_call_operand.vmem [shape: f32[6,128], index: 5, kind: input, shape index: {}]   ;;  %s12073_s6 = inlined_call_operand.vmem [shape: f32[48,1], index: 6, kind: input, shape index: {}]   ;;  %s12074_s7 = inlined_call_operand.hbm [shape: f32[2,128], index: 7, kind: output, shape index: {}]  }
   0x1   :  { %v59_v0 = vld [vmem:[%s12068_s1] sm:$0xff]  ;;  %v60_v1 = vld [vmem:[%s12068_s1 + $0x8] sm:$0xff]  ;;  %v61_v2 = vld [vmem:[%s12068_s1 + $0x10] sm:$0xff] }
   0x2   :  { %v76_v3 = vand.u32 4294901760, %v59_v0  ;;  %v79_v4 = vand.u32 4294901760, %v60_v1  ;;  %v62_v5 = vld [vmem:[%s12068_s1 + $0x18] sm:$0xff]  ;;  %v82_v6 = vand.u32 4294901760, %v61_v2  ;;  %v8910_v7 = vld [vmem:[%s12068_s1 + $0x20] sm:$0xff]  ;;  %v8915_v8 = vld [vmem:[%s12068_s1 + $0x28] sm:$0xff] }
   0x3   :  { %v85_v9 = vand.u32 4294901760, %v62_v5  ;;  %v88_v11 = vand.u32 4294901760, %v8910_v7  ;;  %v91_v12 = vand.u32 4294901760, %v8915_v8  ;;  %v8926_v14 = vld [vmem:[%s12068_s1 + $0x30] sm:$0xff]  ;;  %v8931_v15 = vld [vmem:[%s12068_s1 + $0x38] sm:$0xff]  ;;  %v27_v16 = vld [vmem:[%s12067_s0] sm:$0xff] }
   0x4   :  { %v8917_v10 = vpack.c.bf16 %v79_v4, %v76_v3  ;;  %v8939_v17 = vand.u32 4294901760, %v27_v16  ;;  %v94_v19 = vand.u32 4294901760, %v8926_v14  ;;  %v97_v20 = vand.u32 4294901760, %v8931_v15  ;;  %v28_v21 = vld [vmem:[%s12067_s0 + $0x8] sm:$0xff]  ;;  %v8958_v22 = vld [vmem:[%s12068_s1 + $0x40] sm:$0xff]  ;;  %v29_v27 = vld [vmem:[%s12067_s0 + $0x10] sm:$0xff] }
   0x5   :  { %v8921_v13 = vpack.c.bf16 %v85_v9, %v82_v6  ;;  %v8947_v18 = vpack.c.bf16 %v91_v12, %v88_v11  ;;  %v8963_v23 = vld [vmem:[%s12068_s1 + $0x48] sm:$0xff]  ;;  %v8970_v26 = vand.u32 4294901760, %v28_v21  ;;  %v100_v29 = vand.u32 4294901760, %v8958_v22  ;;  %v30_v31 = vld [vmem:[%s12067_s0 + $0x18] sm:$0xff]  ;;  %v8992_v32 = vld [vmem:[%s12068_s1 + $0x50] sm:$0xff] }
   0x6   :  { %12345 = vst [vmem:[#allocation8_spill] sm:$0xff] %v8917_v10  ;;  %7887 = vmatprep.subr.bf16.mxu0 %v8917_v10  ;;  %8582 = vmatprep.subr.bf16.mxu1 %v8917_v10  ;;  %12347 = vst [vmem:[#allocation10_spill] sm:$0xff] %v8939_v17  ;;  %v8966_v24 = vsub.f32 %v27_v16, %v8939_v17  ;;  %v8981_v28 = vpack.c.bf16 %v97_v20, %v94_v19  ;;  %v103_v30 = vand.u32 4294901760, %v8963_v23  ;;  %v8997_v33 = vld [vmem:[%s12068_s1 + $0x58] sm:$0xff]  ;;  %v9012_v38 = vld [vmem:[%s12068_s1 + $0x60] sm:$0xff] }
   0x7   :  { %12346 = vst [vmem:[#allocation9_spill] sm:$0xff] %v8921_v13  ;;  %7889 = vmatpush3.bf16.msra.mxu0 %v8917_v10  ;;  %8590 = vmatpush3.bf16.msra.mxu1 %v8917_v10  ;;  %12348 = vst [vmem:[#allocation11_spill] sm:$0xff] %v8947_v18  ;;  %v9002_v35 = vsub.f32 %v59_v0, %v76_v3  ;;  %v9004_v36 = vsub.f32 %v60_v1, %v79_v4  ;;  %v9006_v37 = vand.u32 4294901760, %v29_v27  ;;  %v9032_v45 = vld [vmem:[%s12068_s1 + $0x68] sm:$0xff]  ;;  %v31_v46 = vld [vmem:[%s12067_s0 + $0x20] sm:$0xff] }
   0x8   :  { %7891 = vmatprep.subr.bf16.mxu0 %v8921_v13  ;;  %8583 = vmatprep.subr.bf16.mxu1 %v8921_v13  ;;  %v12076_v25 = vand.u32 4294901760, %v8966_v24  ;;  %12349 = vst [vmem:[#allocation12_spill] sm:$0xff] %v8970_v26  ;;  %12350 = vst [vmem:[#allocation13_spill] sm:$0xff] %v8981_v28  ;;  %v9015_v40 = vsub.f32 %v28_v21, %v8970_v26  ;;  %v9017_v41 = vand.u32 4294901760, %v30_v31  ;;  %v106_v43 = vand.u32 4294901760, %v8992_v32 }
   0x9   :  { %12351 = vst [vmem:[#allocation14_spill] sm:$0xff] %v9006_v37  ;;  %v9025_v42 = vpack.c.bf16 %v103_v30, %v100_v29  ;;  %v12087_v44 = vand.u32 4294901760, %v8997_v33  ;;  %v9038_v47 = vsub.f32 %v61_v2, %v82_v6  ;;  %v9040_v48 = vsub.f32 %v62_v5, %v85_v9 }
   0xa   :  { %v159_v34 = vsub.f32 %v8966_v24, %v12076_v25  ;;  %12352 = vst [vmem:[#allocation15_spill] sm:$0xff] %v9017_v41 }
   0xb   :  { %7893 = vmatpush3.bf16.msra.mxu0 %v8921_v13  ;;  %8591 = vmatpush3.bf16.msra.mxu1 %v8921_v13  ;;  %12353 = vst [vmem:[#allocation16_spill] sm:$0xff] %v9025_v42 }
   0xc   :  { %7895 = vmatprep.subr.bf16.mxu0 %v8947_v18  ;;  %8584 = vmatprep.subr.bf16.mxu1 %v8947_v18  ;;  %v160_v39 = vand.u32 4294901760, %v159_v34 }
   0xe   :  { %7222 = vmatprep.mubr.f32.mxu0 %v160_v39 }
   0xf   :  { %7897 = vmatpush3.bf16.msra.mxu0 %v8947_v18  ;;  %8592 = vmatpush3.bf16.msra.mxu1 %v8947_v18 }
  0x10   :  { %7899 = vmatprep.subr.bf16.mxu0 %v8981_v28  ;;  %8585 = vmatprep.subr.bf16.mxu1 %v8981_v28 }
  0x11   :  { %12 = vsyncpa [#allocation6], 0  ;;  %v12086_v49 = vand.u32 4294901760, %v9012_v38  ;;  %v9046_v50 = vld [vmem:[%s12068_s1 + $0x70] sm:$0xff]  ;;  %v9051_v51 = vld [vmem:[%s12068_s1 + $0x78] sm:$0xff]  ;;  %v12082_v52 = vand.u32 4294901760, %v9002_v35  ;;  %v9056_v54 = vsub.f32 %v29_v27, %v9006_v37  ;;  %v9062_v57 = vsub.f32 %v30_v31, %v9017_v41 }
  0x12   :  { %v12081_v53 = vand.u32 4294901760, %v9004_v36  ;;  %v12085_v55 = vand.u32 4294901760, %v9032_v45  ;;  %v12075_v56 = vand.u32 4294901760, %v9015_v40  ;;  %v9064_v58 = vand.u32 4294901760, %v31_v46  ;;  %v32_v59 = vld [vmem:[%s12067_s0 + $0x28] sm:$0xff]  ;;  %v33_v1 = vld [vmem:[%s12067_s0 + $0x30] sm:$0xff] }
  0x13   :  { %7901 = vmatpush3.bf16.msra.mxu0 %v8981_v28  ;;  %12354 = vst [vmem:[#allocation17_spill] sm:$0xff] %v9062_v57  ;;  %8593 = vmatpush3.bf16.msra.mxu1 %v8981_v28  ;;  %v9075_v60 = vpack.c.bf16 %v12087_v44, %v106_v43  ;;  %v12084_v61 = vand.u32 4294901760, %v9046_v50  ;;  %v12083_v62 = vand.u32 4294901760, %v9051_v51  ;;  %v12077_v63 = vand.u32 4294901760, %v9038_v47  ;;  %v34_v39 = vld [vmem:[%s12067_s0 + $0x38] sm:$0xff]  ;;  %s8847_s12 = smov 64  }
  0x14   :  { %12355 = vst [vmem:[#allocation18_spill] sm:$0xff] %v9064_v58  ;;  %7903 = vmatprep.subr.bf16.mxu0 %v9025_v42  ;;  %8586 = vmatprep.subr.bf16.mxu1 %v9025_v42  ;;  %v12078_v0 = vand.u32 4294901760, %v9040_v48  ;;  %v480_v2 = vsub.f32 %v9002_v35, %v12082_v52  ;;  %v487_v3 = vsub.f32 %v9004_v36, %v12081_v53  ;;  %v12079_v4 = vand.u32 4294901760, %v9056_v54  ;;  %s8848_s20 = smov 32   ;;  %s8849_s30 = smov 96  }
  0x15   :  { %12356 = vst [vmem:[#allocation19_spill] sm:$0xff] %v9075_v60  ;;  %v9092_v5 = vand.u32 4294901760, %v32_v59  ;;  %v9099_v6 = vpack.c.bf16 %v12085_v55, %v12086_v49  ;;  %v9104_v9 = vsub.f32 %v9015_v40, %v12075_v56  ;;  %v12080_v16 = vand.u32 4294901760, %v9062_v57 }
  0x16   :  { %v9108_v21 = vsub.f32 %v31_v46, %v9064_v58  ;;  %v9115_v27 = vsub.f32 %v8910_v7, %v88_v11  ;;  %v9120_v31 = vsub.f32 %v8915_v8, %v91_v12  ;;  %v9122_v34 = vand.u32 4294901760, %v33_v1 }
  0x17   :  { %12357 = vst [vmem:[#allocation20_spill] sm:$0xff] %v9092_v5  ;;  %7905 = vmatpush3.bf16.msra.mxu0 %v9025_v42  ;;  %12358 = vst [vmem:[#allocation21_spill] sm:$0xff] %v9099_v6  ;;  %8594 = vmatpush3.bf16.msra.mxu1 %v9025_v42  ;;  %v9130_v46 = vsub.f32 %v8926_v14, %v94_v19  ;;  %v9137_v7 = vpack.c.bf16 %v12083_v62, %v12084_v61  ;;  %v481_v14 = vand.u32 4294901760, %v480_v2  ;;  %vm2049_vm0 = vcmask 261120  }
  0x18   :  { %12359 = vst [vmem:[#allocation22_spill] sm:$0xff] %v9108_v21  ;;  %7907 = vmatprep.subr.bf16.mxu0 %v9075_v60  ;;  %12360 = vst [vmem:[#allocation23_spill] sm:$0xff] %v9122_v34  ;;  %8587 = vmatprep.subr.bf16.mxu1 %v9075_v60  ;;  %v494_v8 = vsub.f32 %v9038_v47, %v12077_v63  ;;  %v501_v11 = vsub.f32 %v9040_v48, %v12078_v0  ;;  %v488_v19 = vand.u32 4294901760, %v487_v3  ;;  %v35_v63 = vld [vmem:[%s12067_s0 + $0x40] sm:$0xff]  ;;  %vm2587_vm1 = vcmask 785408  }
  0x19   :  { %12361 = vst [vmem:[#allocation24_spill] sm:$0xff] %v9137_v7  ;;  %v9148_v12 = vsub.f32 %v8931_v15, %v97_v20  ;;  %v9153_v56 = vsub.f32 %v9056_v54, %v12079_v4  ;;  %v9156_v25 = vsub.f32 %v32_v59, %v9092_v5  ;;  %v170_v0 = vand.u32 4294901760, %v9104_v9 }
  0x1a   :  { %v9166_v15 = vsub.f32 %v9062_v57, %v12080_v16  ;;  %v12088_v20 = vand.u32 4294901760, %v9108_v21  ;;  %v9169_v2 = vand.u32 4294901760, %v34_v39  ;;  %v12089_v59 = vand.u32 4294901760, %v9115_v27 }
  0x1b   :  { %12362 = vst [vmem:[#allocation25_spill] sm:$0xff] %v9156_v25  ;;  %7909 = vmatpush3.bf16.msra.mxu0 %v9075_v60  ;;  %8595 = vmatpush3.bf16.msra.mxu1 %v9075_v60  ;;  %v12090_v3 = vand.u32 4294901760, %v9120_v31  ;;  %v9176_v4 = vsub.f32 %v33_v1, %v9122_v34  ;;  %v12091_v9 = vand.u32 4294901760, %v9130_v46  ;;  %v495_v16 = vand.u32 4294901760, %v494_v8  ;;  %v36_v1 = vld [vmem:[%s12067_s0 + $0x48] sm:$0xff] }
  0x1c   :  { %12363 = vst [vmem:[#allocation26_spill] sm:$0xff] %v9169_v2  ;;  %7911 = vmatprep.subr.bf16.mxu0 %v9099_v6  ;;  %8588 = vmatprep.subr.bf16.mxu1 %v9099_v6  ;;  %v502_v53 = vand.u32 4294901760, %v501_v11  ;;  %v12093_v52 = vand.u32 4294901760, %v9148_v12  ;;  %v9181_v62 = vand.u32 4294901760, %v35_v63  ;;  %v7918_v61 = vpack.c.bf16 %v488_v19, %v481_v14 }
  0x1d   :  { %12364 = vst [vmem:[#allocation27_spill] sm:$0xff] %v9176_v4  ;;  %v180_v55 = vand.u32 4294901760, %v9153_v56  ;;  %v12092_v49 = vand.u32 4294901760, %v9156_v25  ;;  %v9191_v44 = vsub.f32 %v8958_v22, %v100_v29  ;;  %v190_v8 = vand.u32 4294901760, %v9166_v15  ;;  %v37_v22 = vld [vmem:[%s12067_s0 + $0x50] sm:$0xff] }
  0x1e   :  { %12365 = vst [vmem:[#allocation28_spill] sm:$0xff] %v9181_v62  ;;  %v9198_v11 = vsub.f32 %v9108_v21, %v12088_v20  ;;  %v9201_v56 = vsub.f32 %v34_v39, %v9169_v2  ;;  %v9206_v14 = vsub.f32 %v8963_v23, %v103_v30  ;;  %v508_v29 = vsub.f32 %v9115_v27, %v12089_v59 }
  0x1f   :  { %7913 = vmatpush3.bf16.msra.mxu0 %v9099_v6  ;;  %8596 = vmatpush3.bf16.msra.mxu1 %v9099_v6  ;;  %v515_v39 = vsub.f32 %v9120_v31, %v12090_v3  ;;  %v522_v23 = vsub.f32 %v9130_v46, %v12091_v9  ;;  %v7922_v30 = vpack.c.bf16 %v502_v53, %v495_v16  ;;  %v9230_v59 = vand.u32 4294901760, %v36_v1  ;;  %v38_v53 = vld [vmem:[%s12067_s0 + $0x58] sm:$0xff] }
  0x20   :  { %12366 = vst [vmem:[#allocation29_spill] sm:$0xff] %v9201_v56  ;;  %7915 = vmatprep.subr.bf16.mxu0 %v9137_v7  ;;  %8589 = vmatprep.subr.bf16.mxu1 %v9137_v7  ;;  %v529_v15 = vsub.f32 %v9148_v12, %v12093_v52  ;;  %v9228_v20 = vsub.f32 %v35_v63, %v9181_v62  ;;  %v9238_v9 = vand.u32 4294901760, %v37_v22  ;;  %v200_v16 = vand.u32 4294901760, %v9198_v11  ;;  %v39_v11 = vld [vmem:[%s12067_s0 + $0x60] sm:$0xff] }
  0x21   :  { %12368 = vst [vmem:[#allocation31_spill] sm:$0xff] %v9230_v59  ;;  %v9235_v3 = vsub.f32 %v9156_v25, %v12092_v49  ;;  %v9246_v63 = vsub.f32 %v8992_v32, %v106_v43  ;;  %v12370_v19 = vand.u32 4294901760, %v8997_v33  ;;  %v509_v60 = vand.u32 4294901760, %v508_v29 }
  0x22   :  { %12367 = vst [vmem:[#allocation30_spill] sm:$0xff] %v9228_v20  ;;  %12369 = vst [vmem:[#allocation32_spill] sm:$0xff] %v9238_v9  ;;  %v516_v42 = vand.u32 4294901760, %v515_v39  ;;  %v12371_v32 = vand.u32 4294901760, %v9176_v4  ;;  %v523_v28 = vand.u32 4294901760, %v522_v23  ;;  %v530_v52 = vand.u32 4294901760, %v529_v15 }
  0x23   :  { %7917 = vmatpush3.bf16.msra.mxu0 %v9137_v7  ;;  %v9255_v6 = vsub.f32 %v8997_v33, %v12370_v19  ;;  %8597 = vmatpush3.bf16.msra.mxu1 %v9137_v7  ;;  %v9266_v33 = vsub.f32 %v36_v1, %v9230_v59  ;;  %v9268_v19 = vand.u32 4294901760, %v38_v53  ;;  %v210_v29 = vand.u32 4294901760, %v9235_v3  ;;  %v41_v3 = vld [vmem:[%s12067_s0 + $0x70] sm:$0xff] }
  0x24   :  { %7919 = vmatprep.subr.bf16.mxu0 %v7918_v61  ;;  %v219_v43 = vsub.f32 %v9176_v4, %v12371_v32  ;;  %v12373_v39 = vand.u32 4294901760, %v9191_v44  ;;  %v9275_v23 = vsub.f32 %v37_v22, %v9238_v9  ;;  %v12374_v15 = vand.u32 4294901760, %v9201_v56  ;;  %v40_v22 = vld [vmem:[%s12067_s0 + $0x68] sm:$0xff] }
  0x25   :  { %12372 = vst [vmem:[#allocation33_spill] sm:$0xff] %v9268_v19  ;;  %v12375_v49 = vand.u32 4294901760, %v9206_v14  ;;  %v9285_v4 = vand.u32 4294901760, %v39_v11  ;;  %v12379_v25 = vand.u32 4294901760, %v9228_v20  ;;  %v9314_v18 = vand.u32 4294901760, %v40_v22 }
  0x26   :  { %7223 = vmatmul.mubr.f32.vlgmr.msra.gmra.mrb[0].mxu0 %v170_v0  ;;  %v536_v32 = vsub.f32 %v9191_v44, %v12373_v39  ;;  %v229_v1 = vsub.f32 %v9201_v56, %v12374_v15  ;;  %v7926_v39 = vpack.c.bf16 %v516_v42, %v509_v60  ;;  %v12378_v15 = vand.u32 4294901760, %v9032_v45 }
  0x27   :  { %7921 = vmatpush3.bf16.msra.mxu0 %v7918_v61  ;;  %7225 = vmatprep.mubr.f32.mxu0 %v180_v55  ;;  %v543_v0 = vsub.f32 %v9206_v14, %v12375_v49  ;;  %12376 = vst [vmem:[#allocation34_spill] sm:$0xff] %v9285_v4  ;;  %v220_v61 = vand.u32 4294901760, %v219_v43  ;;  %v12377_v55 = vand.u32 4294901760, %v9012_v38  ;;  %v7930_v56 = vpack.c.bf16 %v530_v52, %v523_v28 }
  0x28   :  { %7923 = vmatprep.subr.bf16.mxu0 %v7922_v30  ;;  %v9298_v49 = vsub.f32 %v9032_v45, %v12378_v15  ;;  %v239_v42 = vsub.f32 %v9228_v20, %v12379_v25  ;;  %v9308_v43 = vsub.f32 %v38_v53, %v9268_v19  ;;  %v12380_v45 = vand.u32 4294901760, %v9246_v63  ;;  %12381 = vst [vmem:[#allocation35_spill] sm:$0xff] %v9314_v18 }
  0x29   :  { %v9293_v7 = vsub.f32 %v9012_v38, %v12377_v55  ;;  %v537_v38 = vand.u32 4294901760, %v536_v32  ;;  %v544_v28 = vand.u32 4294901760, %v543_v0  ;;  %v12382_v25 = vand.u32 4294901760, %v9255_v6  ;;  %v42_v32 = vld [vmem:[%s12067_s0 + $0x78] sm:$0xff] }
  0x2a   :  { %7226 = vmatmul.mubr.f32.gmra.mrb[2].mxu0 %v190_v8  ;;  %v550_v15 = vsub.f32 %v9246_v63, %v12380_v45  ;;  %v9320_v53 = vsub.f32 %v39_v11, %v9285_v4  ;;  %v9322_v8 = vand.u32 4294901760, %v41_v3  ;;  %v230_v55 = vand.u32 4294901760, %v229_v1 }
  0x2b   :  { %7925 = vmatpush3.bf16.msra.mxu0 %v7922_v30  ;;  %7228 = vmatprep.mubr.f32.mxu0 %v200_v16  ;;  %v557_v52 = vsub.f32 %v9255_v6, %v12382_v25  ;;  %v12384_v16 = vand.u32 4294901760, %v9046_v50  ;;  %v12386_v25 = vand.u32 4294901760, %v9051_v51  ;;  %v240_v60 = vand.u32 4294901760, %v239_v42 }
  0x2c   :  { %12383 = vst [vmem:[#allocation36_spill] sm:$0xff] %v9322_v8  ;;  %7927 = vmatprep.subr.bf16.mxu0 %v7926_v39  ;;  %v12388_v20 = vand.u32 4294901760, %v9266_v33  ;;  %v12120_v45 = vand.u32 4294901760, %v9308_v43  ;;  %v12389_v30 = vand.u32 4294901760, %v9275_v23  ;;  %v9349_v13 = vand.u32 4294901760, %v42_v32 }
  0x2d   :  { %v9332_v0 = vsub.f32 %v9046_v50, %v12384_v16  ;;  %v9337_v11 = vsub.f32 %v9051_v51, %v12386_v25  ;;  %v551_v50 = vand.u32 4294901760, %v550_v15  ;;  %v9347_v16 = vsub.f32 %v40_v22, %v9314_v18 }
  0x2e   :  { %v249_v21 = vsub.f32 %v9266_v33, %v12388_v20  ;;  %7229 = vmatmul.mubr.f32.gmra.mrb[4].mxu0 %v210_v29  ;;  %v259_v57 = vsub.f32 %v9275_v23, %v12389_v30  ;;  %12390 = vst [vmem:[#allocation39_spill] sm:$0xff] %v9349_v13  ;;  %v7934_v51 = vpack.c.bf16 %v544_v28, %v537_v38  ;;  %v558_v1 = vand.u32 4294901760, %v557_v52 }
  0x2f   :  { %12385 = vst [vmem:[#allocation37_spill] sm:$0xff] %v9332_v0  ;;  %12387 = vst [vmem:[#allocation38_spill] sm:$0xff] %v9337_v11  ;;  %7929 = vmatpush3.bf16.msra.mxu0 %v7926_v39  ;;  %7231 = vmatprep.mubr.f32.mxu0 %v220_v61  ;;  %v12122_v42 = vand.u32 4294901760, %v9320_v53  ;;  %v9353_v20 = vsub.f32 %v41_v3, %v9322_v8  ;;  %v12391_v29 = vand.u32 4294901760, %v9293_v7  ;;  %v12392_v15 = vand.u32 4294901760, %v9298_v49 }
  0x30   :  { %7931 = vmatprep.subr.bf16.mxu0 %v7930_v56  ;;  %v12121_v25 = vand.u32 4294901760, %v9332_v0  ;;  %v250_v61 = vand.u32 4294901760, %v249_v21  ;;  %v269_v3 = vsub.f32 %v9308_v43, %v12120_v45  ;;  %v12125_v38 = vand.u32 4294901760, %v9347_v16 }
  0x31   :  { %v564_v30 = vsub.f32 %v9293_v7, %v12391_v29  ;;  %v571_v22 = vsub.f32 %v9298_v49, %v12392_v15  ;;  %v9368_v28 = vsub.f32 %v42_v32, %v9349_v13  ;;  %v260_v52 = vand.u32 4294901760, %v259_v57 }
  0x32   :  { %7232 = vmatmul.mubr.f32.gmra.mrb[6].mxu0 %v230_v55  ;;  %v7938_v29 = vpack.c.bf16 %v558_v1, %v551_v50  ;;  %v279_v15 = vsub.f32 %v9320_v53, %v12122_v42  ;;  %v12124_v55 = vand.u32 4294901760, %v9353_v20  ;;  %v578_v45 = vsub.f32 %v9332_v0, %v12121_v25 }
  0x33   :  { %7933 = vmatpush3.bf16.msra.mxu0 %v7930_v56  ;;  %7234 = vmatprep.mubr.f32.mxu0 %v240_v60  ;;  %v565_v21 = vand.u32 4294901760, %v564_v30  ;;  %v572_v39 = vand.u32 4294901760, %v571_v22  ;;  %v12393_v32 = vand.u32 4294901760, %v9337_v11  ;;  %v270_v57 = vand.u32 4294901760, %v269_v3 }
  0x34   :  { %7935 = vmatprep.subr.bf16.mxu0 %v7934_v51  ;;  %v289_v60 = vsub.f32 %v9347_v16, %v12125_v38  ;;  %v12123_v50 = vand.u32 4294901760, %v9368_v28  ;;  %v280_v1 = vand.u32 4294901760, %v279_v15  ;;  %v299_v30 = vsub.f32 %v9353_v20, %v12124_v55  ;;  %v9541_v55 = vld [vmem:[%s12067_s0 + $0xd8] sm:$0xff]  ;;  %v9546_v38 = vld [vmem:[%s12067_s0 + $0xe0] sm:$0xff] }
  0x35   :  { %v585_v56 = vsub.f32 %v9337_v11, %v12393_v32  ;;  %v7942_v22 = vpack.c.bf16 %v572_v39, %v565_v21  ;;  %v579_v25 = vand.u32 4294901760, %v578_v45  ;;  %v7950_v45 = vpack.c.bf16 %v9004_v36, %v9002_v35 }
  0x36   :  { %7235 = vmatmul.mubr.f32.gmra.mrb[8].mxu0 %v250_v61  ;;  %v290_v61 = vand.u32 4294901760, %v289_v60  ;;  %v309_v3 = vsub.f32 %v9368_v28, %v12123_v50  ;;  %v300_v32 = vand.u32 4294901760, %v299_v30  ;;  %v7954_v39 = vpack.c.bf16 %v9040_v48, %v9038_v47 }
  0x37   :  { %7937 = vmatpush3.bf16.msra.mxu0 %v7934_v51  ;;  %7237 = vmatprep.mubr.f32.mxu0 %v260_v52  ;;  %v586_v42 = vand.u32 4294901760, %v585_v56  ;;  %v7958_v15 = vpack.c.bf16 %v9120_v31, %v9115_v27  ;;  %v12397_v21 = vand.u32 4294901760, %v9040_v48  ;;  %v12398_v48 = vand.u32 4294901760, %v9115_v27  ;;  %v9438_v27 = vld [vmem:[%s12067_s0 + $0x80] sm:$0xff] }
  0x38   :  { %7939 = vmatprep.subr.bf16.mxu0 %v7938_v29  ;;  %v310_v52 = vand.u32 4294901760, %v309_v3  ;;  %v12399_v60 = vand.u32 4294901760, %v9120_v31  ;;  %v7974_v30 = vpack.c.bf16 %v9298_v49, %v9293_v7  ;;  %v7978_v31 = vpack.c.bf16 %v9337_v11, %v9332_v0  ;;  %v9455_v3 = vld [vmem:[%s12067_s0 + $0x90] sm:$0xff] }
  0x39   :  { %v7946_v51 = vpack.c.bf16 %v586_v42, %v579_v25  ;;  %v12394_v42 = vand.u32 4294901760, %v9002_v35  ;;  %v12395_v25 = vand.u32 4294901760, %v9004_v36  ;;  %v7962_v35 = vpack.c.bf16 %v9148_v12, %v9130_v46  ;;  %v12411_v11 = vld [vmem:[#allocation16_spill] sm:$0xff] }
  0x3a   :  { %7238 = vmatmul.mubr.f32.gmra.mrb[10].mxu0 %v270_v57  ;;  %v12396_v36 = vand.u32 4294901760, %v9038_v47  ;;  %v7966_v57 = vpack.c.bf16 %v9206_v14, %v9191_v44  ;;  %v7970_v47 = vpack.c.bf16 %v9255_v6, %v9246_v63  ;;  %vm2580_vm2 = vcmask 523264  }
  0x3b   :  { %7941 = vmatpush3.bf16.msra.mxu0 %v7938_v29  ;;  %7240 = vmatprep.mubr.f32.mxu0 %v280_v1  ;;  %v9400_v29 = vpack.c.bf16 %v12395_v25, %v12394_v42  ;;  %v9428_v1 = vpack.c.bf16 %v12399_v60, %v12398_v48  ;;  %v9487_v25 = vld [vmem:[%s12067_s0 + $0xa8] sm:$0xff]  ;;  %vm4790_vm3 = vcmask 1040384   ;;  %vm8852_vm4 = vmmov 0  }
  0x3c   :  { %7943 = vmatprep.subr.bf16.mxu0 %v7942_v22  ;;  %v9414_v56 = vpack.c.bf16 %v12397_v21, %v12396_v36  ;;  %v9505_v21 = vld [vmem:[%s12067_s0 + $0xb8] sm:$0xff]  ;;  %v9523_v60 = vld [vmem:[%s12067_s0 + $0xc8] sm:$0xff]  ;;  %vm6246_vm5 = vcmask 1041408  }
  0x3e   :  { %7241 = vmatmul.mubr.f32.gmra.mrb[12].mxu0 %v290_v61  ;;  %v9450_v61 = vld [vmem:[%s12067_s0 + $0x88] sm:$0xff] }
  0x3f   :  { %7945 = vmatpush3.bf16.msra.mxu0 %v7942_v22  ;;  %7243 = vmatprep.mubr.f32.mxu0 %v300_v32  ;;  %v9445_v22 = vand.u32 4294901760, %v9438_v27  ;;  %v9459_v32 = vand.u32 4294901760, %v9450_v61 }
  0x40   :  { %7947 = vmatprep.subr.bf16.mxu0 %v7946_v51 }
  0x41   :  { %v9621_v0 = vsub.f32 %v9450_v61, %v9459_v32 }
  0x42   :  { %7244 = vmatmul.mubr.f32.gmra.mrb[14].mxu0 %v310_v52  ;;  %v9468_v52 = vld [vmem:[%s12067_s0 + $0x98] sm:$0xff] }
  0x43   :  { %7949 = vmatpush3.bf16.msra.mxu0 %v7946_v51  ;;  %7302 = vmatprep.mubr.f32.mxu0 %v8939_v17  ;;  %v9463_v51 = vand.u32 4294901760, %v9455_v3  ;;  %v12409_v17 = vld [vmem:[#allocation29_spill] sm:$0xff] }
  0x44   :  { %7951 = vmatprep.subr.bf16.mxu0 %v7950_v45 }
  0x45   :  { %12400 = vst [vmem:[#allocation40_spill] sm:$0xff] %v9463_v51 }
  0x46   :  { %7303 = vmatmul.mubr.f32.vlgmr.msra.gmra.mrb[0].mxu0 %v8970_v26  ;;  %v12408_v26 = vld [vmem:[#allocation13_spill] sm:$0xff] }
  0x47   :  { %7953 = vmatpush3.bf16.msra.mxu0 %v7950_v45  ;;  %7305 = vmatprep.mubr.f32.mxu0 %v9006_v37  ;;  %v9473_v45 = vld [vmem:[%s12067_s0 + $0xa0] sm:$0xff]  ;;  %v12407_v37 = vld [vmem:[#allocation27_spill] sm:$0xff] }
  0x48   :  { %7955 = vmatprep.subr.bf16.mxu0 %v7954_v39  ;;  %v9482_v42 = vand.u32 4294901760, %v9473_v45 }
  0x4a   :  { %7306 = vmatmul.mubr.f32.gmra.mrb[2].mxu0 %v9017_v41  ;;  %v12406_v41 = vld [vmem:[#allocation25_spill] sm:$0xff]  ;;  %v9638_v61 = vsub.f32 %v9473_v45, %v9482_v42 }
  0x4b   :  { %7308 = vmatprep.mubr.f32.mxu0 %v9064_v58  ;;  %7957 = vmatpush3.bf16.msra.mxu0 %v7954_v39  ;;  %v9478_v39 = vand.u32 4294901760, %v9468_v52  ;;  %v12405_v58 = vld [vmem:[#allocation11_spill] sm:$0xff] }
  0x4c   :  { %7959 = vmatprep.subr.bf16.mxu0 %v7958_v15 }
  0x4e   :  { %7309 = vmatmul.mubr.f32.gmra.mrb[4].mxu0 %v9092_v5  ;;  %v12404_v5 = vld [vmem:[#allocation22_spill] sm:$0xff] }
  0x4f   :  { %7311 = vmatprep.mubr.f32.mxu0 %v9122_v34  ;;  %7961 = vmatpush3.bf16.msra.mxu0 %v7958_v15  ;;  %v9492_v15 = vld [vmem:[%s12067_s0 + $0xb0] sm:$0xff]  ;;  %v12403_v34 = vld [vmem:[#allocation17_spill] sm:$0xff] }
  0x50   :  { %7963 = vmatprep.subr.bf16.mxu0 %v7962_v35  ;;  %v9500_v36 = vand.u32 4294901760, %v9492_v15 }
  0x52   :  { %7312 = vmatmul.mubr.f32.gmra.mrb[6].mxu0 %v9169_v2  ;;  %v12402_v2 = vld [vmem:[#allocation9_spill] sm:$0xff] }
  0x53   :  { %7314 = vmatprep.mubr.f32.mxu0 %v9181_v62  ;;  %7965 = vmatpush3.bf16.msra.mxu0 %v7962_v35  ;;  %v9496_v35 = vand.u32 4294901760, %v9487_v25 }
  0x54   :  { %7967 = vmatprep.subr.bf16.mxu0 %v7966_v57 }
  0x56   :  { %7315 = vmatmul.mubr.f32.gmra.mrb[8].mxu0 %v9230_v59  ;;  %v9577_v59 = vld [vmem:[%s12067_s0 + $0xf8] sm:$0xff] }
  0x57   :  { %7317 = vmatprep.mubr.f32.mxu0 %v9238_v9  ;;  %7969 = vmatpush3.bf16.msra.mxu0 %v7966_v57  ;;  %v9510_v57 = vld [vmem:[%s12067_s0 + $0xc0] sm:$0xff]  ;;  %v9581_v62 = vand.u32 4294901760, %v9577_v59 }
  0x58   :  { %7971 = vmatprep.subr.bf16.mxu0 %v7970_v47  ;;  %v9518_v48 = vand.u32 4294901760, %v9510_v57 }
  0x59   :  { %12401 = vst [vmem:[#allocation41_spill] sm:$0xff] %v9581_v62 }
  0x5a   :  { %7318 = vmatmul.mubr.f32.gmra.mrb[10].mxu0 %v9268_v19  ;;  %v9658_v45 = vsub.f32 %v9510_v57, %v9518_v48 }
  0x5b   :  { %7320 = vmatprep.mubr.f32.mxu0 %v9285_v4  ;;  %7973 = vmatpush3.bf16.msra.mxu0 %v7970_v47  ;;  %v9514_v47 = vand.u32 4294901760, %v9505_v21  ;;  %v9564_v4 = vld [vmem:[%s12067_s0 + $0xf0] sm:$0xff] }
  0x5c   :  { %7975 = vmatprep.subr.bf16.mxu0 %v7974_v30  ;;  %v9572_v9 = vand.u32 4294901760, %v9564_v4 }
  0x5e   :  { %7321 = vmatmul.mubr.f32.gmra.mrb[12].mxu0 %v9314_v18  ;;  %v9559_v18 = vld [vmem:[%s12067_s0 + $0xe8] sm:$0xff] }
  0x5f   :  { %7323 = vmatprep.mubr.f32.mxu0 %v9322_v8  ;;  %7977 = vmatpush3.bf16.msra.mxu0 %v7974_v30  ;;  %v9528_v30 = vld [vmem:[%s12067_s0 + $0xd0] sm:$0xff]  ;;  %v9554_v8 = vand.u32 4294901760, %v9546_v38  ;;  %v9568_v19 = vand.u32 4294901760, %v9559_v18 }
  0x60   :  { %7979 = vmatprep.subr.bf16.mxu0 %v7978_v31  ;;  %v9536_v50 = vand.u32 4294901760, %v9528_v30 }
  0x61   :  { %v9678_v57 = vsub.f32 %v9546_v38, %v9554_v8  ;;  %v12415_v38 = vand.u32 4294901760, %v8966_v24 }
  0x62   :  { %7324 = vmatmul.mubr.f32.gmra.mrb[14].mxu0 %v9349_v13  ;;  %v9550_v13 = vand.u32 4294901760, %v9541_v55 }
  0x63   :  { %7326 = vmatprep.mubr.f32.mxu0 %v9445_v22  ;;  %7981 = vmatpush3.bf16.msra.mxu0 %v7978_v31  ;;  %v9532_v31 = vand.u32 4294901760, %v9523_v60 }
  0x64   :  { %7983 = vmatprep.subr.bf16.mxu0 %v8917_v10 }
  0x66   :  { %7327 = vmatmul.mubr.f32.gmra.mrb[16].mxu0 %v9459_v32 }
  0x67   :  { %7329 = vmatprep.mubr.f32.mxu0 %v9463_v51 }
  0x6a   :  { %7330 = vmatmul.mubr.f32.gmra.mrb[18].mxu0 %v9478_v39 }
  0x6b   :  { %7332 = vmatprep.mubr.f32.mxu0 %v9482_v42 }
  0x6e   :  { %7333 = vmatmul.mubr.f32.gmra.mrb[20].mxu0 %v9496_v35 }
  0x6f   :  { %7335 = vmatprep.mubr.f32.mxu0 %v9500_v36 }
  0x72   :  { %7336 = vmatmul.mubr.f32.gmra.mrb[22].mxu0 %v9514_v47 }
  0x73   :  { %7338 = vmatprep.mubr.f32.mxu0 %v9518_v48 }
  0x76   :  { %7339 = vmatmul.mubr.f32.gmra.mrb[24].mxu0 %v9532_v31 }
  0x77   :  { %7341 = vmatprep.mubr.f32.mxu0 %v9536_v50 }
  0x7a   :  { %7342 = vmatmul.mubr.f32.gmra.mrb[26].mxu0 %v9550_v13 }
  0x7b   :  { %7344 = vmatprep.mubr.f32.mxu0 %v9554_v8 }
  0x7e   :  { %7345 = vmatmul.mubr.f32.gmra.mrb[28].mxu0 %v9568_v19 }
  0x7f   :  { %7347 = vmatprep.mubr.f32.mxu0 %v9572_v9 }
  0x82   :  { %7348 = vmatmul.mubr.f32.gmra.mrb[30].mxu0 %v9581_v62 }
  0x83   :  { %7382 = vmatprep.mubr.f32.mxu0 %v8966_v24  ;;  %v12420_v24 = vand.u32 4294901760, %v9130_v46 }
  0x86   :  { %7383 = vmatmul.mubr.f32.vlgmr.msra.gmra.mrb[0].mxu0 %v9015_v40 }
  0x87   :  { %7985 = vmatpush3.bf16.msra.mxu0 %v8917_v10  ;;  %7385 = vmatprep.mubr.f32.mxu0 %v9056_v54  ;;  %v12410_v10 = vld [vmem:[#allocation30_spill] sm:$0xff] }
  0x88   :  { %7987 = vmatprep.subr.bf16.mxu0 %v12402_v2  ;;  %v12427_v46 = vand.u32 4294901760, %v12410_v10 }
  0x8a   :  { %7386 = vmatmul.mubr.f32.gmra.mrb[2].mxu0 %v12403_v34 }
  0x8b   :  { %7388 = vmatprep.mubr.f32.mxu0 %v12404_v5  ;;  %7989 = vmatpush3.bf16.msra.mxu0 %v12402_v2  ;;  %v12412_v2 = vld [vmem:[#allocation19_spill] sm:$0xff] }
  0x8c   :  { %7991 = vmatprep.subr.bf16.mxu0 %v12405_v58 }
  0x8e   :  { %7389 = vmatmul.mubr.f32.gmra.mrb[4].mxu0 %v12406_v41 }
  0x8f   :  { %7391 = vmatprep.mubr.f32.mxu0 %v12407_v37  ;;  %7993 = vmatpush3.bf16.msra.mxu0 %v12405_v58  ;;  %v12413_v58 = vld [vmem:[#allocation21_spill] sm:$0xff] }
  0x90   :  { %7995 = vmatprep.subr.bf16.mxu0 %v12408_v26 }
  0x92   :  { %7392 = vmatmul.mubr.f32.gmra.mrb[6].mxu0 %v12409_v17 }
  0x93   :  { %7394 = vmatprep.mubr.f32.mxu0 %v12410_v10  ;;  %7997 = vmatpush3.bf16.msra.mxu0 %v12408_v26  ;;  %v9614_v26 = vsub.f32 %v9438_v27, %v9445_v22  ;;  %v9633_v27 = vsub.f32 %v9468_v52, %v9478_v39  ;;  %v9653_v52 = vsub.f32 %v9505_v21, %v9514_v47  ;;  %v12433_v10 = vand.u32 4294901760, %v9298_v49 }
  0x94   :  { %7999 = vmatprep.subr.bf16.mxu0 %v12411_v11  ;;  %v9673_v21 = vsub.f32 %v9541_v55, %v9550_v13  ;;  %v9693_v55 = vsub.f32 %v9577_v59, %v9581_v62  ;;  %v12418_v59 = vand.u32 4294901760, %v12403_v34  ;;  %v12419_v62 = vand.u32 4294901760, %v12404_v5 }
  0x95   :  { %v12425_v5 = vand.u32 4294901760, %v9206_v14  ;;  %v12441_v49 = vand.u32 4294901760, %v9353_v20 }
  0x96   :  { %7395 = vmatmul.mubr.f32.gmra.mrb[8].mxu0 %v9266_v33 }
  0x97   :  { %7397 = vmatprep.mubr.f32.mxu0 %v9275_v23  ;;  %8001 = vmatpush3.bf16.msra.mxu0 %v12411_v11  ;;  %v12414_v11 = vld [vmem:[#allocation24_spill] sm:$0xff] }
  0x98   :  { %8003 = vmatprep.subr.bf16.mxu0 %v12412_v2 }
  0x9a   :  { %7398 = vmatmul.mubr.f32.gmra.mrb[10].mxu0 %v9308_v43 }
  0x9b   :  { %7400 = vmatprep.mubr.f32.mxu0 %v9320_v53  ;;  %8005 = vmatpush3.bf16.msra.mxu0 %v12412_v2  ;;  %v9626_v2 = vsub.f32 %v9455_v3, %v9463_v51  ;;  %v9643_v3 = vsub.f32 %v9487_v25, %v9496_v35  ;;  %v9648_v51 = vsub.f32 %v9492_v15, %v9500_v36 }
  0x9c   :  { %8007 = vmatprep.subr.bf16.mxu0 %v12413_v58  ;;  %v9663_v25 = vsub.f32 %v9523_v60, %v9532_v31  ;;  %v9668_v15 = vsub.f32 %v9528_v30, %v9536_v50  ;;  %v9683_v60 = vsub.f32 %v9559_v18, %v9568_v19  ;;  %v9688_v30 = vsub.f32 %v9564_v4, %v9572_v9 }
  0x9d   :  { %v12416_v18 = vand.u32 4294901760, %v9015_v40  ;;  %v12417_v4 = vand.u32 4294901760, %v9056_v54  ;;  %v12421_v40 = vand.u32 4294901760, %v9148_v12  ;;  %v12422_v54 = vand.u32 4294901760, %v12406_v41 }
  0x9e   :  { %7401 = vmatmul.mubr.f32.gmra.mrb[12].mxu0 %v9347_v16  ;;  %v12428_v41 = vand.u32 4294901760, %v9246_v63  ;;  %v12435_v63 = vand.u32 4294901760, %v9320_v53 }
  0x9f   :  { %7403 = vmatprep.mubr.f32.mxu0 %v9353_v20  ;;  %8009 = vmatpush3.bf16.msra.mxu0 %v12413_v58 }
  0xa0   :  { %8011 = vmatprep.subr.bf16.mxu0 %v12414_v11 }
  0xa2   :  { %7404 = vmatmul.mubr.f32.gmra.mrb[14].mxu0 %v9368_v28 }
  0xa3   :  { %7406 = vmatprep.mubr.f32.mxu0 %v9614_v26  ;;  %8013 = vmatpush3.bf16.msra.mxu0 %v12414_v11 }
  0xa4   :  { %8015 = vmatprep.subr.bf16.mxu0 %v9400_v29 }
  0xa6   :  { %7407 = vmatmul.mubr.f32.gmra.mrb[16].mxu0 %v9621_v0 }
  0xa7   :  { %7409 = vmatprep.mubr.f32.mxu0 %v9626_v2 }
  0xaa   :  { %7410 = vmatmul.mubr.f32.gmra.mrb[18].mxu0 %v9633_v27 }
  0xab   :  { %7412 = vmatprep.mubr.f32.mxu0 %v9638_v61 }
  0xae   :  { %7413 = vmatmul.mubr.f32.gmra.mrb[20].mxu0 %v9643_v3 }
  0xaf   :  { %7415 = vmatprep.mubr.f32.mxu0 %v9648_v51 }
  0xb2   :  { %7416 = vmatmul.mubr.f32.gmra.mrb[22].mxu0 %v9653_v52 }
  0xb3   :  { %7418 = vmatprep.mubr.f32.mxu0 %v9658_v45 }
  0xb6   :  { %7419 = vmatmul.mubr.f32.gmra.mrb[24].mxu0 %v9663_v25 }
  0xb7   :  { %7421 = vmatprep.mubr.f32.mxu0 %v9668_v15 }
  0xba   :  { %7422 = vmatmul.mubr.f32.gmra.mrb[26].mxu0 %v9673_v21 }
  0xbb   :  { %7424 = vmatprep.mubr.f32.mxu0 %v9678_v57 }
  0xbe   :  { %7425 = vmatmul.mubr.f32.gmra.mrb[28].mxu0 %v9683_v60 }
  0xbf   :  { %7427 = vmatprep.mubr.f32.mxu0 %v9688_v30 }
  0xc2   :  { %7428 = vmatmul.mubr.f32.gmra.mrb[30].mxu0 %v9693_v55 }
  0xc3   :  { %7462 = vmatprep.mubr.f32.mxu0 %v12415_v38  ;;  %v12423_v38 = vand.u32 4294901760, %v12407_v37  ;;  %v12429_v37 = vand.u32 4294901760, %v9255_v6  ;;  %v12436_v6 = vld [vmem:[#allocation37_spill] sm:$0xff] }
  0xc5   :  { %v8034_v12 = vpack.c.bf16 %v12429_v37, %v12428_v41 }
  0xc6   :  { %7463 = vmatmul.mubr.f32.vlgmr.msra.gmra.mrb[0].mxu0 %v12416_v18  ;;  %v12434_v18 = vand.u32 4294901760, %v9308_v43  ;;  %v328_v43 = vand.u32 4294901760, %v9621_v0 }
  0xc7   :  { %8017 = vmatpush3.bf16.msra.mxu0 %v9400_v29  ;;  %7465 = vmatprep.mubr.f32.mxu0 %v12417_v4  ;;  %v8026_v29 = vpack.c.bf16 %v12421_v40, %v12420_v24  ;;  %v12438_v4 = vld [vmem:[#allocation38_spill] sm:$0xff]  ;;  %v12440_v24 = vand.u32 4294901760, %v9347_v16 }
  0xc8   :  { %8019 = vmatprep.subr.bf16.mxu0 %v9414_v56  ;;  %v329_v40 = vsub.f32 %v9621_v0, %v328_v43  ;;  %v358_v0 = vand.u32 4294901760, %v9638_v61 }
  0xca   :  { %7466 = vmatmul.mubr.f32.gmra.mrb[2].mxu0 %v12418_v59  ;;  %v330_v20 = vand.u32 4294901760, %v329_v40 }
  0xcb   :  { %7468 = vmatprep.mubr.f32.mxu0 %v12419_v62  ;;  %8021 = vmatpush3.bf16.msra.mxu0 %v9414_v56  ;;  %v12424_v62 = vand.u32 4294901760, %v9191_v44  ;;  %v12426_v56 = vand.u32 4294901760, %v12409_v17  ;;  %v12431_v44 = vand.u32 4294901760, %v9275_v23  ;;  %v12432_v17 = vand.u32 4294901760, %v9293_v7 }
  0xcc   :  { %8023 = vmatprep.subr.bf16.mxu0 %v9428_v1  ;;  %v12439_v23 = vand.u32 4294901760, %v12438_v4  ;;  %v318_v7 = vand.u32 4294901760, %v9614_v26 }
  0xcd   :  { %v8030_v34 = vpack.c.bf16 %v12425_v5, %v12424_v62  ;;  %v8038_v14 = vpack.c.bf16 %v12433_v10, %v12432_v17  ;;  %v12443_v62 = vld [vmem:[#allocation8_spill] sm:$0xff] }
  0xce   :  { %7469 = vmatmul.mubr.f32.gmra.mrb[4].mxu0 %v12422_v54  ;;  %v319_v53 = vsub.f32 %v9614_v26, %v318_v7  ;;  %v338_v54 = vand.u32 4294901760, %v9626_v2 }
  0xcf   :  { %7471 = vmatprep.mubr.f32.mxu0 %v12423_v38  ;;  %8025 = vmatpush3.bf16.msra.mxu0 %v9428_v1  ;;  %v12430_v1 = vand.u32 4294901760, %v9266_v33  ;;  %v12437_v33 = vand.u32 4294901760, %v12436_v6  ;;  %v348_v38 = vand.u32 4294901760, %v9633_v27 }
  0xd0   :  { %8027 = vmatprep.subr.bf16.mxu0 %v8026_v29  ;;  %v320_v16 = vand.u32 4294901760, %v319_v53  ;;  %v339_v5 = vsub.f32 %v9626_v2, %v338_v54  ;;  %v378_v2 = vand.u32 4294901760, %v9648_v51 }
  0xd1   :  { %v8042_v59 = vpack.c.bf16 %v12439_v23, %v12437_v33  ;;  %v349_v26 = vsub.f32 %v9633_v27, %v348_v38  ;;  %v388_v27 = vand.u32 4294901760, %v9653_v52 }
  0xd2   :  { %7472 = vmatmul.mubr.f32.gmra.mrb[6].mxu0 %v12426_v56  ;;  %7246 = vmatprep.mubr.f32.mxu1 %v320_v16  ;;  %v12446_v16 = vld [vmem:[#allocation14_spill] sm:$0xff] }
  0xd3   :  { %7474 = vmatprep.mubr.f32.mxu0 %v12427_v46  ;;  %8029 = vmatpush3.bf16.msra.mxu0 %v8026_v29  ;;  %v12442_v29 = vand.u32 4294901760, %v9368_v28  ;;  %v340_v28 = vand.u32 4294901760, %v339_v5  ;;  %v350_v56 = vand.u32 4294901760, %v349_v26  ;;  %v359_v46 = vsub.f32 %v9638_v61, %v358_v0  ;;  %v12451_v5 = vld [vmem:[#allocation20_spill] sm:$0xff]  ;;  %v12452_v26 = vld [vmem:[#allocation23_spill] sm:$0xff] }
  0xd4   :  { %8031 = vmatprep.subr.bf16.mxu0 %v8030_v34  ;;  %7247 = vmatmul.mubr.f32.vlgmr.msra.gmra.mrb[0].mxu1 %v330_v20  ;;  %v398_v61 = vand.u32 4294901760, %v9658_v45  ;;  %v12450_v20 = vld [vmem:[#allocation11_spill] sm:$0xff] }
  0xd5   :  { %7249 = vmatprep.mubr.f32.mxu1 %v340_v28  ;;  %v360_v37 = vand.u32 4294901760, %v359_v46  ;;  %v12455_v28 = vld [vmem:[#allocation28_spill] sm:$0xff] }
  0xd6   :  { %7475 = vmatmul.mubr.f32.gmra.mrb[8].mxu0 %v12430_v1  ;;  %v379_v1 = vsub.f32 %v9648_v51, %v378_v2  ;;  %v418_v51 = vand.u32 4294901760, %v9668_v15  ;;  %v12458_v46 = vld [vmem:[#allocation32_spill] sm:$0xff] }
  0xd7   :  { %7477 = vmatprep.mubr.f32.mxu0 %v12431_v44  ;;  %8033 = vmatpush3.bf16.msra.mxu0 %v8030_v34  ;;  %v368_v34 = vand.u32 4294901760, %v9643_v3  ;;  %v389_v44 = vsub.f32 %v9653_v52, %v388_v27  ;;  %v428_v52 = vand.u32 4294901760, %v9673_v21 }
  0xd8   :  { %8035 = vmatprep.subr.bf16.mxu0 %v8034_v12  ;;  %7250 = vmatmul.mubr.f32.gmra.mrb[2].mxu1 %v350_v56  ;;  %v380_v17 = vand.u32 4294901760, %v379_v1  ;;  %v419_v33 = vsub.f32 %v9668_v15, %v418_v51  ;;  %v458_v15 = vand.u32 4294901760, %v9688_v30  ;;  %v12457_v56 = vld [vmem:[#allocation31_spill] sm:$0xff] }
  0xd9   :  { %v369_v41 = vsub.f32 %v9643_v3, %v368_v34  ;;  %7252 = vmatprep.mubr.f32.mxu1 %v360_v37  ;;  %v408_v3 = vand.u32 4294901760, %v9663_v25  ;;  %v390_v10 = vand.u32 4294901760, %v389_v44  ;;  %v429_v4 = vsub.f32 %v9673_v21, %v428_v52  ;;  %v12461_v37 = vld [vmem:[#allocation34_spill] sm:$0xff]  ;;  %v12464_v1 = vld [vmem:[#allocation39_spill] sm:$0xff]  ;;  %v12465_v44 = vld [vmem:[#allocation40_spill] sm:$0xff] }
  0xda   :  { %7478 = vmatmul.mubr.f32.gmra.mrb[10].mxu0 %v12434_v18  ;;  %v420_v23 = vand.u32 4294901760, %v419_v33  ;;  %v468_v21 = vand.u32 4294901760, %v9693_v55  ;;  %v459_v53 = vsub.f32 %v9688_v30, %v458_v15  ;;  %v12448_v30 = vld [vmem:[#allocation15_spill] sm:$0xff] }
  0xdb   :  { %7480 = vmatprep.mubr.f32.mxu0 %v12435_v63  ;;  %8037 = vmatpush3.bf16.msra.mxu0 %v8034_v12  ;;  %v370_v12 = vand.u32 4294901760, %v369_v41  ;;  %v409_v18 = vsub.f32 %v9663_v25, %v408_v3  ;;  %v448_v25 = vand.u32 4294901760, %v9683_v60  ;;  %v12459_v41 = vld [vmem:[#allocation19_spill] sm:$0xff] }
  0xdc   :  { %8039 = vmatprep.subr.bf16.mxu0 %v8038_v14  ;;  %v469_v40 = vsub.f32 %v9693_v55, %v468_v21  ;;  %v12449_v55 = vld [vmem:[#allocation18_spill] sm:$0xff] }
  0xdd   :  { %7253 = vmatmul.mubr.f32.gmra.mrb[4].mxu1 %v370_v12  ;;  %v410_v6 = vand.u32 4294901760, %v409_v18  ;;  %v12463_v12 = vld [vmem:[#allocation36_spill] sm:$0xff] }
  0xde   :  { %7481 = vmatmul.mubr.f32.gmra.mrb[12].mxu0 %v12440_v24  ;;  %7255 = vmatprep.mubr.f32.mxu1 %v380_v17 }
  0xdf   :  { %7483 = vmatprep.mubr.f32.mxu0 %v12441_v49  ;;  %8041 = vmatpush3.bf16.msra.mxu0 %v8038_v14  ;;  %v399_v14 = vsub.f32 %v9658_v45, %v398_v61  ;;  %v438_v45 = vand.u32 4294901760, %v9678_v57 }
  0xe0   :  { %8043 = vmatprep.subr.bf16.mxu0 %v8042_v59 }
  0xe1   :  { %7256 = vmatmul.mubr.f32.gmra.mrb[6].mxu1 %v390_v10  ;;  %v400_v63 = vand.u32 4294901760, %v399_v14  ;;  %v439_v24 = vsub.f32 %v9678_v57, %v438_v45  ;;  %v470_v57 = vand.u32 4294901760, %v469_v40 }
  0xe2   :  { %7484 = vmatmul.mubr.f32.gmra.mrb[14].mxu0 %v12442_v29  ;;  %v460_v29 = vand.u32 4294901760, %v459_v53 }
  0xe3   :  { %7486 = vmatprep.mubr.f32.mxu0 %v318_v7  ;;  %8045 = vmatpush3.bf16.msra.mxu0 %v8042_v59  ;;  %v430_v59 = vand.u32 4294901760, %v429_v4  ;;  %v449_v7 = vsub.f32 %v9683_v60, %v448_v25  ;;  %v440_v49 = vand.u32 4294901760, %v439_v24  ;;  %v12444_v60 = vld [vmem:[#allocation10_spill] sm:$0xff] }
  0xe4   :  { %8047 = vmatprep.subr.bf16.mxu0 %v12443_v62  ;;  %7258 = vmatprep.mubr.f32.mxu1 %v400_v63 }
  0xe5   :  { %7259 = vmatmul.mubr.f32.gmra.mrb[8].mxu1 %v410_v6 }
  0xe6   :  { %7487 = vmatmul.mubr.f32.gmra.mrb[16].mxu0 %v328_v43  ;;  %7261 = vmatprep.mubr.f32.mxu1 %v420_v23  ;;  %v450_v43 = vand.u32 4294901760, %v449_v7 }
  0xe7   :  { %7489 = vmatprep.mubr.f32.mxu0 %v338_v54  ;;  %v12445_v54 = vld [vmem:[#allocation12_spill] sm:$0xff] }
  0xe9   :  { %7262 = vmatmul.mubr.f32.gmra.mrb[10].mxu1 %v430_v59 }
  0xea   :  { %7490 = vmatmul.mubr.f32.gmra.mrb[18].mxu0 %v348_v38  ;;  %7264 = vmatprep.mubr.f32.mxu1 %v440_v49  ;;  %v12447_v38 = vld [vmem:[#allocation9_spill] sm:$0xff] }
  0xeb   :  { %7492 = vmatprep.mubr.f32.mxu0 %v358_v0  ;;  %v12453_v0 = vld [vmem:[#allocation13_spill] sm:$0xff] }
  0xed   :  { %7265 = vmatmul.mubr.f32.gmra.mrb[12].mxu1 %v450_v43 }
  0xee   :  { %7493 = vmatmul.mubr.f32.gmra.mrb[20].mxu0 %v368_v34  ;;  %7267 = vmatprep.mubr.f32.mxu1 %v460_v29  ;;  %v12456_v34 = vld [vmem:[#allocation16_spill] sm:$0xff] }
  0xef   :  { %7495 = vmatprep.mubr.f32.mxu0 %v378_v2  ;;  %v12460_v2 = vld [vmem:[#allocation33_spill] sm:$0xff] }
  0xf1   :  { %7268 = vmatmul.mubr.f32.gmra.mrb[14].mxu1 %v470_v57 }
  0xf2   :  { %7496 = vmatmul.mubr.f32.gmra.mrb[22].mxu0 %v388_v27  ;;  %v12462_v27 = vld [vmem:[#allocation35_spill] sm:$0xff] }
  0xf3   :  { %7498 = vmatprep.mubr.f32.mxu0 %v398_v61 }
  0xf6   :  { %7499 = vmatmul.mubr.f32.gmra.mrb[24].mxu0 %v408_v3 }
  0xf7   :  { %7501 = vmatprep.mubr.f32.mxu0 %v418_v51 }
  0xfa   :  { %7502 = vmatmul.mubr.f32.gmra.mrb[26].mxu0 %v428_v52 }
  0xfb   :  { %7504 = vmatprep.mubr.f32.mxu0 %v438_v45 }
  0xfe   :  { %7505 = vmatmul.mubr.f32.gmra.mrb[28].mxu0 %v448_v25 }
  0xff   :  { %7507 = vmatprep.mubr.f32.mxu0 %v458_v15 }
 0x102   :  { %7508 = vmatmul.mubr.f32.gmra.mrb[30].mxu0 %v468_v21 }
 0x103   :  { %7542 = vmatprep.mubr.f32.mxu0 %v12444_v60 }
 0x106   :  { %7543 = vmatmul.mubr.f32.vlgmr.msra.gmra.mrb[0].mxu0 %v12445_v54 }
 0x107   :  { %8049 = vmatpush3.bf16.msra.mxu0 %v12443_v62  ;;  %7545 = vmatprep.mubr.f32.mxu0 %v12446_v16  ;;  %v12454_v62 = vld [vmem:[#allocation26_spill] sm:$0xff] }
 0x108   :  { %8051 = vmatprep.subr.bf16.mxu0 %v12447_v38 }
 0x10a   :  { %7546 = vmatmul.mubr.f32.gmra.mrb[2].mxu0 %v12448_v30 }
 0x10b   :  { %7548 = vmatprep.mubr.f32.mxu0 %v12449_v55  ;;  %8053 = vmatpush3.bf16.msra.mxu0 %v12447_v38 }
 0x10c   :  { %8055 = vmatprep.subr.bf16.mxu0 %v12450_v20 }
 0x10e   :  { %7549 = vmatmul.mubr.f32.gmra.mrb[4].mxu0 %v12451_v5 }
 0x10f   :  { %7551 = vmatprep.mubr.f32.mxu0 %v12452_v26  ;;  %8057 = vmatpush3.bf16.msra.mxu0 %v12450_v20 }
 0x110   :  { %8059 = vmatprep.subr.bf16.mxu0 %v12453_v0 }
 0x112   :  { %7552 = vmatmul.mubr.f32.gmra.mrb[6].mxu0 %v12454_v62 }
 0x113   :  { %7554 = vmatprep.mubr.f32.mxu0 %v12455_v28  ;;  %8061 = vmatpush3.bf16.msra.mxu0 %v12453_v0 }
 0x114   :  { %8063 = vmatprep.subr.bf16.mxu0 %v12456_v34 }
 0x116   :  { %7555 = vmatmul.mubr.f32.gmra.mrb[8].mxu0 %v12457_v56 }
 0x117   :  { %7557 = vmatprep.mubr.f32.mxu0 %v12458_v46  ;;  %8065 = vmatpush3.bf16.msra.mxu0 %v12456_v34 }
 0x118   :  { %8067 = vmatprep.subr.bf16.mxu0 %v12459_v41 }
 0x11a   :  { %7558 = vmatmul.mubr.f32.gmra.mrb[10].mxu0 %v12460_v2 }
 0x11b   :  { %7560 = vmatprep.mubr.f32.mxu0 %v12461_v37  ;;  %8069 = vmatpush3.bf16.msra.mxu0 %v12459_v41 }
 0x11c   :  { %8071 = vmatprep.subr.bf16.mxu0 %v12413_v58 }
 0x11e   :  { %7561 = vmatmul.mubr.f32.gmra.mrb[12].mxu0 %v12462_v27 }
 0x11f   :  { %7563 = vmatprep.mubr.f32.mxu0 %v12463_v12  ;;  %8073 = vmatpush3.bf16.msra.mxu0 %v12413_v58  ;;  %v12466_v58 = vld [vmem:[#allocation41_spill] sm:$0xff] }
 0x120   :  { %8075 = vmatprep.subr.bf16.mxu0 %v12414_v11 }
 0x122   :  { %7564 = vmatmul.mubr.f32.gmra.mrb[14].mxu0 %v12464_v1 }
 0x123   :  { %7566 = vmatprep.mubr.f32.mxu0 %v9445_v22  ;;  %8077 = vmatpush3.bf16.msra.mxu0 %v12414_v11 }
 0x126   :  { %7567 = vmatmul.mubr.f32.gmra.mrb[16].mxu0 %v9459_v32 }
 0x127   :  { %7569 = vmatprep.mubr.f32.mxu0 %v12465_v44 }
 0x12a   :  { %7570 = vmatmul.mubr.f32.gmra.mrb[18].mxu0 %v9478_v39 }
 0x12b   :  { %7572 = vmatprep.mubr.f32.mxu0 %v9482_v42 }
 0x12e   :  { %7573 = vmatmul.mubr.f32.gmra.mrb[20].mxu0 %v9496_v35 }
 0x12f   :  { %7575 = vmatprep.mubr.f32.mxu0 %v9500_v36 }
 0x132   :  { %7576 = vmatmul.mubr.f32.gmra.mrb[22].mxu0 %v9514_v47 }
 0x133   :  { %7578 = vmatprep.mubr.f32.mxu0 %v9518_v48 }
 0x136   :  { %7579 = vmatmul.mubr.f32.gmra.mrb[24].mxu0 %v9532_v31 }
 0x137   :  { %7581 = vmatprep.mubr.f32.mxu0 %v9536_v50 }
 0x13a   :  { %7582 = vmatmul.mubr.f32.gmra.mrb[26].mxu0 %v9550_v13 }
 0x13b   :  { %7584 = vmatprep.mubr.f32.mxu0 %v9554_v8 }
 0x13e   :  { %7585 = vmatmul.mubr.f32.gmra.mrb[28].mxu0 %v9568_v19 }
 0x13f   :  { %7587 = vmatprep.mubr.f32.mxu0 %v9572_v9 }
 0x142   :  { %7588 = vmatmul.mubr.f32.gmra.mrb[30].mxu0 %v12466_v58 }
 0x143   :  { %7622 = vmatprep.mubr.f32.mxu0 %v12444_v60 }
 0x146   :  { %7623 = vmatmul.mubr.f32.vlgmr.msra.gmra.mrb[0].mxu0 %v12445_v54 }
 0x147   :  { %7625 = vmatprep.mubr.f32.mxu0 %v12446_v16 }
 0x14a   :  { %7626 = vmatmul.mubr.f32.gmra.mrb[2].mxu0 %v12448_v30 }
 0x14b   :  { %7628 = vmatprep.mubr.f32.mxu0 %v12449_v55 }
 0x14e   :  { %7629 = vmatmul.mubr.f32.gmra.mrb[4].mxu0 %v12451_v5 }
 0x14f   :  { %7631 = vmatprep.mubr.f32.mxu0 %v12452_v26 }
 0x152   :  { %7632 = vmatmul.mubr.f32.gmra.mrb[6].mxu0 %v12454_v62 }
 0x153   :  { %7634 = vmatprep.mubr.f32.mxu0 %v12455_v28 }
 0x156   :  { %7635 = vmatmul.mubr.f32.gmra.mrb[8].mxu0 %v12457_v56 }
 0x157   :  { %7637 = vmatprep.mubr.f32.mxu0 %v12458_v46 }
 0x15a   :  { %7638 = vmatmul.mubr.f32.gmra.mrb[10].mxu0 %v12460_v2 }
 0x15b   :  { %7640 = vmatprep.mubr.f32.mxu0 %v12461_v37 }
 0x15e   :  { %7641 = vmatmul.mubr.f32.gmra.mrb[12].mxu0 %v12462_v27 }
 0x15f   :  { %7643 = vmatprep.mubr.f32.mxu0 %v12463_v12 }
 0x162   :  { %7644 = vmatmul.mubr.f32.gmra.mrb[14].mxu0 %v12464_v1 }
 0x163   :  { %7646 = vmatprep.mubr.f32.mxu0 %v9445_v22 }
 0x166   :  { %7647 = vmatmul.mubr.f32.gmra.mrb[16].mxu0 %v9459_v32 }
 0x167   :  { %7649 = vmatprep.mubr.f32.mxu0 %v12465_v44 }
 0x16a   :  { %7650 = vmatmul.mubr.f32.gmra.mrb[18].mxu0 %v9478_v39 }
 0x16b   :  { %7652 = vmatprep.mubr.f32.mxu0 %v9482_v42 }
 0x16e   :  { %7653 = vmatmul.mubr.f32.gmra.mrb[20].mxu0 %v9496_v35 }
 0x16f   :  { %7655 = vmatprep.mubr.f32.mxu0 %v9500_v36 }
 0x172   :  { %7656 = vmatmul.mubr.f32.gmra.mrb[22].mxu0 %v9514_v47 }
 0x173   :  { %7658 = vmatprep.mubr.f32.mxu0 %v9518_v48 }
 0x176   :  { %7659 = vmatmul.mubr.f32.gmra.mrb[24].mxu0 %v9532_v31 }
 0x177   :  { %7661 = vmatprep.mubr.f32.mxu0 %v9536_v50 }
 0x17a   :  { %7662 = vmatmul.mubr.f32.gmra.mrb[26].mxu0 %v9550_v13 }
 0x17b   :  { %7664 = vmatprep.mubr.f32.mxu0 %v9554_v8 }
 0x17e   :  { %7665 = vmatmul.mubr.f32.gmra.mrb[28].mxu0 %v9568_v19 }
 0x17f   :  { %7667 = vmatprep.mubr.f32.mxu0 %v9572_v9 }
 0x182   :  { %7668 = vmatmul.mubr.f32.gmra.mrb[30].mxu0 %v12466_v58 }
 0x1a7   :  { %v9866_v11 = vpop.f32.mrb[0].mxu1 }
 0x1a8   :  { %v9868_v22 = vpop.f32.mrb[1].mxu1 }
 0x1ab   :  { %v9870_v32 = vpop.f32.mrb[2].mxu1 }
 0x1ac   :  { %v9872_v39 = vpop.f32.mrb[3].mxu1 }
 0x1b0   :  { %v9874_v42 = vpop.f32.mrb[4].mxu1 }
 0x1b1   :  { %v9876_v50 = vpop.f32.mrb[5].mxu1 }
 0x1b4   :  { %v9878_v13 = vpop.f32.mrb[6].mxu1 }
 0x1b5   :  { %v9880_v8 = vpop.f32.mrb[7].mxu1 }
 0x1b8   :  { %v9882_v19 = vpop.f32.mrb[8].mxu1 }
 0x1b9   :  { %v9884_v9 = vpop.f32.mrb[9].mxu1 }
 0x1bc   :  { %v9886_v35 = vpop.f32.mrb[10].mxu1 }
 0x1bd   :  { %v9888_v36 = vpop.f32.mrb[11].mxu1 }
 0x1c0   :  { %v9890_v47 = vpop.f32.mrb[12].mxu1 }
 0x1c1   :  { %v9892_v48 = vpop.f32.mrb[13].mxu1 }
 0x1c4   :  { %v9894_v31 = vpop.f32.mrb[14].mxu1 }
 0x1c5   :  { %v9896_v61 = vpop.f32.mrb[15].mxu1 }
 0x219   :  { %v9898_v17 = vpop.f32.mrb[0].mxu0 }
 0x21a   :  { %v2051_v3 = vsel %vm2049_vm0, %v9898_v17, 0.0  ;;  %v9902_v10 = vpop.f32.mrb[1].mxu0 }
 0x21b   :  { %v2050_v14 = vsel %vm2049_vm0, %v9902_v10, 0.0 }
 0x21c   :  { %v2052_v18 = vadd.f32 %v2051_v3, %v2050_v14 }
 0x21d   :  { %v9906_v51 = vpop.f32.mrb[2].mxu0 }
 0x21e   :  { %v9908_v63 = vpop.f32.mrb[3].mxu0  ;;  %v2055_v33 = vsel %vm2049_vm0, %v9906_v51, 0.0 }
 0x21f   :  { %v2053_v52 = vsel %vm2049_vm0, %v9908_v63, 0.0 }
 0x220   :  { %v2054_v6 = vadd.f32 %v2053_v52, %v2052_v18 }
 0x221   :  { %v9914_v4 = vpop.f32.mrb[4].mxu0 }
 0x222   :  { %v9916_v45 = vpop.f32.mrb[5].mxu0  ;;  %v2056_v23 = vadd.f32 %v2055_v33, %v2054_v6  ;;  %v2059_v24 = vsel %vm2049_vm0, %v9914_v4, 0.0 }
 0x223   :  { %v2057_v25 = vsel %vm2049_vm0, %v9916_v45, 0.0 }
 0x224   :  { %v2058_v59 = vadd.f32 %v2057_v25, %v2056_v23 }
 0x225   :  { %v9922_v7 = vpop.f32.mrb[6].mxu0 }
 0x226   :  { %v9924_v15 = vpop.f32.mrb[7].mxu0  ;;  %v2060_v49 = vadd.f32 %v2059_v24, %v2058_v59  ;;  %v2063_v53 = vsel %vm2049_vm0, %v9922_v7, 0.0 }
 0x227   :  { %v2061_v21 = vsel %vm2049_vm0, %v9924_v15, 0.0 }
 0x228   :  { %v2062_v43 = vadd.f32 %v2061_v21, %v2060_v49 }
 0x229   :  { %v9930_v40 = vpop.f32.mrb[8].mxu0 }
 0x22a   :  { %v9932_v29 = vpop.f32.mrb[9].mxu0  ;;  %v2064_v57 = vadd.f32 %v2063_v53, %v2062_v43  ;;  %v2067_v16 = vsel %vm2049_vm0, %v9930_v40, 0.0 }
 0x22b   :  { %v2065_v60 = vsel %vm2049_vm0, %v9932_v29, 0.0 }
 0x22c   :  { %v2066_v54 = vadd.f32 %v2065_v60, %v2064_v57 }
 0x22d   :  { %v9938_v38 = vpop.f32.mrb[10].mxu0 }
 0x22e   :  { %v9940_v30 = vpop.f32.mrb[11].mxu0  ;;  %v2068_v55 = vadd.f32 %v2067_v16, %v2066_v54  ;;  %v2071_v26 = vsel %vm2049_vm0, %v9938_v38, 0.0 }
 0x22f   :  { %v2069_v20 = vsel %vm2049_vm0, %v9940_v30, 0.0 }
 0x230   :  { %v2070_v5 = vadd.f32 %v2069_v20, %v2068_v55 }
 0x231   :  { %v9946_v0 = vpop.f32.mrb[12].mxu0 }
 0x232   :  { %v9948_v62 = vpop.f32.mrb[13].mxu0  ;;  %v2072_v28 = vadd.f32 %v2071_v26, %v2070_v5  ;;  %v2075_v46 = vsel %vm2049_vm0, %v9946_v0, 0.0 }
 0x233   :  { %v2073_v34 = vsel %vm2049_vm0, %v9948_v62, 0.0 }
 0x234   :  { %v2074_v56 = vadd.f32 %v2073_v34, %v2072_v28 }
 0x235   :  { %v9954_v41 = vpop.f32.mrb[14].mxu0 }
 0x236   :  { %v9956_v2 = vpop.f32.mrb[15].mxu0  ;;  %v2076_v37 = vadd.f32 %v2075_v46, %v2074_v56  ;;  %v2079_v1 = vsel %vm2049_vm0, %v9954_v41, 0.0 }
 0x237   :  { %v2077_v27 = vsel %vm2049_vm0, %v9956_v2, 0.0 }
 0x238   :  { %v2078_v12 = vadd.f32 %v2077_v27, %v2076_v37 }
 0x239   :  { %v7648_v44 = vpop.f32.mrb[16].mxu0 }
 0x23a   :  { %v2080_v58 = vadd.f32 %v2079_v1, %v2078_v12  ;;  %v9963_v3 = vadd.f32 %v7648_v44, %v9866_v11  ;;  %v1955_v14 = vpop.f32.mrb[17].mxu0 }
 0x23b   :  { %v9966_v18 = vadd.f32 %v1955_v14, %v9868_v22 }
 0x23c   :  { %v2083_v59 = vsel %vm2049_vm0, %v9963_v3, 0.0 }
 0x23d   :  { %v2081_v52 = vsel %vm2049_vm0, %v9966_v18, 0.0  ;;  %v7651_v6 = vpop.f32.mrb[18].mxu0 }
 0x23e   :  { %v2082_v33 = vadd.f32 %v2081_v52, %v2080_v58  ;;  %v9971_v23 = vadd.f32 %v7651_v6, %v9870_v32  ;;  %v1967_v25 = vpop.f32.mrb[19].mxu0 }
 0x23f   :  { %v9976_v24 = vadd.f32 %v1967_v25, %v9872_v39 }
 0x240   :  { %v2084_v11 = vadd.f32 %v2083_v59, %v2082_v33  ;;  %v2087_v32 = vsel %vm2049_vm0, %v9971_v23, 0.0 }
 0x241   :  { %v2085_v22 = vsel %vm2049_vm0, %v9976_v24, 0.0  ;;  %v7654_v49 = vpop.f32.mrb[20].mxu0 }
 0x242   :  { %v2086_v21 = vadd.f32 %v2085_v22, %v2084_v11  ;;  %v9981_v43 = vadd.f32 %v7654_v49, %v9874_v42  ;;  %v1979_v53 = vpop.f32.mrb[21].mxu0 }
 0x243   :  { %v9986_v57 = vadd.f32 %v1979_v53, %v9876_v50 }
 0x244   :  { %v2088_v60 = vadd.f32 %v2087_v32, %v2086_v21  ;;  %v2091_v42 = vsel %vm2049_vm0, %v9981_v43, 0.0 }
 0x245   :  { %v2089_v39 = vsel %vm2049_vm0, %v9986_v57, 0.0  ;;  %v7657_v54 = vpop.f32.mrb[22].mxu0 }
 0x246   :  { %v2090_v16 = vadd.f32 %v2089_v39, %v2088_v60  ;;  %v9991_v55 = vadd.f32 %v7657_v54, %v9878_v13  ;;  %v1991_v20 = vpop.f32.mrb[23].mxu0 }
 0x247   :  { %v9996_v5 = vadd.f32 %v1991_v20, %v9880_v8 }
 0x248   :  { %v2092_v26 = vadd.f32 %v2091_v42, %v2090_v16  ;;  %v2095_v13 = vsel %vm2049_vm0, %v9991_v55, 0.0 }
 0x249   :  { %v2093_v50 = vsel %vm2049_vm0, %v9996_v5, 0.0  ;;  %v7660_v28 = vpop.f32.mrb[24].mxu0 }
 0x24a   :  { %v2094_v34 = vadd.f32 %v2093_v50, %v2092_v26  ;;  %v10001_v56 = vadd.f32 %v7660_v28, %v9882_v19  ;;  %v2003_v46 = vpop.f32.mrb[25].mxu0 }
 0x24b   :  { %v10006_v37 = vadd.f32 %v2003_v46, %v9884_v9 }
 0x24c   :  { %v2096_v27 = vadd.f32 %v2095_v13, %v2094_v34  ;;  %v2099_v19 = vsel %vm2049_vm0, %v10001_v56, 0.0 }
 0x24d   :  { %v2097_v8 = vsel %vm2049_vm0, %v10006_v37, 0.0  ;;  %v7663_v12 = vpop.f32.mrb[26].mxu0 }
 0x24e   :  { %v2098_v1 = vadd.f32 %v2097_v8, %v2096_v27  ;;  %v10011_v44 = vadd.f32 %v7663_v12, %v9886_v35  ;;  %v2015_v58 = vpop.f32.mrb[27].mxu0 }
 0x24f   :  { %v10016_v14 = vadd.f32 %v2015_v58, %v9888_v36 }
 0x250   :  { %v2100_v52 = vadd.f32 %v2099_v19, %v2098_v1  ;;  %v2103_v35 = vsel %vm2049_vm0, %v10011_v44, 0.0 }
 0x251   :  { %v2101_v9 = vsel %vm2049_vm0, %v10016_v14, 0.0  ;;  %v7666_v6 = vpop.f32.mrb[28].mxu0 }
 0x252   :  { %v2102_v33 = vadd.f32 %v2101_v9, %v2100_v52  ;;  %v10021_v25 = vadd.f32 %v7666_v6, %v9890_v47  ;;  %v2027_v59 = vpop.f32.mrb[29].mxu0 }
 0x253   :  { %v10026_v11 = vadd.f32 %v2027_v59, %v9892_v48 }
 0x254   :  { %v2104_v22 = vadd.f32 %v2103_v35, %v2102_v33  ;;  %v2107_v47 = vsel %vm2049_vm0, %v10021_v25, 0.0 }
 0x255   :  { %v2105_v36 = vsel %vm2049_vm0, %v10026_v11, 0.0  ;;  %v7669_v49 = vpop.f32.mrb[30].mxu0 }
 0x256   :  { %v2106_v21 = vadd.f32 %v2105_v36, %v2104_v22  ;;  %v10031_v53 = vadd.f32 %v7669_v49, %v9894_v31  ;;  %v2039_v32 = vpop.f32.mrb[31].mxu0 }
 0x257   :  { %v10036_v60 = vadd.f32 %v2039_v32, %v9896_v61 }
 0x258   :  { %v2108_v39 = vadd.f32 %v2107_v47, %v2106_v21  ;;  %v2111_v16 = vsel %vm2049_vm0, %v10031_v53, 0.0 }
 0x259   :  { %v2109_v48 = vsel %vm2049_vm0, %v10036_v60, 0.0 }
 0x25a   :  { %v2110_v54 = vadd.f32 %v2109_v48, %v2108_v39 }
 0x25c   :  { %v2112_v20 = vadd.f32 %v2111_v16, %v2110_v54 }
 0x25e   :  { %v2113_v42 = vrot.slane %v2112_v20, 4 }
 0x260   :  { %v2114_v26 = vadd.f32 %v2113_v42, %v2112_v20 }
 0x262   :  { %v2115_v31 = vrot.slane %v2114_v26, 2 }
 0x264   :  { %v2116_v50 = vadd.f32 %v2115_v31, %v2114_v26 }
 0x266   :  { %v2117_v28 = vrot.slane %v2116_v50, 1 }
 0x268   :  { %v2118_v34 = vadd.f32 %v2117_v28, %v2116_v50 }
 0x26a   :  { %v10042_v46 = vmul.f32 0.005, %v2118_v34 }
 0x26c   :  { %v2121_v61 = vsub.f32 %v9902_v10, %v10042_v46  ;;  %v2122_v13 = vsub.f32 %v9898_v17, %v10042_v46  ;;  %v2123_v27 = vsub.f32 %v9908_v63, %v10042_v46  ;;  %v2124_v8 = vsub.f32 %v9906_v51, %v10042_v46 }
 0x26d   :  { %v2125_v58 = vsub.f32 %v9916_v45, %v10042_v46  ;;  %v2126_v52 = vsub.f32 %v9914_v4, %v10042_v46  ;;  %v2127_v35 = vsub.f32 %v9924_v15, %v10042_v46  ;;  %v2128_v21 = vsub.f32 %v9922_v7, %v10042_v46 }
 0x26e   :  { %v2153_v12 = vmul.f32 %v2121_v61, %v2121_v61  ;;  %v2154_v1 = vmul.f32 %v2122_v13, %v2122_v13  ;;  %v2155_v19 = vmul.f32 %v2123_v27, %v2123_v27  ;;  %v2156_v9 = vmul.f32 %v2124_v8, %v2124_v8 }
 0x26f   :  { %v2157_v22 = vmul.f32 %v2125_v58, %v2125_v58  ;;  %v2158_v32 = vmul.f32 %v2126_v52, %v2126_v52  ;;  %v2129_v48 = vsub.f32 %v9932_v29, %v10042_v46  ;;  %v2159_v54 = vmul.f32 %v2127_v35, %v2127_v35 }
 0x270   :  { %v2185_v6 = vsel %vm2049_vm0, %v2153_v12, 0.0  ;;  %v2186_v33 = vsel %vm2049_vm0, %v2154_v1, 0.0  ;;  %v2188_v36 = vsel %vm2049_vm0, %v2155_v19, 0.0  ;;  %v2190_v47 = vsel %vm2049_vm0, %v2156_v9, 0.0 }
 0x271   :  { %v2187_v59 = vadd.f32 %v2186_v33, %v2185_v6  ;;  %v2192_v16 = vsel %vm2049_vm0, %v2157_v22, 0.0  ;;  %v2130_v42 = vsub.f32 %v9930_v40, %v10042_v46  ;;  %v2160_v26 = vmul.f32 %v2128_v21, %v2128_v21 }
 0x272   :  { %v2194_v31 = vsel %vm2049_vm0, %v2158_v32, 0.0  ;;  %v2131_v28 = vsub.f32 %v9940_v30, %v10042_v46  ;;  %v2161_v34 = vmul.f32 %v2129_v48, %v2129_v48  ;;  %v2196_v61 = vsel %vm2049_vm0, %v2159_v54, 0.0 }
 0x273   :  { %v2189_v49 = vadd.f32 %v2188_v36, %v2187_v59  ;;  %v2132_v27 = vsub.f32 %v9938_v38, %v10042_v46  ;;  %v2162_v8 = vmul.f32 %v2130_v42, %v2130_v42  ;;  %v2198_v12 = vsel %vm2049_vm0, %v2160_v26, 0.0 }
 0x274   :  { %v2133_v58 = vsub.f32 %v9948_v62, %v10042_v46  ;;  %v2163_v19 = vmul.f32 %v2131_v28, %v2131_v28  ;;  %v2200_v52 = vsel %vm2049_vm0, %v2161_v34, 0.0  ;;  %v2134_v6 = vsub.f32 %v9946_v0, %v10042_v46 }
 0x275   :  { %v2191_v39 = vadd.f32 %v2190_v47, %v2189_v49  ;;  %v2164_v33 = vmul.f32 %v2132_v27, %v2132_v27  ;;  %v2202_v59 = vsel %vm2049_vm0, %v2162_v8, 0.0  ;;  %v2135_v22 = vsub.f32 %v9956_v2, %v10042_v46 }
 0x276   :  { %v2165_v36 = vmul.f32 %v2133_v58, %v2133_v58  ;;  %v2204_v49 = vsel %vm2049_vm0, %v2163_v19, 0.0  ;;  %v2136_v32 = vsub.f32 %v9954_v41, %v10042_v46  ;;  %v2166_v47 = vmul.f32 %v2134_v6, %v2134_v6 }
 0x277   :  { %v2193_v20 = vadd.f32 %v2192_v16, %v2191_v39  ;;  %v2206_v39 = vsel %vm2049_vm0, %v2164_v33, 0.0  ;;  %v2137_v54 = vsub.f32 %v9966_v18, %v10042_v46  ;;  %v2167_v16 = vmul.f32 %v2135_v22, %v2135_v22 }
 0x278   :  { %v2138_v26 = vsub.f32 %v9963_v3, %v10042_v46  ;;  %v2139_v34 = vsub.f32 %v9976_v24, %v10042_v46  ;;  %v2140_v8 = vsub.f32 %v9971_v23, %v10042_v46  ;;  %v2141_v19 = vsub.f32 %v9986_v57, %v10042_v46 }
 0x279   :  { %v2195_v50 = vadd.f32 %v2194_v31, %v2193_v20  ;;  %v2208_v20 = vsel %vm2049_vm0, %v2165_v36, 0.0  ;;  %v2168_v31 = vmul.f32 %v2136_v32, %v2136_v32  ;;  %v2142_v33 = vsub.f32 %v9981_v43, %v10042_v46 }
 0x27a   :  { %v2143_v36 = vsub.f32 %v9996_v5, %v10042_v46 }
 0x27b   :  { %v2197_v13 = vadd.f32 %v2196_v61, %v2195_v50  ;;  %v2210_v50 = vsel %vm2049_vm0, %v2166_v47, 0.0  ;;  %v2169_v61 = vmul.f32 %v2137_v54, %v2137_v54  ;;  %v2144_v47 = vsub.f32 %v9991_v55, %v10042_v46 }
 0x27d   :  { %v2199_v1 = vadd.f32 %v2198_v12, %v2197_v13  ;;  %v2212_v13 = vsel %vm2049_vm0, %v2167_v16, 0.0  ;;  %v2170_v12 = vmul.f32 %v2138_v26, %v2138_v26  ;;  %v2145_v16 = vsub.f32 %v10006_v37, %v10042_v46 }
 0x27f   :  { %v2201_v9 = vadd.f32 %v2200_v52, %v2199_v1  ;;  %v2214_v1 = vsel %vm2049_vm0, %v2168_v31, 0.0  ;;  %v2171_v52 = vmul.f32 %v2139_v34, %v2139_v34  ;;  %v2146_v31 = vsub.f32 %v10001_v56, %v10042_v46 }
 0x281   :  { %v2203_v35 = vadd.f32 %v2202_v59, %v2201_v9  ;;  %v2216_v9 = vsel %vm2049_vm0, %v2169_v61, 0.0  ;;  %v2172_v59 = vmul.f32 %v2140_v8, %v2140_v8  ;;  %v2147_v61 = vsub.f32 %v10016_v14, %v10042_v46 }
 0x283   :  { %v2205_v21 = vadd.f32 %v2204_v49, %v2203_v35  ;;  %v2218_v35 = vsel %vm2049_vm0, %v2170_v12, 0.0  ;;  %v2173_v49 = vmul.f32 %v2141_v19, %v2141_v19  ;;  %v2148_v12 = vsub.f32 %v10011_v44, %v10042_v46 }
 0x285   :  { %v2207_v48 = vadd.f32 %v2206_v39, %v2205_v21  ;;  %v2220_v21 = vsel %vm2049_vm0, %v2171_v52, 0.0  ;;  %v2174_v39 = vmul.f32 %v2142_v33, %v2142_v33  ;;  %v2149_v52 = vsub.f32 %v10026_v11, %v10042_v46 }
 0x287   :  { %v2209_v42 = vadd.f32 %v2208_v20, %v2207_v48  ;;  %v2222_v48 = vsel %vm2049_vm0, %v2172_v59, 0.0  ;;  %v2175_v20 = vmul.f32 %v2143_v36, %v2143_v36  ;;  %v2150_v59 = vsub.f32 %v10021_v25, %v10042_v46 }
 0x289   :  { %v2211_v28 = vadd.f32 %v2210_v50, %v2209_v42  ;;  %v2224_v42 = vsel %vm2049_vm0, %v2173_v49, 0.0  ;;  %v2176_v50 = vmul.f32 %v2144_v47, %v2144_v47  ;;  %v2151_v49 = vsub.f32 %v10036_v60, %v10042_v46 }
 0x28b   :  { %v2213_v27 = vadd.f32 %v2212_v13, %v2211_v28  ;;  %v2226_v28 = vsel %vm2049_vm0, %v2174_v39, 0.0  ;;  %v2177_v13 = vmul.f32 %v2145_v16, %v2145_v16  ;;  %v2152_v39 = vsub.f32 %v10031_v53, %v10042_v46 }
 0x28d   :  { %v2215_v58 = vadd.f32 %v2214_v1, %v2213_v27  ;;  %v2228_v27 = vsel %vm2049_vm0, %v2175_v20, 0.0  ;;  %v2178_v1 = vmul.f32 %v2146_v31, %v2146_v31  ;;  %v2183_v20 = vmul.f32 %v2151_v49, %v2151_v49 }
 0x28e   :  { %v2184_v31 = vmul.f32 %v2152_v39, %v2152_v39 }
 0x28f   :  { %v2217_v6 = vadd.f32 %v2216_v9, %v2215_v58  ;;  %v2230_v58 = vsel %vm2049_vm0, %v2176_v50, 0.0  ;;  %v2179_v9 = vmul.f32 %v2147_v61, %v2147_v61 }
 0x291   :  { %v2219_v22 = vadd.f32 %v2218_v35, %v2217_v6  ;;  %v2232_v6 = vsel %vm2049_vm0, %v2177_v13, 0.0  ;;  %v2180_v35 = vmul.f32 %v2148_v12, %v2148_v12  ;;  %v2246_v13 = vsel %vm2049_vm0, %v2184_v31, 0.0  ;;  %v2628_v12 = vld [vmem:[%s12069_s2 + $0x80] sm:$0xff] }
 0x293   :  { %v2221_v32 = vadd.f32 %v2220_v21, %v2219_v22  ;;  %v2234_v22 = vsel %vm2049_vm0, %v2178_v1, 0.0  ;;  %v2181_v21 = vmul.f32 %v2149_v52, %v2149_v52  ;;  %v2629_v1 = vld [vmem:[%s12069_s2 + $0x88] sm:$0xff]  ;;  %v2715_v52 = vand.u32 4294901760, %v2628_v12 }
 0x295   :  { %v2223_v54 = vadd.f32 %v2222_v48, %v2221_v32  ;;  %v2236_v32 = vsel %vm2049_vm0, %v2179_v9, 0.0  ;;  %v2182_v48 = vmul.f32 %v2150_v59, %v2150_v59  ;;  %v2718_v9 = vand.u32 4294901760, %v2629_v1  ;;  %v2630_v59 = vld [vmem:[%s12069_s2 + $0x90] sm:$0xff] }
 0x296   :  { %v2721_v49 = vand.u32 4294901760, %v2630_v59 }
 0x297   :  { %v2225_v26 = vadd.f32 %v2224_v42, %v2223_v54  ;;  %v2238_v54 = vsel %vm2049_vm0, %v2180_v35, 0.0  ;;  %v2240_v42 = vsel %vm2049_vm0, %v2181_v21, 0.0  ;;  %v2242_v50 = vsel %vm2049_vm0, %v2182_v48, 0.0  ;;  %v2631_v35 = vld [vmem:[%s12069_s2 + $0x98] sm:$0xff] }
 0x298   :  { %v2724_v21 = vand.u32 4294901760, %v2631_v35  ;;  %v10165_v48 = vpack.c.bf16 %v2718_v9, %v2715_v52 }
 0x299   :  { %v2227_v34 = vadd.f32 %v2226_v28, %v2225_v26 }
 0x29a   :  { %12467 = vst [vmem:[#allocation17_spill] sm:$0xff] %v10165_v48  ;;  %8079 = vmatprep.subr.bf16.mxu1 %v10165_v48 }
 0x29b   :  { %v2229_v8 = vadd.f32 %v2228_v27, %v2227_v34  ;;  %v2244_v34 = vsel %vm2049_vm0, %v2183_v20, 0.0  ;;  %v2632_v20 = vld [vmem:[%s12069_s2 + $0xa0] sm:$0xff] }
 0x29d   :  { %v2231_v19 = vadd.f32 %v2230_v58, %v2229_v8  ;;  %v2612_v58 = vld [vmem:[%s12069_s2] sm:$0xff] }
 0x29f   :  { %v2233_v33 = vadd.f32 %v2232_v6, %v2231_v19  ;;  %v2613_v6 = vld [vmem:[%s12069_s2 + $0x8] sm:$0xff] }
 0x2a1   :  { %v2235_v36 = vadd.f32 %v2234_v22, %v2233_v33  ;;  %v2667_v33 = vand.u32 4294901760, %v2612_v58  ;;  %v2254_v22 = vmul.f32 56.0, %v10042_v46 }
 0x2a3   :  { %v2237_v47 = vadd.f32 %v2236_v32, %v2235_v36  ;;  %v2670_v36 = vand.u32 4294901760, %v2613_v6  ;;  %v2614_v32 = vld [vmem:[%s12069_s2 + $0x10] sm:$0xff] }
 0x2a5   :  { %v2239_v16 = vadd.f32 %v2238_v54, %v2237_v47  ;;  %v2615_v47 = vld [vmem:[%s12069_s2 + $0x18] sm:$0xff]  ;;  %v10167_v54 = vsub.f32 %v2628_v12, %v2715_v52  ;;  %v10180_v31 = vpack.c.bf16 %v2670_v36, %v2667_v33  ;;  %v2673_v12 = vand.u32 4294901760, %v2614_v32 }
 0x2a7   :  { %v2241_v26 = vadd.f32 %v2240_v42, %v2239_v16  ;;  %v10169_v16 = vsub.f32 %v2629_v1, %v2718_v9  ;;  %v2633_v42 = vld [vmem:[%s12069_s2 + $0xa8] sm:$0xff]  ;;  %12468 = vst [vmem:[#allocation22_spill] sm:$0xff] %v10180_v31  ;;  %8081 = vmatpush3.bf16.msra.mxu1 %v10180_v31  ;;  %v2676_v1 = vand.u32 4294901760, %v2615_v47 }
 0x2a8   :  { %v2730_v52 = vand.u32 4294901760, %v2633_v42 }
 0x2a9   :  { %v2243_v28 = vadd.f32 %v2242_v50, %v2241_v26  ;;  %v2616_v26 = vld [vmem:[%s12069_s2 + $0x20] sm:$0xff]  ;;  %v10182_v50 = vsub.f32 %v2612_v58, %v2667_v33  ;;  %v2727_v58 = vand.u32 4294901760, %v2632_v20  ;;  %v10198_v33 = vsub.f32 %v2614_v32, %v2673_v12 }
 0x2aa   :  { %v2679_v9 = vand.u32 4294901760, %v2616_v26  ;;  %v10209_v31 = vsub.f32 %v2633_v42, %v2730_v52  ;;  %v2258_v42 = vld [vmem:[%s12072_s5] sm:$0x1] }
 0x2ab   :  { %v2245_v61 = vadd.f32 %v2244_v34, %v2243_v28  ;;  %v10184_v28 = vsub.f32 %v2613_v6, %v2670_v36  ;;  %v10186_v34 = vpack.c.bf16 %v2724_v21, %v2721_v49 }
 0x2ac   :  { %v10211_v48 = vsub.f32 %v2616_v26, %v2679_v9 }
 0x2ad   :  { %v2247_v27 = vadd.f32 %v2246_v13, %v2245_v61  ;;  %12469 = vst [vmem:[#allocation25_spill] sm:$0xff] %v10186_v34  ;;  %v2617_v61 = vld [vmem:[%s12069_s2 + $0x28] sm:$0xff]  ;;  %8083 = vmatprep.subr.bf16.mxu1 %v10186_v34 }
 0x2ae   :  { %v2682_v36 = vand.u32 4294901760, %v2617_v61 }
 0x2af   :  { %v2248_v8 = vrot.slane %v2247_v27, 4 }
 0x2b0   :  { %v10214_v32 = vpack.c.bf16 %v2682_v36, %v2679_v9  ;;  %v10216_v34 = vsub.f32 %v2617_v61, %v2682_v36 }
 0x2b1   :  { %v2249_v19 = vadd.f32 %v2248_v8, %v2247_v27  ;;  %v10192_v27 = vsub.f32 %v2630_v59, %v2721_v49  ;;  %v10194_v8 = vsub.f32 %v2631_v35, %v2724_v21  ;;  %v10204_v59 = vpack.c.bf16 %v2730_v52, %v2727_v58 }
 0x2b2   :  { %v10206_v35 = vsub.f32 %v2632_v20, %v2727_v58  ;;  %v2255_v21 = vmul.f32 %v2254_v22, %v10042_v46  ;;  %12472 = vst [vmem:[#allocation30_spill] sm:$0xff] %v10214_v32  ;;  %v2262_v58 = vld [vmem:[%s12072_s5 + $0x1] sm:$0x1] }
 0x2b3   :  { %v2250_v39 = vrot.slane %v2249_v19, 2  ;;  %12471 = vst [vmem:[#allocation29_spill] sm:$0xff] %v10204_v59 }
 0x2b5   :  { %v2251_v13 = vadd.f32 %v2250_v39, %v2249_v19  ;;  %v10200_v19 = vpack.c.bf16 %v2676_v1, %v2673_v12  ;;  %v10202_v39 = vsub.f32 %v2615_v47, %v2676_v1 }
 0x2b7   :  { %v2252_v6 = vrot.slane %v2251_v13, 1  ;;  %12470 = vst [vmem:[#allocation27_spill] sm:$0xff] %v10200_v19  ;;  %8085 = vmatpush3.bf16.msra.mxu1 %v10200_v19 }
 0x2b8   :  { %8087 = vmatprep.subr.bf16.mxu1 %v10204_v59 }
 0x2b9   :  { %v2253_v49 = vadd.f32 %v2252_v6, %v2251_v13  ;;  %v2265_v13 = vlaneseq }
 0x2bb   :  { %v2256_v12 = vsub.f32 %v2253_v49, %v2255_v21  ;;  %8089 = vmatpush3.bf16.msra.mxu1 %v10214_v32  ;;  %v10220_v22 = vshrl.u32 %v2265_v13, 7 }
 0x2bd   :  { %v2257_v47 = vmul.f32 0.005, %v2256_v12  ;;  %12473 = vst [vmem:[#allocation21_spill] sm:$0xff] %v10220_v22  ;;  %v10226_v26 = vsub.s32 0, %v10220_v22 }
 0x2bf   :  { %v2259_v20 = vadd.f32 1e-05, %v2257_v47  ;;  %12474 = vst [vmem:[#allocation24_spill] sm:$0xff] %v10226_v26 }
 0x2c1   :  { %8815 = vrsqrt.f32 %v2259_v20 }
 0x2cb   :  { %v8816_v61 = vpop.eup %8815 }
 0x2cc   :  { %v2261_v1 = vmul.f32 %v8816_v61, %v2258_v42 }
 0x2ce   :  { %v2263_v52 = vmul.f32 %v2261_v1, %v10042_v46  ;;  %v2268_v9 = vrot.slane %v2261_v1, %v10226_v26 }
 0x2d0   :  { %v2264_v6 = vsub.f32 %v2262_v58, %v2263_v52  ;;  %v2275_v36 = vmul.f32 %v2268_v9, %v9924_v15  ;;  %v2283_v49 = vmul.f32 %v2268_v9, %v9956_v2  ;;  %v2291_v21 = vmul.f32 %v9996_v5, %v2268_v9 }
 0x2d1   :  { %v2299_v12 = vmul.f32 %v10036_v60, %v2268_v9  ;;  %v2269_v47 = vmul.f32 %v2268_v9, %v9902_v10  ;;  %v2270_v20 = vmul.f32 %v9898_v17, %v2268_v9  ;;  %v2271_v13 = vmul.f32 %v2268_v9, %v9908_v63 }
 0x2d2   :  { %v10241_v42 = vrot.slane %v2264_v6, %v10226_v26  ;;  %v2272_v46 = vmul.f32 %v9906_v51, %v2268_v9  ;;  %v2273_v61 = vmul.f32 %v2268_v9, %v9916_v45  ;;  %v2274_v15 = vmul.f32 %v9914_v4, %v2268_v9 }
 0x2d3   :  { %v2276_v2 = vmul.f32 %v9922_v7, %v2268_v9  ;;  %v2277_v5 = vmul.f32 %v2268_v9, %v9932_v29  ;;  %v2278_v60 = vmul.f32 %v9930_v40, %v2268_v9  ;;  %v2279_v10 = vmul.f32 %v2268_v9, %v9940_v30 }
 0x2d4   :  { %v2311_v17 = vadd.f32 %v10241_v42, %v2275_v36  ;;  %v2319_v63 = vadd.f32 %v10241_v42, %v2283_v49  ;;  %v2327_v1 = vadd.f32 %v10241_v42, %v2291_v21  ;;  %v2335_v51 = vadd.f32 %v10241_v42, %v2299_v12 }
 0x2d5   :  { %v2280_v45 = vmul.f32 %v9938_v38, %v2268_v9  ;;  %v2281_v4 = vmul.f32 %v2268_v9, %v9948_v62  ;;  %v2282_v7 = vmul.f32 %v9946_v0, %v2268_v9  ;;  %v2284_v29 = vmul.f32 %v9954_v41, %v2268_v9 }
 0x2d6   :  { %v2343_v58 = vmax.f32 %v2311_v17, 0.0  ;;  %v2351_v40 = vmax.f32 %v2319_v63, 0.0  ;;  %v2359_v52 = vmax.f32 %v2327_v1, 0.0  ;;  %v2367_v30 = vmax.f32 %v2335_v51, 0.0 }
 0x2d7   :  { %v2285_v6 = vmul.f32 %v9966_v18, %v2268_v9  ;;  %v2286_v36 = vmul.f32 %v9963_v3, %v2268_v9  ;;  %v2287_v49 = vmul.f32 %v9976_v24, %v2268_v9  ;;  %v2288_v21 = vmul.f32 %v9971_v23, %v2268_v9 }
 0x2d8   :  { %v2375_v12 = vmax.f32 %v2343_v58, %v2351_v40  ;;  %v2383_v38 = vmax.f32 %v2359_v52, %v2367_v30  ;;  %v2289_v62 = vmul.f32 %v9986_v57, %v2268_v9  ;;  %v2290_v0 = vmul.f32 %v9981_v43, %v2268_v9 }
 0x2d9   :  { %v2292_v41 = vmul.f32 %v9991_v55, %v2268_v9  ;;  %v2293_v17 = vmul.f32 %v10006_v37, %v2268_v9  ;;  %v2294_v63 = vmul.f32 %v10001_v56, %v2268_v9  ;;  %v2295_v18 = vmul.f32 %v10016_v14, %v2268_v9 }
 0x2da   :  { %v2391_v1 = vmax.f32 %v2375_v12, %v2383_v38  ;;  %v2296_v3 = vmul.f32 %v10011_v44, %v2268_v9  ;;  %v2297_v24 = vmul.f32 %v10026_v11, %v2268_v9  ;;  %v2298_v23 = vmul.f32 %v10021_v25, %v2268_v9 }
 0x2db   :  { %v2300_v51 = vmul.f32 %v10031_v53, %v2268_v9  ;;  %v2306_v57 = vadd.f32 %v10241_v42, %v2270_v20  ;;  %v2307_v43 = vadd.f32 %v10241_v42, %v2271_v13  ;;  %v2314_v55 = vadd.f32 %v10241_v42, %v2278_v60 }
 0x2dc   :  { %2399 = vst.msk [vmem:[#allocation2 + $0x30] sm:$0xff] %vm2049_vm0, %v2391_v1  ;;  %v2315_v56 = vadd.f32 %v10241_v42, %v2279_v10  ;;  %v2322_v37 = vadd.f32 %v10241_v42, %v2286_v36  ;;  %v2323_v44 = vadd.f32 %v10241_v42, %v2287_v49  ;;  %v2330_v14 = vadd.f32 %v10241_v42, %v2294_v63 }
 0x2dd   :  { %v2331_v25 = vadd.f32 %v10241_v42, %v2295_v18  ;;  %v2338_v11 = vmax.f32 %v2306_v57, 0.0  ;;  %v2339_v53 = vmax.f32 %v2307_v43, 0.0  ;;  %v2346_v9 = vmax.f32 %v2314_v55, 0.0 }
 0x2de   :  { %v2347_v20 = vmax.f32 %v2315_v56, 0.0  ;;  %v2354_v58 = vmax.f32 %v2322_v37, 0.0  ;;  %v2355_v13 = vmax.f32 %v2323_v44, 0.0  ;;  %v2362_v40 = vmax.f32 %v2330_v14, 0.0 }
 0x2df   :  { %v2363_v60 = vmax.f32 %v2331_v25, 0.0  ;;  %v2370_v52 = vmax.f32 %v2338_v11, %v2346_v9  ;;  %v2305_v30 = vadd.f32 %v10241_v42, %v2269_v47  ;;  %v2308_v10 = vadd.f32 %v10241_v42, %v2272_v46 }
 0x2e0   :  { %v2371_v36 = vmax.f32 %v2339_v53, %v2347_v20  ;;  %v2378_v12 = vmax.f32 %v2354_v58, %v2362_v40  ;;  %v2309_v49 = vadd.f32 %v10241_v42, %v2273_v61  ;;  %v2310_v38 = vadd.f32 %v10241_v42, %v2274_v15 }
 0x2e1   :  { %v2379_v63 = vmax.f32 %v2355_v13, %v2363_v60  ;;  %v2312_v18 = vadd.f32 %v10241_v42, %v2276_v2  ;;  %v2313_v1 = vadd.f32 %v10241_v42, %v2277_v5  ;;  %v2316_v57 = vadd.f32 %v10241_v42, %v2280_v45 }
 0x2e2   :  { %v2386_v43 = vmax.f32 %v2370_v52, %v2378_v12  ;;  %v2317_v55 = vadd.f32 %v10241_v42, %v2281_v4  ;;  %v2318_v47 = vadd.f32 %v10241_v42, %v2282_v7  ;;  %v2320_v46 = vadd.f32 %v10241_v42, %v2284_v29  ;;  %v2634_v52 = vld [vmem:[%s12069_s2 + $0xb0] sm:$0xff] }
 0x2e3   :  { %v2387_v56 = vmax.f32 %v2371_v36, %v2379_v63  ;;  %v2321_v37 = vadd.f32 %v10241_v42, %v2285_v6  ;;  %v2324_v61 = vadd.f32 %v10241_v42, %v2288_v21  ;;  %v2325_v15 = vadd.f32 %v10241_v42, %v2289_v62  ;;  %v2619_v63 = vld [vmem:[%s12069_s2 + $0x38] sm:$0xff] }
 0x2e4   :  { %2394 = vst.msk [vmem:[#allocation2 + $0x8] sm:$0xff] %vm2049_vm0, %v2386_v43  ;;  %v2326_v2 = vadd.f32 %v10241_v42, %v2290_v0  ;;  %v2328_v5 = vadd.f32 %v10241_v42, %v2292_v41  ;;  %v2329_v45 = vadd.f32 %v10241_v42, %v2293_v17  ;;  %v2332_v4 = vadd.f32 %v10241_v42, %v2296_v3 }
 0x2e5   :  { %2395 = vst.msk [vmem:[#allocation2 + $0x10] sm:$0xff] %vm2049_vm0, %v2387_v56  ;;  %v2333_v7 = vadd.f32 %v10241_v42, %v2297_v24  ;;  %v2334_v29 = vadd.f32 %v10241_v42, %v2298_v23  ;;  %v2336_v6 = vadd.f32 %v10241_v42, %v2300_v51  ;;  %v2337_v21 = vmax.f32 %v2305_v30, 0.0  ;;  %v2635_v30 = vld [vmem:[%s12069_s2 + $0xb8] sm:$0xff] }
 0x2e6   :  { %v2345_v62 = vmax.f32 %v2313_v1, 0.0  ;;  %v2353_v44 = vmax.f32 %v2321_v37, 0.0  ;;  %v2361_v14 = vmax.f32 %v2329_v45, 0.0  ;;  %v2340_v25 = vmax.f32 %v2308_v10, 0.0 }
 0x2e7   :  { %v2341_v0 = vmax.f32 %v2309_v49, 0.0  ;;  %v2342_v11 = vmax.f32 %v2310_v38, 0.0  ;;  %v2344_v41 = vmax.f32 %v2312_v18, 0.0  ;;  %v2348_v53 = vmax.f32 %v2316_v57, 0.0  ;;  %v2618_v38 = vld [vmem:[%s12069_s2 + $0x30] sm:$0xff] }
 0x2e8   :  { %v2369_v17 = vmax.f32 %v2337_v21, %v2345_v62  ;;  %v2377_v9 = vmax.f32 %v2353_v44, %v2361_v14  ;;  %v2349_v3 = vmax.f32 %v2317_v55, 0.0  ;;  %v2350_v20 = vmax.f32 %v2318_v47, 0.0 }
 0x2e9   :  { %v2352_v58 = vmax.f32 %v2320_v46, 0.0  ;;  %v2356_v13 = vmax.f32 %v2324_v61, 0.0  ;;  %v2357_v24 = vmax.f32 %v2325_v15, 0.0  ;;  %v2358_v40 = vmax.f32 %v2326_v2, 0.0  ;;  %v2636_v61 = vld [vmem:[%s12069_s2 + $0xc0] sm:$0xff] }
 0x2ea   :  { %v2385_v23 = vmax.f32 %v2369_v17, %v2377_v9  ;;  %v2360_v60 = vmax.f32 %v2328_v5, 0.0  ;;  %v2364_v42 = vmax.f32 %v2332_v4, 0.0  ;;  %v2365_v51 = vmax.f32 %v2333_v7, 0.0  ;;  %v2637_v4 = vld [vmem:[%s12069_s2 + $0xc8] sm:$0xff]  ;;  %v2620_v7 = vld [vmem:[%s12069_s2 + $0x40] sm:$0xff] }
 0x2eb   :  { %v2366_v10 = vmax.f32 %v2334_v29, 0.0  ;;  %v2368_v36 = vmax.f32 %v2336_v6, 0.0  ;;  %v2372_v12 = vmax.f32 %v2340_v25, %v2348_v53  ;;  %v2373_v49 = vmax.f32 %v2341_v0, %v2349_v3  ;;  %v2621_v29 = vld [vmem:[%s12069_s2 + $0x48] sm:$0xff] }
 0x2ec   :  { %v2414_v18 = vld [vmem:[#allocation2 + $0xa] sm:$0xff]  ;;  %2393 = vst.msk [vmem:[#allocation2] sm:$0xff] %vm2049_vm0, %v2385_v23  ;;  %v2374_v1 = vmax.f32 %v2342_v11, %v2350_v20  ;;  %v2376_v57 = vmax.f32 %v2344_v41, %v2352_v58  ;;  %v2380_v43 = vmax.f32 %v2356_v13, %v2364_v42  ;;  %v2381_v55 = vmax.f32 %v2357_v24, %v2365_v51  ;;  %v2639_v51 = vld [vmem:[%s12069_s2 + $0xd8] sm:$0xff] }
 0x2ed   :  { %2482 = vrot.lane.b32.xlu1 %v2414_v18, %s8847_s12  ;;  %v2382_v47 = vmax.f32 %v2358_v40, %v2366_v10  ;;  %v2384_v46 = vmax.f32 %v2360_v60, %v2368_v36  ;;  %v2733_v56 = vand.u32 4294901760, %v2634_v52  ;;  %v2736_v37 = vand.u32 4294901760, %v2635_v30  ;;  %v2638_v42 = vld [vmem:[%s12069_s2 + $0xd0] sm:$0xff]  ;;  %v2623_v36 = vld [vmem:[%s12069_s2 + $0x58] sm:$0xff] }
 0x2ee   :  { %v2388_v15 = vmax.f32 %v2372_v12, %v2380_v43  ;;  %v2389_v2 = vmax.f32 %v2373_v49, %v2381_v55  ;;  %v2685_v5 = vand.u32 4294901760, %v2618_v38  ;;  %v2688_v45 = vand.u32 4294901760, %v2619_v63  ;;  %v2622_v10 = vld [vmem:[%s12069_s2 + $0x50] sm:$0xff]  ;;  %v2640_v12 = vld [vmem:[%s12069_s2 + $0xe0] sm:$0xff] }
 0x2ef   :  { %v2390_v6 = vmax.f32 %v2374_v1, %v2382_v47  ;;  %v2392_v21 = vmax.f32 %v2376_v57, %v2384_v46  ;;  %v10329_v62 = vpack.c.bf16 %v2736_v37, %v2733_v56  ;;  %v10331_v44 = vsub.f32 %v2634_v52, %v2733_v56 }
 0x2f0   :  { %2396 = vst.msk [vmem:[#allocation2 + $0x18] sm:$0xff] %vm2049_vm0, %v2388_v15  ;;  %2397 = vst.msk [vmem:[#allocation2 + $0x20] sm:$0xff] %vm2049_vm0, %v2389_v2  ;;  %v10335_v14 = vsub.f32 %v2635_v30, %v2736_v37  ;;  %v10337_v25 = vpack.c.bf16 %v2688_v45, %v2685_v5  ;;  %v10339_v0 = vsub.f32 %v2618_v38, %v2685_v5  ;;  %v2739_v41 = vand.u32 4294901760, %v2636_v61  ;;  %v2408_v15 = vld [vmem:[#allocation2 + $0x9] sm:$0xff] }
 0x2f1   :  { %12475 = vst [vmem:[#allocation37_spill] sm:$0xff] %v10329_v62  ;;  %v10341_v11 = vsub.f32 %v2619_v63, %v2688_v45  ;;  %2398 = vst.msk [vmem:[#allocation2 + $0x28] sm:$0xff] %vm2049_vm0, %v2390_v6  ;;  %8091 = vmatprep.subr.bf16.mxu1 %v10329_v62  ;;  %v2742_v53 = vand.u32 4294901760, %v2637_v4  ;;  %v2691_v17 = vand.u32 4294901760, %v2620_v7  ;;  %v2694_v9 = vand.u32 4294901760, %v2621_v29  ;;  %v2432_v2 = vld [vmem:[#allocation2 + $0xf] sm:$0xff] }
 0x2f2   :  { %12476 = vst [vmem:[#allocation38_spill] sm:$0xff] %v10337_v25  ;;  %2400 = vst.msk [vmem:[#allocation2 + $0x38] sm:$0xff] %vm2049_vm0, %v2392_v21  ;;  %8093 = vmatpush3.bf16.msra.mxu1 %v10337_v25  ;;  %v10349_v13 = vsub.f32 %v2636_v61, %v2739_v41  ;;  %v2745_v52 = vand.u32 4294901760, %v2638_v42  ;;  %v2748_v30 = vand.u32 4294901760, %v2639_v51  ;;  %v2697_v63 = vand.u32 4294901760, %v2622_v10  ;;  %v2438_v61 = vld [vmem:[#allocation2 + $0xb] sm:$0xff] }
 0x2f3   :  { %v2431_v3 = vld [vmem:[#allocation2 + $0x7] sm:$0xff]  ;;  %v10347_v58 = vpack.c.bf16 %v2742_v53, %v2739_v41  ;;  %v10351_v24 = vsub.f32 %v2637_v4, %v2742_v53  ;;  %v10353_v40 = vpack.c.bf16 %v2694_v9, %v2691_v17  ;;  %v10357_v23 = vsub.f32 %v2620_v7, %v2691_v17  ;;  %v2642_v21 = vld [vmem:[%s12069_s2 + $0xf0] sm:$0xff]  ;;  %v2643_v41 = vld [vmem:[%s12069_s2 + $0xf8] sm:$0xff] }
 0x2f4   :  { %v2413_v20 = vld [vmem:[#allocation2 + $0x2] sm:$0xff]  ;;  %2528 = vrot.lane.b32.xlu0 %v2431_v3, %s8848_s20  ;;  %v10359_v60 = vsub.f32 %v2621_v29, %v2694_v9  ;;  %v2700_v18 = vand.u32 4294901760, %v2623_v36  ;;  %v2751_v1 = vand.u32 4294901760, %v2640_v12  ;;  %v10380_v57 = vpack.c.bf16 %v2748_v30, %v2745_v52  ;;  %v2626_v3 = vld [vmem:[%s12069_s2 + $0x70] sm:$0xff] }
 0x2f5   :  { %12477 = vst [vmem:[#allocation8_spill] sm:$0xff] %v10347_v58  ;;  %12478 = vst [vmem:[#allocation10_spill] sm:$0xff] %v10353_v40  ;;  %2480 = vrot.lane.b32.xlu1 %v2413_v20, %s8847_s12  ;;  %8095 = vmatprep.subr.bf16.mxu1 %v10347_v58  ;;  %v2407_v49 = vld [vmem:[#allocation2 + $0x1] sm:$0xff]  ;;  %v10382_v43 = vsub.f32 %v2638_v42, %v2745_v52  ;;  %v10384_v55 = vsub.f32 %v2639_v51, %v2748_v30  ;;  %v2757_v17 = vand.u32 4294901760, %v2642_v21  ;;  %v2627_v20 = vld [vmem:[%s12069_s2 + $0x78] sm:$0xff] }
 0x2f6   :  { %8097 = vmatpush3.bf16.msra.mxu1 %v10353_v40  ;;  %v2419_v38 = vld [vmem:[#allocation2 + $0x5] sm:$0xff]  ;;  %12479 = vst [vmem:[#allocation12_spill] sm:$0xff] %v10380_v57  ;;  %v10386_v47 = vpack.c.bf16 %v2700_v18, %v2697_v63  ;;  %v10388_v46 = vsub.f32 %v2622_v10, %v2697_v63  ;;  %v10390_v56 = vsub.f32 %v2623_v36, %v2700_v18  ;;  %v2760_v9 = vand.u32 4294901760, %v2643_v41 }
 0x2f7   :  { %v10392_v37 = vsub.f32 %v2640_v12, %v2751_v1  ;;  %8099 = vmatprep.subr.bf16.mxu1 %v10380_v57  ;;  %v2439_v5 = vld [vmem:[#allocation2 + $0x13] sm:$0xff]  ;;  %v2641_v45 = vld [vmem:[%s12069_s2 + $0xe8] sm:$0xff]  ;;  %v2624_v4 = vld [vmem:[%s12069_s2 + $0x60] sm:$0xff]  ;;  %v2709_v30 = vand.u32 4294901760, %v2626_v3 }
 0x2f8   :  { %2456 = vrot.lane.b32.xlu0 %v2407_v49, %s8848_s20  ;;  %12480 = vst [vmem:[#allocation14_spill] sm:$0xff] %v10386_v47  ;;  %v2754_v7 = vand.u32 4294901760, %v2641_v45  ;;  %v2625_v29 = vld [vmem:[%s12069_s2 + $0x68] sm:$0xff]  ;;  %v2703_v6 = vand.u32 4294901760, %v2624_v4  ;;  %v10431_v12 = vpack.c.bf16 %v2760_v9, %v2757_v17  ;;  %v10433_v49 = vsub.f32 %v2642_v21, %v2757_v17  ;;  %v2433_v63 = vld [vmem:[#allocation2 + $0x17] sm:$0xff] }
 0x2f9   :  { %2504 = vrot.lane.b32.xlu1 %v2419_v38, %s8849_s30  ;;  %v2706_v53 = vand.u32 4294901760, %v2625_v29  ;;  %v2415_v38 = vld [vmem:[#allocation2 + $0x12] sm:$0xff]  ;;  %v10436_v18 = vsub.f32 %v2643_v41, %v2760_v9  ;;  %v12178_v21 = vand.u32 4294901760, %v10167_v54  ;;  %v12177_v41 = vand.u32 4294901760, %v10169_v16  ;;  %v2441_v17 = vld [vmem:[#allocation2 + $0x23] sm:$0xff] }
 0x2fa   :  { %8101 = vmatpush3.bf16.msra.mxu1 %v10386_v47  ;;  %v10421_v42 = vpack.c.bf16 %v2754_v7, %v2751_v1  ;;  %v10423_v51 = vsub.f32 %v2641_v45, %v2754_v7  ;;  %v10425_v52 = vsub.f32 %v2624_v4, %v2703_v6  ;;  %12485 = vst [vmem:[#allocation20_spill] sm:$0xff] %v10431_v12  ;;  %12486 = vst [vmem:[#allocation23_spill] sm:$0xff] %v10433_v49  ;;  %v2416_v45 = vld [vmem:[#allocation2 + $0x1a] sm:$0xff]  ;;  %v2409_v4 = vld [vmem:[#allocation2 + $0x11] sm:$0xff] }
 0x2fb   :  { %v10427_v10 = vpack.c.bf16 %v2706_v53, %v2703_v6  ;;  %v10429_v36 = vsub.f32 %v2625_v29, %v2706_v53  ;;  %12487 = vst [vmem:[#allocation13_spill] sm:$0xff] %v10436_v18  ;;  %v2712_v1 = vand.u32 4294901760, %v2627_v20  ;;  %v2421_v7 = vld [vmem:[#allocation2 + $0x15] sm:$0xff]  ;;  %v2434_v53 = vld [vmem:[#allocation2 + $0x1f] sm:$0xff]  ;;  %v12179_v9 = vand.u32 4294901760, %v10182_v50 }
 0x2fc   :  { %2556 = vrot.lane.b32.xlu0 %v2438_v61, %s8849_s30  ;;  %12481 = vst [vmem:[#allocation9_spill] sm:$0xff] %v10421_v42  ;;  %12482 = vst [vmem:[#allocation15_spill] sm:$0xff] %v10425_v52  ;;  %8103 = vmatprep.subr.bf16.mxu1 %v10421_v42  ;;  %v10438_v61 = vsub.f32 %v2626_v3, %v2709_v30  ;;  %v2440_v29 = vld [vmem:[#allocation2 + $0x1b] sm:$0xff]  ;;  %v12180_v3 = vand.u32 4294901760, %v10184_v28  ;;  %v2423_v26 = vld [vmem:[#allocation2 + $0x25] sm:$0xff] }
 0x2fd   :  { %2458 = vrot.lane.b32.xlu1 %v2408_v15, %s8848_s20  ;;  %12483 = vst [vmem:[#allocation18_spill] sm:$0xff] %v10427_v10  ;;  %12484 = vst [vmem:[#allocation11_spill] sm:$0xff] %v10429_v36  ;;  %v10443_v15 = vpack.c.bf16 %v2712_v1, %v2709_v30  ;;  %v2410_v6 = vld [vmem:[#allocation2 + $0x19] sm:$0xff]  ;;  %v12183_v30 = vand.u32 4294901760, %v10194_v8  ;;  %v2412_v42 = vld [vmem:[#allocation2 + $0x29] sm:$0xff] }
 0x2fe   :  { %12488 = vst [vmem:[#allocation26_spill] sm:$0xff] %v10438_v61  ;;  %8105 = vmatpush3.bf16.msra.mxu1 %v10427_v10  ;;  %v12227_v40 = vand.u32 4294901760, %v10438_v61 }
 0x2ff   :  { %12489 = vst [vmem:[#allocation28_spill] sm:$0xff] %v10443_v15  ;;  %8107 = vmatprep.subr.bf16.mxu1 %v10431_v12 }
 0x300   :  { %2530 = vrot.lane.b32.xlu0 %v2432_v2, %s8848_s20  ;;  %v10445_v2 = vsub.f32 %v2627_v20, %v2712_v1  ;;  %v12182_v20 = vand.u32 4294901760, %v10192_v27  ;;  %v2857_v1 = vsub.f32 %v10182_v50, %v12179_v9 }
 0x301   :  { %2558 = vrot.lane.b32.xlu1 %v2439_v5, %s8849_s30  ;;  %v2420_v5 = vld [vmem:[#allocation2 + $0xd] sm:$0xff] }
 0x302   :  { %12490 = vst [vmem:[#allocation16_spill] sm:$0xff] %v10445_v2  ;;  %8109 = vmatpush3.bf16.msra.mxu1 %v10443_v15 }
 0x304   :  { %2484 = vrot.lane.b32.xlu0 %v2415_v38, %s8847_s12  ;;  %v2969_v38 = vsub.f32 %v10167_v54, %v12178_v21 }
 0x305   :  { %2532 = vrot.lane.b32.xlu1 %v2433_v63, %s8848_s20  ;;  %v2976_v63 = vsub.f32 %v10169_v16, %v12177_v41 }
 0x308   :  { %2506 = vrot.lane.b32.xlu0 %v2420_v5, %s8849_s30  ;;  %v2864_v5 = vsub.f32 %v10184_v28, %v12180_v3 }
 0x309   :  { %2486 = vrot.lane.b32.xlu1 %v2416_v45, %s8847_s12  ;;  %v2983_v45 = vsub.f32 %v10192_v27, %v12182_v20 }
 0x30a   :  { %v2865_v41 = vand.u32 4294901760, %v2864_v5  ;;  %v2422_v5 = vld [vmem:[#allocation2 + $0x1d] sm:$0xff] }
 0x30b   :  { %v2984_v21 = vand.u32 4294901760, %v2983_v45  ;;  %v2418_v45 = vld [vmem:[#allocation2 + $0x2a] sm:$0xff] }
 0x30c   :  { %2460 = vrot.lane.b32.xlu0 %v2409_v4, %s8848_s20  ;;  %v2990_v4 = vsub.f32 %v10194_v8, %v12183_v30  ;;  %v12185_v30 = vand.u32 4294901760, %v10198_v33 }
 0x30d   :  { %2508 = vrot.lane.b32.xlu1 %v2421_v7, %s8849_s30  ;;  %v2970_v7 = vand.u32 4294901760, %v2969_v38  ;;  %v12184_v38 = vand.u32 4294901760, %v10202_v39 }
 0x30e   :  { %v2991_v9 = vand.u32 4294901760, %v2990_v4  ;;  %v12194_v4 = vand.u32 4294901760, %v10211_v48 }
 0x310   :  { %2560 = vrot.lane.b32.xlu0 %v2440_v29, %s8849_s30  ;;  %v2977_v29 = vand.u32 4294901760, %v2976_v63  ;;  %v10485_v20 = vpack.c.bf16 %v2991_v9, %v2984_v21  ;;  %v12186_v63 = vand.u32 4294901760, %v10206_v35  ;;  %v12199_v21 = vand.u32 4294901760, %v10335_v14 }
 0x311   :  { %2462 = vrot.lane.b32.xlu1 %v2410_v6, %s8848_s20  ;;  %v2417_v6 = vld [vmem:[#allocation2 + $0x22] sm:$0xff]  ;;  %v2871_v9 = vsub.f32 %v10198_v33, %v12185_v30 }
 0x312   :  { %v8110_v3 = vpack.c.bf16 %v2977_v29, %v2970_v7  ;;  %v2997_v7 = vsub.f32 %v10206_v35, %v12186_v63  ;;  %v3018_v63 = vsub.f32 %v10335_v14, %v12199_v21  ;;  %v2442_v21 = vld [vmem:[#allocation2 + $0x2b] sm:$0xff] }
 0x314   :  { %2534 = vrot.lane.b32.xlu0 %v2434_v53, %s8848_s20  ;;  %v2435_v53 = vld [vmem:[#allocation2 + $0x27] sm:$0xff]  ;;  %8111 = vmatprep.subr.bf16.mxu1 %v8110_v3  ;;  %v2878_v3 = vsub.f32 %v10202_v39, %v12184_v38  ;;  %v2998_v30 = vand.u32 4294901760, %v2997_v7 }
 0x315   :  { %2562 = vrot.lane.b32.xlu1 %v2441_v17, %s8849_s30  ;;  %v2858_v17 = vand.u32 4294901760, %v2857_v1  ;;  %v12187_v1 = vand.u32 4294901760, %v10209_v31 }
 0x316   :  { %v2879_v38 = vand.u32 4294901760, %v2878_v3 }
 0x317   :  { %v10483_v22 = vpack.c.bf16 %v2865_v41, %v2858_v17  ;;  %v12198_v41 = vand.u32 4294901760, %v10331_v44  ;;  %v3004_v29 = vsub.f32 %v10209_v31, %v12187_v1  ;;  %v2411_v1 = vld [vmem:[#allocation2 + $0x21] sm:$0xff] }
 0x318   :  { %2488 = vrot.lane.b32.xlu0 %v2417_v6, %s8847_s12  ;;  %v12197_v6 = vand.u32 4294901760, %v10216_v34 }
 0x319   :  { %2536 = vrot.lane.b32.xlu1 %v2435_v53, %s8848_s20  ;;  %v2885_v53 = vsub.f32 %v10211_v48, %v12194_v4  ;;  %v3005_v15 = vand.u32 4294901760, %v3004_v29  ;;  %v12205_v29 = vand.u32 4294901760, %v10339_v0 }
 0x31a   :  { %v2892_v17 = vsub.f32 %v10216_v34, %v12197_v6 }
 0x31b   :  { %v2886_v12 = vand.u32 4294901760, %v2885_v53  ;;  %v12202_v53 = vand.u32 4294901760, %v10341_v11 }
 0x31c   :  { %2510 = vrot.lane.b32.xlu0 %v2422_v5, %s8849_s30  ;;  %v3011_v5 = vsub.f32 %v10331_v44, %v12198_v41  ;;  %v2893_v4 = vand.u32 4294901760, %v2892_v17  ;;  %v3019_v41 = vand.u32 4294901760, %v3018_v63  ;;  %v12204_v17 = vand.u32 4294901760, %v10349_v13 }
 0x31d   :  { %2490 = vrot.lane.b32.xlu1 %v2418_v45, %s8847_s12  ;;  %v2872_v45 = vand.u32 4294901760, %v2871_v9  ;;  %v10525_v9 = vpack.c.bf16 %v3005_v15, %v2998_v30  ;;  %v12206_v30 = vand.u32 4294901760, %v10357_v23  ;;  %v12215_v63 = vand.u32 4294901760, %v10384_v55 }
 0x31e   :  { %v3012_v10 = vand.u32 4294901760, %v3011_v5  ;;  %v10527_v3 = vpack.c.bf16 %v2893_v4, %v2886_v12  ;;  %v3025_v12 = vsub.f32 %v10349_v13, %v12204_v17  ;;  %v2436_v4 = vld [vmem:[#allocation2 + $0x2f] sm:$0xff] }
 0x31f   :  { %v10523_v6 = vpack.c.bf16 %v2879_v38, %v2872_v45  ;;  %v12210_v38 = vand.u32 4294901760, %v10382_v43 }
 0x320   :  { %2464 = vrot.lane.b32.xlu0 %v2411_v1, %s8848_s20  ;;  %v10529_v7 = vpack.c.bf16 %v3019_v41, %v3012_v10  ;;  %v12203_v1 = vand.u32 4294901760, %v10351_v24  ;;  %v2906_v10 = vsub.f32 %v10341_v11, %v12202_v53  ;;  %v2443_v41 = vld [vmem:[#allocation2 + $0x33] sm:$0xff]  ;;  %v3026_v45 = vand.u32 4294901760, %v3025_v12 }
 0x321   :  { %2512 = vrot.lane.b32.xlu1 %v2423_v26, %s8849_s30  ;;  %v2899_v26 = vsub.f32 %v10339_v0, %v12205_v29  ;;  %v3039_v29 = vsub.f32 %v10382_v43, %v12210_v38  ;;  %v2437_v38 = vld [vmem:[#allocation2 + $0x32] sm:$0xff] }
 0x322   :  { %v3032_v15 = vsub.f32 %v10351_v24, %v12203_v1  ;;  %v2907_v5 = vand.u32 4294901760, %v2906_v10  ;;  %v2913_v1 = vsub.f32 %v10357_v23, %v12206_v30 }
 0x323   :  { %v3040_v47 = vand.u32 4294901760, %v3039_v29  ;;  %v12222_v29 = vand.u32 4294901760, %v10425_v52 }
 0x324   :  { %2564 = vrot.lane.b32.xlu0 %v2442_v21, %s8849_s30  ;;  %v2900_v21 = vand.u32 4294901760, %v2899_v26  ;;  %v3033_v53 = vand.u32 4294901760, %v3032_v15  ;;  %v12213_v26 = vand.u32 4294901760, %v10388_v46  ;;  %v3046_v15 = vsub.f32 %v10384_v55, %v12215_v63 }
 0x325   :  { %2466 = vrot.lane.b32.xlu1 %v2412_v42, %s8848_s20  ;;  %v12209_v42 = vand.u32 4294901760, %v10359_v60 }
 0x326   :  { %v10565_v10 = vpack.c.bf16 %v2907_v5, %v2900_v21  ;;  %v10567_v12 = vpack.c.bf16 %v3033_v53, %v3026_v45  ;;  %v3047_v57 = vand.u32 4294901760, %v3046_v15  ;;  %v12216_v21 = vand.u32 4294901760, %v10392_v37 }
 0x327   :  { %v2920_v17 = vsub.f32 %v10359_v60, %v12209_v42  ;;  %v2927_v42 = vsub.f32 %v10388_v46, %v12213_v26  ;;  %v12219_v5 = vand.u32 4294901760, %v10423_v51 }
 0x328   :  { %2538 = vrot.lane.b32.xlu0 %v2436_v4, %s8848_s20  ;;  %v12214_v4 = vand.u32 4294901760, %v10390_v56  ;;  %v10586_v26 = vpack.c.bf16 %v3047_v57, %v3040_v47  ;;  %v12226_v57 = vand.u32 4294901760, %v10433_v49  ;;  %v12228_v47 = vand.u32 4294901760, %v10436_v18 }
 0x329   :  { %2566 = vrot.lane.b32.xlu1 %v2443_v41, %s8849_s30  ;;  %v2914_v41 = vand.u32 4294901760, %v2913_v1  ;;  %v2921_v30 = vand.u32 4294901760, %v2920_v17  ;;  %v2928_v17 = vand.u32 4294901760, %v2927_v42  ;;  %v12223_v1 = vand.u32 4294901760, %v10429_v36 }
 0x32a   :  { %v2934_v53 = vsub.f32 %v10390_v56, %v12214_v4  ;;  %v3053_v4 = vsub.f32 %v10392_v37, %v12216_v21  ;;  %v3060_v63 = vsub.f32 %v10423_v51, %v12219_v5 }
 0x32b   :  { %v10582_v45 = vpack.c.bf16 %v2921_v30, %v2914_v41  ;;  %v2941_v30 = vsub.f32 %v10425_v52, %v12222_v29  ;;  %v2948_v42 = vsub.f32 %v10429_v36, %v12223_v1  ;;  %v3067_v29 = vsub.f32 %v10433_v49, %v12226_v57 }
 0x32c   :  { %2547 = vrot.lane.b32.xlu0 %v2437_v38, %s8847_s12  ;;  %v2935_v15 = vand.u32 4294901760, %v2934_v53  ;;  %v2424_v38 = vld [vmem:[#allocation2 + $0x2d] sm:$0xff]  ;;  %v3054_v53 = vand.u32 4294901760, %v3053_v4  ;;  %v3061_v21 = vand.u32 4294901760, %v3060_v63  ;;  %v3074_v1 = vsub.f32 %v10436_v18, %v12228_v47 }
 0x32d   :  { %v2942_v5 = vand.u32 4294901760, %v2941_v30  ;;  %v2949_v58 = vand.u32 4294901760, %v2948_v42  ;;  %v2955_v63 = vsub.f32 %v10438_v61, %v12227_v40  ;;  %v12229_v4 = vand.u32 4294901760, %v10445_v2 }
 0x32e   :  { %v10602_v41 = vpack.c.bf16 %v2935_v15, %v2928_v17  ;;  %v10612_v25 = vpack.c.bf16 %v3061_v21, %v3054_v53  ;;  %v3068_v30 = vand.u32 4294901760, %v3067_v29  ;;  %v3075_v42 = vand.u32 4294901760, %v3074_v1  ;;  %v2401_v53 = vld [vmem:[#allocation2] sm:$0xff] }
 0x32f   :  { %v10620_v15 = vpack.c.bf16 %v2949_v58, %v2942_v5  ;;  %v2956_v57 = vand.u32 4294901760, %v2955_v63  ;;  %v2962_v21 = vsub.f32 %v10445_v2, %v12229_v4  ;;  %v2425_v58 = vld [vmem:[#allocation2 + $0x6] sm:$0xff] }
 0x330   :  { %2514 = vrot.lane.b32.xlu0 %v2424_v38, %s8849_s30  ;;  %v10629_v40 = vpack.c.bf16 %v3075_v42, %v3068_v30 }
 0x331   :  { %v2963_v47 = vand.u32 4294901760, %v2962_v21 }
 0x333   :  { %v10633_v5 = vpack.c.bf16 %v2963_v47, %v2956_v57 }
 0x35f   :  { %v2483_v1 = vpop.permute.xlu1 %2482 }
 0x366   :  { %v2529_v42 = vpop.permute.xlu0 %2528 }
 0x367   :  { %v2481_v29 = vpop.permute.xlu1 %2480  ;;  %v2594_v38 = vsel %vm2049_vm0, %v2425_v58, %v2529_v42 }
 0x368   :  { %v2600_v30 = vsel %vm2580_vm2, %v2594_v38, %v2483_v1 }
 0x36a   :  { %v2457_v57 = vpop.permute.xlu0 %2456 }
 0x36b   :  { %v2505_v47 = vpop.permute.xlu1 %2504  ;;  %v2574_v21 = vsel %vm2049_vm0, %v2401_v53, %v2457_v57  ;;  %v2426_v57 = vld [vmem:[#allocation2 + $0xe] sm:$0xff] }
 0x36c   :  { %v2581_v63 = vsel %vm2580_vm2, %v2574_v21, %v2481_v29 }
 0x36d   :  { %v2588_v4 = vsel %vm2587_vm1, %v2581_v63, %v2505_v47 }
 0x36e   :  { %v10663_v17 = vand.u32 4294901760, %v2588_v4  ;;  %v2557_v62 = vpop.permute.xlu0 %2556 }
 0x36f   :  { %v2459_v32 = vpop.permute.xlu1 %2458  ;;  %v2606_v59 = vsel %vm2587_vm1, %v2600_v30, %v2557_v62  ;;  %v2402_v62 = vld [vmem:[#allocation2 + $0x8] sm:$0xff] }
 0x370   :  { %v10668_v19 = vsub.f32 %v2588_v4, %v10663_v17  ;;  %v10670_v61 = vand.u32 4294901760, %v2606_v59  ;;  %v2575_v2 = vsel %vm2049_vm0, %v2402_v62, %v2459_v32 }
 0x371   :  { %v2582_v52 = vsel %vm2580_vm2, %v2575_v2, %v2483_v1  ;;  %v2403_v2 = vld [vmem:[#allocation2 + $0x10] sm:$0xff] }
 0x372   :  { %12491 = vst [vmem:[#allocation31_spill] sm:$0xff] %v10668_v19  ;;  %v12246_v53 = vand.u32 4294901760, %v10668_v19  ;;  %v10674_v58 = vsub.f32 %v2606_v59, %v10670_v61  ;;  %v2531_v29 = vpop.permute.xlu0 %2530 }
 0x373   :  { %v2559_v63 = vpop.permute.xlu1 %2558  ;;  %v2595_v4 = vsel %vm2049_vm0, %v2426_v57, %v2531_v29 }
 0x374   :  { %v2771_v38 = vsub.f32 %v10668_v19, %v12246_v53  ;;  %v12253_v42 = vand.u32 4294901760, %v10674_v58 }
 0x376   :  { %v2485_v30 = vpop.permute.xlu0 %2484  ;;  %v2765_v21 = vsub.f32 %v10674_v58, %v12253_v42  ;;  %v2772_v59 = vand.u32 4294901760, %v2771_v38 }
 0x377   :  { %v2533_v47 = vpop.permute.xlu1 %2532  ;;  %v2601_v49 = vsel %vm2580_vm2, %v2595_v4, %v2485_v30 }
 0x378   :  { %v2607_v18 = vsel %vm2587_vm1, %v2601_v49, %v2559_v63  ;;  %v2766_v53 = vand.u32 4294901760, %v2765_v21  ;;  %v2427_v63 = vld [vmem:[#allocation2 + $0x16] sm:$0xff] }
 0x379   :  { %v10687_v19 = vand.u32 4294901760, %v2607_v18 }
 0x37a   :  { %2767 = vmatprep.mubr.f32.mxu1 %v2766_v53  ;;  %v2507_v29 = vpop.permute.xlu0 %2506 }
 0x37b   :  { %v2487_v57 = vpop.permute.xlu1 %2486  ;;  %v10691_v36 = vsub.f32 %v2607_v18, %v10687_v19  ;;  %v2589_v42 = vsel %vm2587_vm1, %v2582_v52, %v2507_v29  ;;  %2773 = vmatmul.mubr.f32.vlgmr.msra.gmra.mrb[16].mxu1 %v2772_v59 }
 0x37c   :  { %v10694_v38 = vand.u32 4294901760, %v2589_v42  ;;  %8113 = vmatpush3.bf16.msra.mxu1 %v10483_v22 }
 0x37d   :  { %v12260_v32 = vand.u32 4294901760, %v10691_v36  ;;  %8115 = vmatprep.subr.bf16.mxu1 %v10485_v20  ;;  %v2596_v20 = vsel %vm2049_vm0, %v2427_v63, %v2533_v47 }
 0x37e   :  { %v10700_v49 = vsub.f32 %v2589_v42, %v10694_v38  ;;  %v2461_v1 = vpop.permute.xlu0 %2460  ;;  %v2602_v21 = vsel %vm2580_vm2, %v2596_v20, %v2487_v57 }
 0x37f   :  { %v2509_v53 = vpop.permute.xlu1 %2508  ;;  %v2576_v18 = vsel %vm2049_vm0, %v2403_v2, %v2461_v1  ;;  %v2780_v52 = vsub.f32 %v10691_v36, %v12260_v32 }
 0x380   :  { %v2583_v62 = vsel %vm2580_vm2, %v2576_v18, %v2485_v30  ;;  %v12255_v22 = vand.u32 4294901760, %v10700_v49  ;;  %8117 = vmatpush3.bf16.msra.mxu1 %v10523_v6 }
 0x381   :  { %v2590_v42 = vsel %vm2587_vm1, %v2583_v62, %v2509_v53  ;;  %v2781_v4 = vand.u32 4294901760, %v2780_v52  ;;  %8119 = vmatprep.subr.bf16.mxu1 %v10525_v9 }
 0x382   :  { %v10713_v59 = vand.u32 4294901760, %v2590_v42  ;;  %v2561_v29 = vpop.permute.xlu0 %2560  ;;  %v2786_v30 = vsub.f32 %v10700_v49, %v12255_v22 }
 0x383   :  { %v2463_v2 = vpop.permute.xlu1 %2462  ;;  %v2608_v1 = vsel %vm2587_vm1, %v2602_v21, %v2561_v29  ;;  %2782 = vmatprep.mubr.f32.mxu1 %v2781_v4 }
 0x384   :  { %12492 = vst [vmem:[#allocation32_spill] sm:$0xff] %v10713_v59  ;;  %v10720_v6 = vsub.f32 %v2590_v42, %v10713_v59  ;;  %v10722_v47 = vand.u32 4294901760, %v2608_v1  ;;  %v2787_v53 = vand.u32 4294901760, %v2786_v30  ;;  %8121 = vmatpush3.bf16.msra.mxu1 %v10527_v3  ;;  %v2428_v42 = vld [vmem:[#allocation2 + $0x1e] sm:$0xff] }
 0x385   :  { %8123 = vmatprep.subr.bf16.mxu1 %v10529_v7  ;;  %v2404_v3 = vld [vmem:[#allocation2 + $0x18] sm:$0xff] }
 0x386   :  { %v10727_v9 = vsub.f32 %v2608_v1, %v10722_v47  ;;  %v2535_v18 = vpop.permute.xlu0 %2534  ;;  %2788 = vmatmul.mubr.f32.gmra.mrb[18].mxu1 %v2787_v53  ;;  %v12254_v63 = vand.u32 4294901760, %v10720_v6  ;;  %v2577_v30 = vsel %vm2049_vm0, %v2404_v3, %v2463_v2 }
 0x387   :  { %v2563_v52 = vpop.permute.xlu1 %2562  ;;  %v2597_v7 = vsel %vm2049_vm0, %v2428_v42, %v2535_v18  ;;  %v2584_v18 = vsel %vm2580_vm2, %v2577_v30, %v2487_v57  ;;  %v2405_v57 = vld [vmem:[#allocation2 + $0x20] sm:$0xff] }
 0x388   :  { %v12256_v62 = vand.u32 4294901760, %v10727_v9  ;;  %v2801_v20 = vsub.f32 %v10720_v6, %v12254_v63  ;;  %8125 = vmatpush3.bf16.msra.mxu1 %v10565_v10 }
 0x389   :  { %8127 = vmatprep.subr.bf16.mxu1 %v10567_v12 }
 0x38a   :  { %v2489_v4 = vpop.permute.xlu0 %2488  ;;  %v2795_v29 = vsub.f32 %v10727_v9, %v12256_v62  ;;  %v2802_v53 = vand.u32 4294901760, %v2801_v20 }
 0x38b   :  { %v2537_v21 = vpop.permute.xlu1 %2536  ;;  %v2603_v1 = vsel %vm2580_vm2, %v2597_v7, %v2489_v4 }
 0x38c   :  { %v2609_v63 = vsel %vm2587_vm1, %v2603_v1, %v2563_v52  ;;  %v2796_v10 = vand.u32 4294901760, %v2795_v29  ;;  %8129 = vmatpush3.bf16.msra.mxu1 %v10582_v45  ;;  %v2429_v29 = vld [vmem:[#allocation2 + $0x26] sm:$0xff] }
 0x38d   :  { %v10744_v12 = vand.u32 4294901760, %v2609_v63  ;;  %8131 = vmatprep.subr.bf16.mxu1 %v10586_v26 }
 0x38e   :  { %v2511_v42 = vpop.permute.xlu0 %2510  ;;  %2797 = vmatprep.mubr.f32.mxu1 %v2796_v10 }
 0x38f   :  { %12493 = vst [vmem:[#allocation19_spill] sm:$0xff] %v10744_v12  ;;  %v2491_v22 = vpop.permute.xlu1 %2490  ;;  %v10749_v62 = vsub.f32 %v2609_v63, %v10744_v12  ;;  %v2591_v2 = vsel %vm2587_vm1, %v2584_v18, %v2511_v42  ;;  %2803 = vmatmul.mubr.f32.gmra.mrb[20].mxu1 %v2802_v53 }
 0x390   :  { %v10752_v20 = vand.u32 4294901760, %v2591_v2  ;;  %8133 = vmatpush3.bf16.msra.mxu1 %v10602_v41 }
 0x391   :  { %v12258_v45 = vand.u32 4294901760, %v10749_v62  ;;  %8135 = vmatprep.subr.bf16.mxu1 %v10612_v25  ;;  %v2598_v25 = vsel %vm2049_vm0, %v2429_v29, %v2537_v21 }
 0x392   :  { %12494 = vst [vmem:[#allocation33_spill] sm:$0xff] %v10752_v20  ;;  %v10758_v26 = vsub.f32 %v2591_v2, %v10752_v20  ;;  %v2465_v52 = vpop.permute.xlu0 %2464  ;;  %v2604_v10 = vsel %vm2580_vm2, %v2598_v25, %v2491_v22  ;;  %v2430_v25 = vld [vmem:[#allocation2 + $0x2e] sm:$0xff] }
 0x393   :  { %v2513_v3 = vpop.permute.xlu1 %2512  ;;  %v2578_v63 = vsel %vm2049_vm0, %v2405_v57, %v2465_v52  ;;  %v2810_v7 = vsub.f32 %v10749_v62, %v12258_v45 }
 0x394   :  { %v2585_v30 = vsel %vm2580_vm2, %v2578_v63, %v2489_v4  ;;  %v12257_v41 = vand.u32 4294901760, %v10758_v26  ;;  %8137 = vmatpush3.bf16.msra.mxu1 %v10620_v15 }
 0x395   :  { %v2592_v1 = vsel %vm2587_vm1, %v2585_v30, %v2513_v3  ;;  %v2811_v53 = vand.u32 4294901760, %v2810_v7  ;;  %8139 = vmatprep.subr.bf16.mxu1 %v10629_v40  ;;  %v12497_v40 = vpack.c.bf16 %v10169_v16, %v10167_v54 }
 0x396   :  { %v10771_v18 = vand.u32 4294901760, %v2592_v1  ;;  %v2565_v42 = vpop.permute.xlu0 %2564  ;;  %v2816_v4 = vsub.f32 %v10758_v26, %v12257_v41 }
 0x397   :  { %v2610_v2 = vsel %vm2587_vm1, %v2604_v10, %v2565_v42  ;;  %2812 = vmatprep.mubr.f32.mxu1 %v2811_v53  ;;  %v2467_v15 = vpop.permute.xlu1 %2466 }
 0x398   :  { %12495 = vst [vmem:[#allocation34_spill] sm:$0xff] %v10771_v18  ;;  %v10778_v21 = vsub.f32 %v2592_v1, %v10771_v18  ;;  %v10780_v57 = vand.u32 4294901760, %v2610_v2  ;;  %v2817_v52 = vand.u32 4294901760, %v2816_v4  ;;  %8141 = vmatpush3.bf16.msra.mxu1 %v10633_v5  ;;  %v2406_v5 = vld [vmem:[#allocation2 + $0x28] sm:$0xff] }
 0x399   :  { %8143 = vmatprep.subr.bf16.mxu1 %v12497_v40  ;;  %v2579_v4 = vsel %vm2049_vm0, %v2406_v5, %v2467_v15 }
 0x39a   :  { %12496 = vst [vmem:[#allocation35_spill] sm:$0xff] %v10780_v57  ;;  %v10787_v3 = vsub.f32 %v2610_v2, %v10780_v57  ;;  %v2539_v63 = vpop.permute.xlu0 %2538  ;;  %2818 = vmatmul.mubr.f32.gmra.mrb[22].mxu1 %v2817_v52  ;;  %v12259_v7 = vand.u32 4294901760, %v10778_v21 }
 0x39b   :  { %v2567_v1 = vpop.permute.xlu1 %2566  ;;  %v2599_v53 = vsel %vm2049_vm0, %v2430_v25, %v2539_v63 }
 0x39c   :  { %v12261_v29 = vand.u32 4294901760, %v10787_v3  ;;  %v2831_v30 = vsub.f32 %v10778_v21, %v12259_v7  ;;  %v2586_v7 = vsel %vm2580_vm2, %v2579_v4, %v2491_v22  ;;  %v12504_v4 = vpack.c.bf16 %v10216_v34, %v10211_v48 }
 0x39e   :  { %v2548_v10 = vpop.permute.xlu0 %2547  ;;  %v2825_v42 = vsub.f32 %v10787_v3, %v12261_v29  ;;  %v2832_v52 = vand.u32 4294901760, %v2831_v30 }
 0x39f   :  { %v2605_v2 = vsel %vm2580_vm2, %v2599_v53, %v2548_v10  ;;  %v12501_v53 = vpack.c.bf16 %v10194_v8, %v10192_v27  ;;  %v12502_v10 = vpack.c.bf16 %v10202_v39, %v10198_v33 }
 0x3a0   :  { %v2611_v40 = vsel %vm2587_vm1, %v2605_v2, %v2567_v1  ;;  %v2826_v41 = vand.u32 4294901760, %v2825_v42  ;;  %v12503_v42 = vpack.c.bf16 %v10209_v31, %v10206_v35  ;;  %v12505_v2 = vpack.c.bf16 %v10335_v14, %v10331_v44 }
 0x3a1   :  { %v10801_v45 = vand.u32 4294901760, %v2611_v40 }
 0x3a2   :  { %v2515_v32 = vpop.permute.xlu0 %2514  ;;  %2827 = vmatprep.mubr.f32.mxu1 %v2826_v41 }
 0x3a3   :  { %12498 = vst [vmem:[#allocation36_spill] sm:$0xff] %v10801_v45  ;;  %v10805_v63 = vsub.f32 %v2611_v40, %v10801_v45  ;;  %v2593_v25 = vsel %vm2587_vm1, %v2586_v7, %v2515_v32  ;;  %2833 = vmatmul.mubr.f32.gmra.mrb[24].mxu1 %v2832_v52  ;;  %v12500_v7 = vpack.c.bf16 %v10184_v28, %v10182_v50 }
 0x3a4   :  { %v10808_v29 = vand.u32 4294901760, %v2593_v25  ;;  %v12506_v52 = vpack.c.bf16 %v10341_v11, %v10339_v0  ;;  %v12507_v40 = vpack.c.bf16 %v10351_v24, %v10349_v13 }
 0x3a5   :  { %v12263_v15 = vand.u32 4294901760, %v10805_v63 }
 0x3a6   :  { %12499 = vst [vmem:[#allocation39_spill] sm:$0xff] %v10808_v29  ;;  %v10812_v30 = vsub.f32 %v2593_v25, %v10808_v29  ;;  %v12508_v25 = vpack.c.bf16 %v10359_v60, %v10357_v23 }
 0x3a7   :  { %v2840_v1 = vsub.f32 %v10805_v63, %v12263_v15  ;;  %v12529_v15 = vld [vmem:[#allocation38_spill] sm:$0xff] }
 0x3a8   :  { %v12262_v22 = vand.u32 4294901760, %v10812_v30 }
 0x3a9   :  { %v2841_v41 = vand.u32 4294901760, %v2840_v1  ;;  %v12509_v1 = vpack.c.bf16 %v10384_v55, %v10382_v43 }
 0x3aa   :  { %v2846_v5 = vsub.f32 %v10812_v30, %v12262_v22  ;;  %v12528_v22 = vld [vmem:[#allocation37_spill] sm:$0xff] }
 0x3ab   :  { %2842 = vmatprep.mubr.f32.mxu1 %v2841_v41  ;;  %v12510_v41 = vpack.c.bf16 %v10390_v56, %v10388_v46 }
 0x3ac   :  { %v2847_v32 = vand.u32 4294901760, %v2846_v5  ;;  %v12511_v5 = vpack.c.bf16 %v10423_v51, %v10392_v37 }
 0x3ae   :  { %2848 = vmatmul.mubr.f32.gmra.mrb[26].mxu1 %v2847_v32  ;;  %v12512_v32 = vld [vmem:[#allocation11_spill] sm:$0xff] }
 0x3af   :  { %3078 = vmatprep.mubr.f32.mxu1 %v10670_v61 }
 0x3b2   :  { %3080 = vmatmul.mubr.f32.vlgmr.msra.gmra.mrb[28].mxu1 %v10663_v17 }
 0x3b3   :  { %8145 = vmatpush3.bf16.msra.mxu1 %v12500_v7  ;;  %3085 = vmatprep.mubr.f32.mxu1 %v10687_v19  ;;  %v12513_v7 = vld [vmem:[#allocation15_spill] sm:$0xff] }
 0x3b4   :  { %8147 = vmatprep.subr.bf16.mxu1 %v12501_v53  ;;  %v12514_v53 = vpack.c.bf16 %v12512_v32, %v12513_v7 }
 0x3b6   :  { %3087 = vmatmul.mubr.f32.gmra.mrb[30].mxu1 %v10694_v38 }
 0x3b7   :  { %8149 = vmatpush3.bf16.msra.mxu1 %v12502_v10  ;;  %3092 = vmatprep.mubr.f32.mxu1 %v10722_v47  ;;  %v12515_v10 = vld [vmem:[#allocation13_spill] sm:$0xff] }
 0x3b8   :  { %8151 = vmatprep.subr.bf16.mxu1 %v12503_v42  ;;  %v12516_v42 = vld [vmem:[#allocation23_spill] sm:$0xff] }
 0x3ba   :  { %3094 = vmatmul.mubr.f32.gmra.mrb[32].mxu1 %v10713_v59  ;;  %v12540_v59 = vld [vmem:[#allocation28_spill] sm:$0xff] }
 0x3bb   :  { %8153 = vmatpush3.bf16.msra.mxu1 %v12504_v4  ;;  %3099 = vmatprep.mubr.f32.mxu1 %v10744_v12  ;;  %v12517_v4 = vpack.c.bf16 %v12515_v10, %v12516_v42  ;;  %v12539_v12 = vand.u32 4294901760, %v10169_v16  ;;  %v12547_v16 = vand.u32 4294901760, %v10198_v33  ;;  %v12554_v33 = vand.u32 4294901760, %v10216_v34 }
 0x3bc   :  { %8155 = vmatprep.subr.bf16.mxu1 %v12505_v2  ;;  %v12518_v2 = vld [vmem:[#allocation16_spill] sm:$0xff]  ;;  %v12561_v34 = vand.u32 4294901760, %v10349_v13  ;;  %v12568_v13 = vand.u32 4294901760, %v10384_v55  ;;  %v12575_v55 = vand.u32 4294901760, %v10812_v30 }
 0x3be   :  { %3101 = vmatmul.mubr.f32.gmra.mrb[34].mxu1 %v10752_v20  ;;  %v12534_v20 = vand.u32 4294901760, %v10674_v58 }
 0x3bf   :  { %8157 = vmatpush3.bf16.msra.mxu1 %v12506_v52  ;;  %3106 = vmatprep.mubr.f32.mxu1 %v10780_v57  ;;  %v12519_v52 = vld [vmem:[#allocation26_spill] sm:$0xff] }
 0x3c0   :  { %8159 = vmatprep.subr.bf16.mxu1 %v12507_v40  ;;  %v12520_v40 = vpack.c.bf16 %v12518_v2, %v12519_v52  ;;  %v12533_v57 = vld [vmem:[#allocation14_spill] sm:$0xff] }
 0x3c2   :  { %3108 = vmatmul.mubr.f32.gmra.mrb[36].mxu1 %v10771_v18  ;;  %v12532_v18 = vld [vmem:[#allocation12_spill] sm:$0xff] }
 0x3c3   :  { %8161 = vmatpush3.bf16.msra.mxu1 %v12508_v25  ;;  %3113 = vmatprep.mubr.f32.mxu1 %v10801_v45  ;;  %v12521_v25 = vld [vmem:[#allocation17_spill] sm:$0xff]  ;;  %v12531_v45 = vld [vmem:[#allocation10_spill] sm:$0xff] }
 0x3c4   :  { %8163 = vmatprep.subr.bf16.mxu1 %v12509_v1  ;;  %v12522_v1 = vld [vmem:[#allocation31_spill] sm:$0xff] }
 0x3c6   :  { %3115 = vmatmul.mubr.f32.gmra.mrb[38].mxu1 %v10808_v29  ;;  %v12530_v29 = vld [vmem:[#allocation8_spill] sm:$0xff] }
 0x3c7   :  { %8165 = vmatpush3.bf16.msra.mxu1 %v12510_v41  ;;  %3250 = vmatprep.mubr.f32.mxu1 %v10674_v58  ;;  %v12523_v41 = vld [vmem:[#allocation22_spill] sm:$0xff]  ;;  %v12543_v58 = vand.u32 4294901760, %v10192_v27  ;;  %v12550_v27 = vand.u32 4294901760, %v10209_v31  ;;  %v12557_v31 = vand.u32 4294901760, %v10720_v6 }
 0x3c8   :  { %8167 = vmatprep.subr.bf16.mxu1 %v12511_v5  ;;  %v12524_v5 = vld [vmem:[#allocation25_spill] sm:$0xff] }
 0x3cb   :  { %8169 = vmatpush3.bf16.msra.mxu1 %v12514_v53  ;;  %v12525_v53 = vld [vmem:[#allocation27_spill] sm:$0xff] }
 0x3cc   :  { %8171 = vmatprep.subr.bf16.mxu1 %v12517_v4  ;;  %v12526_v4 = vld [vmem:[#allocation29_spill] sm:$0xff] }
 0x3cf   :  { %8173 = vmatpush3.bf16.msra.mxu1 %v12520_v40  ;;  %v12527_v40 = vld [vmem:[#allocation30_spill] sm:$0xff] }
 0x3d0   :  { %8175 = vmatprep.subr.bf16.mxu1 %v12521_v25 }
 0x3d2   :  { %3253 = vmatmul.mubr.f32.vlgmr.msra.gmra.mrb[40].mxu1 %v12522_v1 }
 0x3d3   :  { %3259 = vmatprep.mubr.f32.mxu1 %v10691_v36  ;;  %8177 = vmatpush3.bf16.msra.mxu1 %v12523_v41 }
 0x3d4   :  { %8179 = vmatprep.subr.bf16.mxu1 %v12524_v5 }
 0x3d6   :  { %3262 = vmatmul.mubr.f32.gmra.mrb[42].mxu1 %v10700_v49 }
 0x3d7   :  { %3268 = vmatprep.mubr.f32.mxu1 %v10727_v9  ;;  %8181 = vmatpush3.bf16.msra.mxu1 %v12525_v53 }
 0x3d8   :  { %8183 = vmatprep.subr.bf16.mxu1 %v12526_v4 }
 0x3da   :  { %3271 = vmatmul.mubr.f32.gmra.mrb[44].mxu1 %v10720_v6  ;;  %v12564_v6 = vand.u32 4294901760, %v10787_v3 }
 0x3db   :  { %3277 = vmatprep.mubr.f32.mxu1 %v10749_v62  ;;  %8185 = vmatpush3.bf16.msra.mxu1 %v12527_v40  ;;  %v12538_v40 = vand.u32 4294901760, %v10167_v54  ;;  %v12546_v54 = vand.u32 4294901760, %v10691_v36  ;;  %v12553_v36 = vand.u32 4294901760, %v10211_v48  ;;  %v12560_v48 = vand.u32 4294901760, %v10341_v11 }
 0x3dc   :  { %8187 = vmatprep.subr.bf16.mxu1 %v12528_v22  ;;  %v12535_v22 = vld [vmem:[#allocation9_spill] sm:$0xff]  ;;  %v12567_v11 = vand.u32 4294901760, %v10382_v43  ;;  %v12574_v43 = vand.u32 4294901760, %v10423_v51  ;;  %v12580_v51 = vand.u32 4294901760, %v12519_v52 }
 0x3dd   :  { %v12587_v52 = vld [vmem:[#allocation33_spill] sm:$0xff] }
 0x3de   :  { %3280 = vmatmul.mubr.f32.gmra.mrb[46].mxu1 %v10758_v26 }
 0x3df   :  { %3286 = vmatprep.mubr.f32.mxu1 %v10787_v3  ;;  %8189 = vmatpush3.bf16.msra.mxu1 %v12529_v15  ;;  %v12536_v15 = vld [vmem:[#allocation18_spill] sm:$0xff]  ;;  %v12571_v3 = vand.u32 4294901760, %v10388_v46 }
 0x3e0   :  { %8191 = vmatprep.subr.bf16.mxu1 %v12530_v29  ;;  %v12537_v29 = vld [vmem:[#allocation20_spill] sm:$0xff] }
 0x3e2   :  { %3289 = vmatmul.mubr.f32.gmra.mrb[48].mxu1 %v10778_v21 }
 0x3e3   :  { %3295 = vmatprep.mubr.f32.mxu1 %v10805_v63  ;;  %8193 = vmatpush3.bf16.msra.mxu1 %v12531_v45  ;;  %v8206_v45 = vpack.c.bf16 %v12539_v12, %v12538_v40  ;;  %v8226_v40 = vpack.c.bf16 %v12568_v13, %v12567_v11  ;;  %v2446_v11 = vld [vmem:[#allocation2 + $0x1c] sm:$0xff] }
 0x3e4   :  { %8195 = vmatprep.subr.bf16.mxu1 %v12532_v18  ;;  %v12541_v18 = vand.u32 4294901760, %v10182_v50  ;;  %v12548_v50 = vand.u32 4294901760, %v10202_v39  ;;  %v12555_v39 = vand.u32 4294901760, %v10331_v44  ;;  %v12562_v44 = vand.u32 4294901760, %v10351_v24 }
 0x3e5   :  { %v12569_v24 = vand.u32 4294901760, %v10778_v21  ;;  %v12576_v21 = vand.u32 4294901760, %v12513_v7  ;;  %v12583_v7 = vld [vmem:[#allocation32_spill] sm:$0xff] }
 0x3e6   :  { %3298 = vmatmul.mubr.f32.gmra.mrb[50].mxu1 %v10812_v30  ;;  %v8212_v12 = vpack.c.bf16 %v12548_v50, %v12547_v16  ;;  %v12581_v30 = vand.u32 4294901760, %v12518_v2  ;;  %v12586_v2 = vld [vmem:[#allocation37_spill] sm:$0xff]  ;;  %v12590_v50 = vld [vmem:[#allocation8_spill] sm:$0xff] }
 0x3e7   :  { %8197 = vmatpush3.bf16.msra.mxu1 %v12533_v57  ;;  %3402 = vmatprep.mubr.f32.mxu1 %v12534_v20  ;;  %v12542_v57 = vand.u32 4294901760, %v10184_v28  ;;  %v12544_v20 = vand.u32 4294901760, %v10194_v8  ;;  %v12549_v28 = vand.u32 4294901760, %v10206_v35  ;;  %v12551_v8 = vand.u32 4294901760, %v10700_v49 }
 0x3e8   :  { %8199 = vmatprep.subr.bf16.mxu1 %v12535_v22  ;;  %v12556_v35 = vand.u32 4294901760, %v10335_v14  ;;  %v12558_v49 = vand.u32 4294901760, %v10749_v62  ;;  %v12563_v14 = vand.u32 4294901760, %v10758_v26  ;;  %v12565_v62 = vand.u32 4294901760, %v10357_v23 }
 0x3e9   :  { %v8208_v4 = vpack.c.bf16 %v12542_v57, %v12541_v18  ;;  %v12552_v18 = vand.u32 4294901760, %v10727_v9  ;;  %v8216_v57 = vpack.c.bf16 %v12554_v33, %v12553_v36  ;;  %v12559_v9 = vand.u32 4294901760, %v10339_v0 }
 0x3ea   :  { %v12566_v0 = vand.u32 4294901760, %v10359_v60  ;;  %v12570_v26 = vand.u32 4294901760, %v10805_v63  ;;  %v12572_v23 = vand.u32 4294901760, %v10390_v56  ;;  %v12573_v60 = vand.u32 4294901760, %v10392_v37 }
 0x3eb   :  { %8201 = vmatpush3.bf16.msra.mxu1 %v12536_v15  ;;  %v8210_v15 = vpack.c.bf16 %v12544_v20, %v12543_v58  ;;  %v12577_v63 = vand.u32 4294901760, %v12512_v32  ;;  %v12578_v56 = vand.u32 4294901760, %v12516_v42  ;;  %v8236_v16 = vpack.c.bf16 %v12581_v30, %v12580_v51  ;;  %v12582_v32 = vld [vmem:[#allocation29_spill] sm:$0xff]  ;;  %v12585_v42 = vld [vmem:[#allocation30_spill] sm:$0xff] }
 0x3ec   :  { %8203 = vmatprep.subr.bf16.mxu1 %v12537_v29  ;;  %v12545_v29 = vand.u32 4294901760, %v12522_v1  ;;  %v8222_v1 = vpack.c.bf16 %v12562_v44, %v12561_v34  ;;  %v8228_v58 = vpack.c.bf16 %v12572_v23, %v12571_v3  ;;  %v8230_v20 = vpack.c.bf16 %v12574_v43, %v12573_v60  ;;  %v2449_v43 = vld [vmem:[#allocation2 + $0x34] sm:$0xff] }
 0x3ed   :  { %v8232_v46 = vpack.c.bf16 %v12577_v63, %v12576_v21 }
 0x3ef   :  { %8205 = vmatpush3.bf16.msra.mxu1 %v12540_v59 }
 0x3f0   :  { %8207 = vmatprep.subr.bf16.mxu1 %v8206_v45  ;;  %v8214_v45 = vpack.c.bf16 %v12550_v27, %v12549_v28 }
 0x3f2   :  { %3406 = vmatmul.mubr.f32.vlgmr.msra.gmra.mrb[52].mxu1 %v12545_v29  ;;  %v8218_v29 = vpack.c.bf16 %v12556_v35, %v12555_v39  ;;  %v12596_v39 = vld [vmem:[#allocation14_spill] sm:$0xff] }
 0x3f3   :  { %3413 = vmatprep.mubr.f32.mxu1 %v12546_v54  ;;  %8209 = vmatpush3.bf16.msra.mxu1 %v8208_v4  ;;  %v8224_v4 = vpack.c.bf16 %v12566_v0, %v12565_v62  ;;  %v12579_v54 = vand.u32 4294901760, %v12515_v10  ;;  %v12584_v10 = vld [vmem:[#allocation19_spill] sm:$0xff] }
 0x3f4   :  { %8211 = vmatprep.subr.bf16.mxu1 %v8210_v15  ;;  %v8220_v15 = vpack.c.bf16 %v12560_v48, %v12559_v9  ;;  %v12597_v9 = vld [vmem:[#allocation18_spill] sm:$0xff] }
 0x3f5   :  { %v8234_v37 = vpack.c.bf16 %v12579_v54, %v12578_v56 }
 0x3f6   :  { %3417 = vmatmul.mubr.f32.gmra.mrb[54].mxu1 %v12551_v8  ;;  %v12593_v8 = vld [vmem:[#allocation10_spill] sm:$0xff] }
 0x3f7   :  { %3424 = vmatprep.mubr.f32.mxu1 %v12552_v18  ;;  %8213 = vmatpush3.bf16.msra.mxu1 %v8212_v12  ;;  %v12591_v12 = vld [vmem:[#allocation34_spill] sm:$0xff]  ;;  %v12594_v18 = vld [vmem:[#allocation12_spill] sm:$0xff] }
 0x3f8   :  { %8215 = vmatprep.subr.bf16.mxu1 %v8214_v45  ;;  %v12592_v45 = vld [vmem:[#allocation36_spill] sm:$0xff] }
 0x3fa   :  { %3428 = vmatmul.mubr.f32.gmra.mrb[56].mxu1 %v12557_v31  ;;  %v2646_v31 = vld [vmem:[%s12069_s2 + $0x110] sm:$0xff] }
 0x3fb   :  { %3435 = vmatprep.mubr.f32.mxu1 %v12558_v49  ;;  %8217 = vmatpush3.bf16.msra.mxu1 %v8216_v57  ;;  %v12595_v57 = vld [vmem:[#allocation39_spill] sm:$0xff]  ;;  %v2647_v49 = vld [vmem:[%s12069_s2 + $0x118] sm:$0xff] }
 0x3fc   :  { %8219 = vmatprep.subr.bf16.mxu1 %v8218_v29 }
 0x3fe   :  { %3439 = vmatmul.mubr.f32.gmra.mrb[58].mxu1 %v12563_v14 }
 0x3ff   :  { %3446 = vmatprep.mubr.f32.mxu1 %v12564_v6  ;;  %8221 = vmatpush3.bf16.msra.mxu1 %v8220_v15  ;;  %v12598_v15 = vld [vmem:[#allocation20_spill] sm:$0xff] }
 0x400   :  { %8223 = vmatprep.subr.bf16.mxu1 %v8222_v1  ;;  %v2444_v1 = vld [vmem:[#allocation2 + $0xc] sm:$0xff] }
 0x401   :  { %v2649_v0 = vsel %vm2049_vm0, %v2444_v1, 0  ;;  %v4508_v1 = vld [vmem:[%s12073_s6] sm:$0xff] }
 0x402   :  { %3450 = vmatmul.mubr.f32.gmra.mrb[60].mxu1 %v12569_v24  ;;  %v11057_v13 = vand.u32 4294901760, %v2649_v0  ;;  %v2447_v24 = vld [vmem:[#allocation2 + $0x24] sm:$0xff] }
 0x403   :  { %3457 = vmatprep.mubr.f32.mxu1 %v12570_v26  ;;  %8225 = vmatpush3.bf16.msra.mxu1 %v8224_v4  ;;  %v2445_v4 = vld [vmem:[#allocation2 + $0x14] sm:$0xff]  ;;  %v2658_v3 = vsel %vm2049_vm0, %v2447_v24, 0  ;;  %v4513_v24 = vld [vmem:[%s12073_s6 + $0x28] sm:$0xff] }
 0x404   :  { %8227 = vmatprep.subr.bf16.mxu1 %v8226_v40  ;;  %v2652_v40 = vsel %vm2049_vm0, %v2445_v4, 0  ;;  %v11072_v60 = vsub.f32 %v2649_v0, %v11057_v13  ;;  %v4510_v0 = vld [vmem:[%s12073_s6 + $0x10] sm:$0xff] }
 0x405   :  { %v11064_v26 = vand.u32 4294901760, %v2652_v40 }
 0x406   :  { %3461 = vmatmul.mubr.f32.gmra.mrb[62].mxu1 %v12575_v55  ;;  %v3879_v56 = vand.u32 4294901760, %v11072_v60 }
 0x407   :  { %8229 = vmatpush3.bf16.msra.mxu1 %v8228_v58  ;;  %3627 = vmatprep.mubr.f32.mxu1 %v10670_v61  ;;  %v11082_v55 = vsub.f32 %v2652_v40, %v11064_v26 }
 0x408   :  { %8231 = vmatprep.subr.bf16.mxu1 %v8230_v20  ;;  %v11079_v20 = vand.u32 4294901760, %v2658_v3 }
 0x409   :  { %v3889_v30 = vand.u32 4294901760, %v11082_v55 }
 0x40b   :  { %8233 = vmatpush3.bf16.msra.mxu1 %v8232_v46  ;;  %v2664_v46 = vsel %vm2049_vm0, %v2449_v43, 0 }
 0x40c   :  { %8235 = vmatprep.subr.bf16.mxu1 %v8234_v37  ;;  %v11095_v51 = vand.u32 4294901760, %v2664_v46 }
 0x40f   :  { %8237 = vmatpush3.bf16.msra.mxu1 %v8236_v16  ;;  %v11099_v16 = vsub.f32 %v2658_v3, %v11079_v20 }
 0x410   :  { %8239 = vmatprep.subr.bf16.mxu1 %v12521_v25  ;;  %v12588_v25 = vld [vmem:[#allocation35_spill] sm:$0xff] }
 0x412   :  { %3629 = vmatmul.mubr.f32.vlgmr.msra.gmra.mrb[64].mxu1 %v10663_v17 }
 0x413   :  { %3634 = vmatprep.mubr.f32.mxu1 %v10687_v19  ;;  %8241 = vmatpush3.bf16.msra.mxu1 %v12523_v41  ;;  %v12589_v41 = vld [vmem:[#allocation38_spill] sm:$0xff] }
 0x414   :  { %8243 = vmatprep.subr.bf16.mxu1 %v12524_v5  ;;  %v2644_v5 = vld [vmem:[%s12069_s2 + $0x100] sm:$0xff] }
 0x415   :  { %v3809_v28 = vand.u32 4294901760, %v2644_v5 }
 0x416   :  { %3636 = vmatmul.mubr.f32.gmra.mrb[66].mxu1 %v10694_v38 }
 0x417   :  { %3641 = vmatprep.mubr.f32.mxu1 %v10722_v47  ;;  %8245 = vmatpush3.bf16.msra.mxu1 %v12525_v53  ;;  %v2645_v53 = vld [vmem:[%s12069_s2 + $0x108] sm:$0xff]  ;;  %v11022_v36 = vsub.f32 %v2644_v5, %v3809_v28 }
 0x418   :  { %8247 = vmatprep.subr.bf16.mxu1 %v12582_v32  ;;  %v3812_v27 = vand.u32 4294901760, %v2645_v53 }
 0x419   :  { %v3940_v35 = vand.u32 4294901760, %v11022_v36 }
 0x41a   :  { %3643 = vmatmul.mubr.f32.gmra.mrb[68].mxu1 %v12583_v7  ;;  %v11024_v33 = vsub.f32 %v2645_v53, %v3812_v27  ;;  %v11039_v48 = vpack.c.bf16 %v3812_v27, %v3809_v28 }
 0x41b   :  { %3648 = vmatprep.mubr.f32.mxu1 %v12584_v10  ;;  %8249 = vmatpush3.bf16.msra.mxu1 %v12585_v42  ;;  %v3941_v34 = vsub.f32 %v11022_v36, %v3940_v35 }
 0x41c   :  { %8251 = vmatprep.subr.bf16.mxu1 %v12586_v2  ;;  %v3947_v29 = vand.u32 4294901760, %v11024_v33 }
 0x41d   :  { %v3942_v6 = vand.u32 4294901760, %v3941_v34 }
 0x41e   :  { %3650 = vmatmul.mubr.f32.gmra.mrb[70].mxu1 %v12587_v52  ;;  %v3948_v44 = vsub.f32 %v11024_v33, %v3947_v29 }
 0x41f   :  { %3655 = vmatprep.mubr.f32.mxu1 %v12588_v25  ;;  %8253 = vmatpush3.bf16.msra.mxu1 %v12589_v41  ;;  %v3909_v41 = vand.u32 4294901760, %v11099_v16 }
 0x420   :  { %8255 = vmatprep.subr.bf16.mxu1 %v12590_v50  ;;  %v3949_v62 = vand.u32 4294901760, %v3948_v44 }
 0x422   :  { %3657 = vmatmul.mubr.f32.gmra.mrb[72].mxu1 %v12591_v12 }
 0x423   :  { %3662 = vmatprep.mubr.f32.mxu1 %v12592_v45  ;;  %8257 = vmatpush3.bf16.msra.mxu1 %v12593_v8 }
 0x424   :  { %8259 = vmatprep.subr.bf16.mxu1 %v12594_v18 }
 0x426   :  { %3664 = vmatmul.mubr.f32.gmra.mrb[74].mxu1 %v12595_v57 }
 0x427   :  { %8261 = vmatpush3.bf16.msra.mxu1 %v12596_v39  ;;  %3766 = vmatprep.mubr.f32.mxu1 %v10670_v61  ;;  %v3815_v61 = vand.u32 4294901760, %v2646_v31 }
 0x428   :  { %8263 = vmatprep.subr.bf16.mxu1 %v12535_v22  ;;  %v3818_v22 = vand.u32 4294901760, %v2647_v49 }
 0x429   :  { %v11067_v23 = vsub.f32 %v2646_v31, %v3815_v61 }
 0x42a   :  { %v11050_v14 = vpack.c.bf16 %v3818_v22, %v3815_v61  ;;  %v11069_v58 = vsub.f32 %v2647_v49, %v3818_v22 }
 0x42b   :  { %8265 = vmatpush3.bf16.msra.mxu1 %v12597_v9  ;;  %v3954_v21 = vand.u32 4294901760, %v11067_v23  ;;  %v8286_v9 = vpack.c.bf16 %v11024_v33, %v11022_v36 }
 0x42c   :  { %8267 = vmatprep.subr.bf16.mxu1 %v12598_v15  ;;  %v3961_v63 = vand.u32 4294901760, %v11069_v58 }
 0x42d   :  { %v3955_v32 = vsub.f32 %v11067_v23, %v3954_v21 }
 0x42e   :  { %v8306_v36 = vpack.c.bf16 %v3961_v63, %v3954_v21 }
 0x42f   :  { %8269 = vmatpush3.bf16.msra.mxu1 %v12540_v59  ;;  %v8278_v59 = vpack.c.bf16 %v3949_v62, %v3942_v6  ;;  %v3956_v5 = vand.u32 4294901760, %v3955_v32  ;;  %v8850_v6 = vmov 0   ;;  %v8290_v62 = vpack.c.bf16 %v11069_v58, %v11067_v23 }
 0x430   :  { %8271 = vmatprep.subr.bf16.mxu1 %v11039_v48  ;;  %8813 = vset.pattern.permute.xlu1 %v8850_v6 }
 0x431   :  { %4516 = vperm.xlu1 %8813, %v4508_v1   ;;  %8814 = vset.pattern.permute.xlu0 %v8850_v6 }
 0x432   :  { %3768 = vmatmul.mubr.f32.vlgmr.msra.gmra.mrb[76].mxu1 %v10663_v17  ;;  %v2655_v17 = vsel %vm2049_vm0, %v2446_v11, 0  ;;  %v4511_v11 = vld [vmem:[%s12073_s6 + $0x18] sm:$0xff] }
 0x433   :  { %3773 = vmatprep.mubr.f32.mxu1 %v10687_v19  ;;  %8273 = vmatpush3.bf16.msra.mxu1 %v11039_v48  ;;  %v2448_v19 = vld [vmem:[#allocation2 + $0x2c] sm:$0xff] }
 0x434   :  { %8275 = vmatprep.subr.bf16.mxu1 %v11050_v14 }
 0x435   :  { %4526 = vperm.xlu1 %8813, %v4510_v0  }
 0x436   :  { %3775 = vmatmul.mubr.f32.gmra.mrb[78].mxu1 %v10694_v38  ;;  %v11074_v38 = vand.u32 4294901760, %v2655_v17 }
 0x437   :  { %3780 = vmatprep.mubr.f32.mxu1 %v10722_v47  ;;  %8277 = vmatpush3.bf16.msra.mxu1 %v11050_v14  ;;  %v2661_v47 = vsel %vm2049_vm0, %v2448_v19, 0  ;;  %v4512_v19 = vld [vmem:[%s12073_s6 + $0x20] sm:$0xff] }
 0x438   :  { %8279 = vmatprep.subr.bf16.mxu1 %v8278_v59  ;;  %v11089_v54 = vsub.f32 %v2655_v17, %v11074_v38  ;;  %v11091_v37 = vand.u32 4294901760, %v2661_v47  ;;  %v4509_v17 = vld [vmem:[%s12073_s6 + $0x8] sm:$0xff] }
 0x439   :  { %4531 = vperm.xlu1 %8813, %v4511_v11   ;;  %4521 = vperm.xlu0 %8814, %v4509_v17  }
 0x43a   :  { %3782 = vmatmul.mubr.f32.gmra.mrb[80].mxu1 %v12583_v7  ;;  %v3962_v7 = vsub.f32 %v11069_v58, %v3961_v63  ;;  %v3899_v42 = vand.u32 4294901760, %v11089_v54  ;;  %v11112_v2 = vsub.f32 %v2661_v47, %v11091_v37 }
 0x43b   :  { %3787 = vmatprep.mubr.f32.mxu1 %v12584_v10  ;;  %v3880_v10 = vsub.f32 %v11072_v60, %v3879_v56 }
 0x43c   :  { %v3963_v53 = vand.u32 4294901760, %v3962_v7  ;;  %v3900_v28 = vsub.f32 %v11089_v54, %v3899_v42 }
 0x43d   :  { %v3881_v50 = vand.u32 4294901760, %v3880_v10  ;;  %4541 = vperm.xlu1 %8813, %v4513_v24   ;;  %4536 = vperm.xlu0 %8814, %v4512_v19  }
 0x43e   :  { %3789 = vmatmul.mubr.f32.gmra.mrb[82].mxu1 %v12587_v52  ;;  %v11117_v52 = vsub.f32 %v2664_v46, %v11095_v51  ;;  %v8282_v8 = vpack.c.bf16 %v3963_v53, %v3956_v5  ;;  %v3901_v39 = vand.u32 4294901760, %v3900_v28  ;;  %v8302_v46 = vpack.c.bf16 %v3947_v29, %v3940_v35 }
 0x43f   :  { %3794 = vmatprep.mubr.f32.mxu1 %v12588_v25  ;;  %v3890_v25 = vsub.f32 %v11082_v55, %v3889_v30 }
 0x440   :  { %v3929_v18 = vand.u32 4294901760, %v11117_v52 }
 0x441   :  { %v3891_v27 = vand.u32 4294901760, %v3890_v25 }
 0x442   :  { %3796 = vmatmul.mubr.f32.gmra.mrb[84].mxu1 %v12591_v12  ;;  %v3919_v12 = vand.u32 4294901760, %v11112_v2 }
 0x443   :  { %3801 = vmatprep.mubr.f32.mxu1 %v12592_v45  ;;  %v3910_v45 = vsub.f32 %v11099_v16, %v3909_v41 }
 0x444   :  { %v3920_v31 = vsub.f32 %v11112_v2, %v3919_v12 }
 0x445   :  { %v3911_v49 = vand.u32 4294901760, %v3910_v45 }
 0x446   :  { %3803 = vmatmul.mubr.f32.gmra.mrb[86].mxu1 %v12595_v57  ;;  %v3930_v57 = vsub.f32 %v11117_v52, %v3929_v18  ;;  %v3921_v15 = vand.u32 4294901760, %v3920_v31 }
 0x447   :  { %7678 = vmatprep.mubr.f32.mxu1 %v3881_v50 }
 0x448   :  { %v3931_v44 = vand.u32 4294901760, %v3930_v57 }
 0x44a   :  { %7679 = vmatmul.mubr.f32.vlgmr.msra.gmra.mrb[88].mxu1 %v3891_v27 }
 0x44b   :  { %7681 = vmatprep.mubr.f32.mxu1 %v3901_v39  ;;  %8281 = vmatpush3.bf16.msra.mxu1 %v8278_v59 }
 0x44c   :  { %8283 = vmatprep.subr.bf16.mxu1 %v8282_v8 }
 0x44e   :  { %7682 = vmatmul.mubr.f32.gmra.mrb[90].mxu1 %v3911_v49  ;;  %v6598_v61 = vpop.f32.mrb[16].mxu1 }
 0x44f   :  { %7684 = vmatprep.mubr.f32.mxu1 %v3921_v15  ;;  %v6599_v22 = vpop.f32.mrb[17].mxu1  ;;  %8285 = vmatpush3.bf16.msra.mxu1 %v8282_v8 }
 0x450   :  { %v11140_v34 = vadd.f32 %v6599_v22, %v6598_v61  ;;  %8287 = vmatprep.subr.bf16.mxu1 %v8286_v9 }
 0x452   :  { %7685 = vmatmul.mubr.f32.gmra.mrb[92].mxu1 %v3931_v44 }
 0x453   :  { %7695 = vmatprep.mubr.f32.mxu1 %v11057_v13 }
 0x456   :  { %7696 = vmatmul.mubr.f32.vlgmr.msra.gmra.mrb[88].mxu1 %v11064_v26 }
 0x457   :  { %7698 = vmatprep.mubr.f32.mxu1 %v11074_v38  ;;  %8289 = vmatpush3.bf16.msra.mxu1 %v8286_v9 }
 0x458   :  { %8291 = vmatprep.subr.bf16.mxu1 %v8290_v62 }
 0x459   :  { %v6601_v4 = vpop.f32.mrb[18].mxu1 }
 0x45a   :  { %7699 = vmatmul.mubr.f32.gmra.mrb[90].mxu1 %v11079_v20  ;;  %v6602_v59 = vpop.f32.mrb[19].mxu1 }
 0x45b   :  { %v11157_v40 = vadd.f32 %v6602_v59, %v6601_v4  ;;  %7701 = vmatprep.mubr.f32.mxu1 %v11091_v37  ;;  %8293 = vmatpush3.bf16.msra.mxu1 %v8290_v62 }
 0x45c   :  { %8295 = vmatprep.subr.bf16.mxu1 %v11039_v48 }
 0x45e   :  { %7702 = vmatmul.mubr.f32.gmra.mrb[92].mxu1 %v11095_v51 }
 0x45f   :  { %7712 = vmatprep.mubr.f32.mxu1 %v11072_v60 }
 0x462   :  { %7713 = vmatmul.mubr.f32.vlgmr.msra.gmra.mrb[88].mxu1 %v11082_v55  ;;  %v6604_v3 = vpop.f32.mrb[20].mxu1 }
 0x463   :  { %7715 = vmatprep.mubr.f32.mxu1 %v11089_v54  ;;  %8297 = vmatpush3.bf16.msra.mxu1 %v11039_v48  ;;  %v6605_v43 = vpop.f32.mrb[21].mxu1 }
 0x464   :  { %v6606_v47 = vadd.f32 %v6605_v43, %v6604_v3  ;;  %8299 = vmatprep.subr.bf16.mxu1 %v11050_v14 }
 0x466   :  { %7716 = vmatmul.mubr.f32.gmra.mrb[90].mxu1 %v11099_v16 }
 0x467   :  { %7718 = vmatprep.mubr.f32.mxu1 %v11112_v2  ;;  %8301 = vmatpush3.bf16.msra.mxu1 %v11050_v14 }
 0x468   :  { %8303 = vmatprep.subr.bf16.mxu1 %v8302_v46 }
 0x46a   :  { %7719 = vmatmul.mubr.f32.gmra.mrb[92].mxu1 %v11117_v52 }
 0x46b   :  { %7729 = vmatprep.mubr.f32.mxu1 %v3879_v56 }
 0x46d   :  { %v6607_v32 = vpop.f32.mrb[22].mxu1 }
 0x46e   :  { %7730 = vmatmul.mubr.f32.vlgmr.msra.gmra.mrb[88].mxu1 %v3889_v30  ;;  %v6608_v33 = vpop.f32.mrb[23].mxu1 }
 0x46f   :  { %v6609_v35 = vadd.f32 %v6608_v33, %v6607_v32  ;;  %7732 = vmatprep.mubr.f32.mxu1 %v3899_v42  ;;  %8305 = vmatpush3.bf16.msra.mxu1 %v8302_v46 }
 0x470   :  { %8307 = vmatprep.subr.bf16.mxu1 %v8306_v36 }
 0x472   :  { %7733 = vmatmul.mubr.f32.gmra.mrb[90].mxu1 %v3909_v41 }
 0x473   :  { %7735 = vmatprep.mubr.f32.mxu1 %v3919_v12  ;;  %8309 = vmatpush3.bf16.msra.mxu1 %v8306_v36 }
 0x474   :  { %8311 = vmatprep.subr.bf16.mxu1 %v11039_v48 }
 0x476   :  { %7736 = vmatmul.mubr.f32.gmra.mrb[92].mxu1 %v3929_v18  ;;  %v6610_v29 = vpop.f32.mrb[24].mxu1 }
 0x477   :  { %7746 = vmatprep.mubr.f32.mxu1 %v11057_v13  ;;  %v6611_v23 = vpop.f32.mrb[25].mxu1 }
 0x478   :  { %v6612_v58 = vadd.f32 %v6611_v23, %v6610_v29 }
 0x47a   :  { %7747 = vmatmul.mubr.f32.vlgmr.msra.gmra.mrb[88].mxu1 %v11064_v26 }
 0x47b   :  { %7749 = vmatprep.mubr.f32.mxu1 %v11074_v38  ;;  %8313 = vmatpush3.bf16.msra.mxu1 %v11039_v48 }
 0x47c   :  { %8315 = vmatprep.subr.bf16.mxu1 %v11050_v14 }
 0x47e   :  { %7750 = vmatmul.mubr.f32.gmra.mrb[90].mxu1 %v11079_v20 }
 0x47f   :  { %7752 = vmatprep.mubr.f32.mxu1 %v11091_v37  ;;  %8317 = vmatpush3.bf16.msra.mxu1 %v11050_v14 }
 0x481   :  { %v6613_v60 = vpop.f32.mrb[26].mxu1 }
 0x482   :  { %7753 = vmatmul.mubr.f32.gmra.mrb[92].mxu1 %v11095_v51  ;;  %v6614_v55 = vpop.f32.mrb[27].mxu1 }
 0x483   :  { %v6615_v21 = vadd.f32 %v6614_v55, %v6613_v60  ;;  %7763 = vmatprep.mubr.f32.mxu1 %v11057_v13 }
 0x485   :  { %v6648_v63 = vpop.f32.mrb[28].mxu1 }
 0x486   :  { %7764 = vmatmul.mubr.f32.vlgmr.msra.gmra.mrb[88].mxu1 %v11064_v26  ;;  %v6649_v56 = vpop.f32.mrb[29].mxu1 }
 0x487   :  { %v6650_v48 = vadd.f32 %v6649_v56, %v6648_v63  ;;  %7766 = vmatprep.mubr.f32.mxu1 %v11074_v38 }
 0x489   :  { %v3082_v54 = vadd.f32 %v6650_v48, %v11140_v34  ;;  %v6651_v30 = vpop.f32.mrb[30].mxu1 }
 0x48a   :  { %7767 = vmatmul.mubr.f32.gmra.mrb[90].mxu1 %v11079_v20  ;;  %v6652_v14 = vpop.f32.mrb[31].mxu1 }
 0x48b   :  { %v6653_v16 = vadd.f32 %v6652_v14, %v6651_v30  ;;  %7769 = vmatprep.mubr.f32.mxu1 %v11091_v37 }
 0x48d   :  { %v3089_v7 = vadd.f32 %v6653_v16, %v11157_v40  ;;  %v6654_v10 = vpop.f32.mrb[32].mxu1 }
 0x48e   :  { %7770 = vmatmul.mubr.f32.gmra.mrb[92].mxu1 %v11095_v51  ;;  %v6655_v13 = vpop.f32.mrb[33].mxu1 }
 0x48f   :  { %v6656_v26 = vadd.f32 %v6655_v13, %v6654_v10 }
 0x491   :  { %v3096_v42 = vadd.f32 %v6656_v26, %v6606_v47  ;;  %v6657_v2 = vpop.f32.mrb[34].mxu1 }
 0x492   :  { %v6658_v52 = vpop.f32.mrb[35].mxu1 }
 0x493   :  { %v6659_v38 = vadd.f32 %v6658_v52, %v6657_v2 }
 0x495   :  { %v3103_v25 = vadd.f32 %v6659_v38, %v6609_v35  ;;  %v6660_v41 = vpop.f32.mrb[36].mxu1 }
 0x496   :  { %v6661_v5 = vpop.f32.mrb[37].mxu1 }
 0x497   :  { %v6662_v53 = vadd.f32 %v6661_v5, %v6660_v41 }
 0x499   :  { %v3110_v20 = vadd.f32 %v6662_v53, %v6612_v58  ;;  %v6663_v50 = vpop.f32.mrb[38].mxu1 }
 0x49a   :  { %v6664_v28 = vpop.f32.mrb[39].mxu1 }
 0x49b   :  { %v6665_v12 = vadd.f32 %v6664_v28, %v6663_v50 }
 0x49d   :  { %v3117_v37 = vadd.f32 %v6665_v12, %v6615_v21 }
 0x4a5   :  { %v6698_v27 = vpop.f32.mrb[40].mxu1 }
 0x4a6   :  { %v6699_v45 = vpop.f32.mrb[41].mxu1 }
 0x4a7   :  { %v6700_v8 = vadd.f32 %v6699_v45, %v6698_v27 }
 0x4a9   :  { %v3255_v18 = vadd.f32 %v6700_v8, %v3082_v54  ;;  %v6701_v51 = vpop.f32.mrb[42].mxu1 }
 0x4aa   :  { %v6702_v39 = vpop.f32.mrb[43].mxu1 }
 0x4ab   :  { %v6703_v31 = vadd.f32 %v6702_v39, %v6701_v51 }
 0x4ad   :  { %v3264_v49 = vadd.f32 %v6703_v31, %v3089_v7  ;;  %v6704_v57 = vpop.f32.mrb[44].mxu1 }
 0x4ae   :  { %v6705_v9 = vpop.f32.mrb[45].mxu1 }
 0x4af   :  { %v6706_v15 = vadd.f32 %v6705_v9, %v6704_v57 }
 0x4b1   :  { %v3273_v61 = vadd.f32 %v6706_v15, %v3096_v42  ;;  %v6707_v22 = vpop.f32.mrb[46].mxu1 }
 0x4b2   :  { %v6708_v34 = vpop.f32.mrb[47].mxu1 }
 0x4b3   :  { %v6709_v44 = vadd.f32 %v6708_v34, %v6707_v22 }
 0x4b5   :  { %v3282_v1 = vadd.f32 %v6709_v44, %v3103_v25  ;;  %v6710_v6 = vpop.f32.mrb[48].mxu1 }
 0x4b6   :  { %v6711_v62 = vpop.f32.mrb[49].mxu1 }
 0x4b7   :  { %v6712_v0 = vadd.f32 %v6711_v62, %v6710_v6 }
 0x4b9   :  { %v3291_v4 = vadd.f32 %v6712_v0, %v3110_v20  ;;  %v6713_v11 = vpop.f32.mrb[50].mxu1 }
 0x4ba   :  { %v6714_v59 = vpop.f32.mrb[51].mxu1 }
 0x4bb   :  { %v6715_v40 = vadd.f32 %v6714_v59, %v6713_v11 }
 0x4bd   :  { %v3300_v24 = vadd.f32 %v6715_v40, %v3117_v37 }
 0x4c5   :  { %v6748_v17 = vpop.f32.mrb[52].mxu1 }
 0x4c6   :  { %v6749_v19 = vpop.f32.mrb[53].mxu1 }
 0x4c7   :  { %v6750_v3 = vadd.f32 %v6749_v19, %v6748_v17 }
 0x4c9   :  { %v3408_v43 = vadd.f32 %v6750_v3, %v3255_v18  ;;  %v6751_v47 = vpop.f32.mrb[54].mxu1 }
 0x4ca   :  { %v6752_v46 = vpop.f32.mrb[55].mxu1 }
 0x4cb   :  { %v6753_v36 = vadd.f32 %v6752_v46, %v6751_v47 }
 0x4cd   :  { %v3419_v32 = vadd.f32 %v6753_v36, %v3264_v49  ;;  %v6754_v33 = vpop.f32.mrb[56].mxu1 }
 0x4ce   :  { %v6755_v35 = vpop.f32.mrb[57].mxu1 }
 0x4cf   :  { %v6756_v29 = vadd.f32 %v6755_v35, %v6754_v33  ;;  %v4809_v33 = vld [vmem:[%s12070_s3 + $0x80] sm:$0xff]  ;;  %v4810_v35 = vld [vmem:[%s12070_s3 + $0x88] sm:$0xff] }
 0x4d1   :  { %v3430_v23 = vadd.f32 %v6756_v29, %v3273_v61  ;;  %v6757_v58 = vpop.f32.mrb[58].mxu1  ;;  %v4793_v29 = vld [vmem:[%s12070_s3] sm:$0xff] }
 0x4d2   :  { %v6758_v60 = vpop.f32.mrb[59].mxu1 }
 0x4d3   :  { %v6759_v55 = vadd.f32 %v6758_v60, %v6757_v58  ;;  %v4882_v58 = vand.u32 4294901760, %v4810_v35  ;;  %v4794_v60 = vld [vmem:[%s12070_s3 + $0x8] sm:$0xff] }
 0x4d5   :  { %v3441_v21 = vadd.f32 %v6759_v55, %v3282_v1  ;;  %v6760_v63 = vpop.f32.mrb[60].mxu1  ;;  %v4831_v55 = vand.u32 4294901760, %v4793_v29 }
 0x4d6   :  { %v6761_v56 = vpop.f32.mrb[61].mxu1 }
 0x4d7   :  { %v6762_v48 = vadd.f32 %v6761_v56, %v6760_v63  ;;  %v4812_v63 = vld [vmem:[%s12070_s3 + $0x98] sm:$0xff]  ;;  %v4834_v56 = vand.u32 4294901760, %v4794_v60 }
 0x4d9   :  { %v3452_v54 = vadd.f32 %v6762_v48, %v3291_v4  ;;  %v6763_v30 = vpop.f32.mrb[62].mxu1 }
 0x4da   :  { %v6764_v14 = vpop.f32.mrb[63].mxu1 }
 0x4db   :  { %v6765_v16 = vadd.f32 %v6764_v14, %v6763_v30  ;;  %v4795_v30 = vld [vmem:[%s12070_s3 + $0x10] sm:$0xff]  ;;  %v4796_v14 = vld [vmem:[%s12070_s3 + $0x18] sm:$0xff] }
 0x4dd   :  { %v3463_v7 = vadd.f32 %v6765_v16, %v3300_v24 }
 0x4e5   :  { %v6798_v10 = vpop.f32.mrb[64].mxu1 }
 0x4e6   :  { %v6799_v13 = vpop.f32.mrb[65].mxu1 }
 0x4e7   :  { %v6800_v26 = vadd.f32 %v6799_v13, %v6798_v10  ;;  %v11258_v10 = vsub.f32 %v4793_v29, %v4831_v55  ;;  %v4837_v13 = vand.u32 4294901760, %v4795_v30 }
 0x4e9   :  { %v3631_v42 = vadd.f32 %v6800_v26, %v3408_v43  ;;  %v6801_v2 = vpop.f32.mrb[66].mxu1  ;;  %v11260_v26 = vsub.f32 %v4794_v60, %v4834_v56 }
 0x4ea   :  { %v6802_v52 = vpop.f32.mrb[67].mxu1 }
 0x4eb   :  { %v6803_v38 = vadd.f32 %v6802_v52, %v6801_v2  ;;  %v4840_v52 = vand.u32 4294901760, %v4796_v14 }
 0x4ed   :  { %v3638_v25 = vadd.f32 %v6803_v38, %v3419_v32  ;;  %v6804_v41 = vpop.f32.mrb[68].mxu1 }
 0x4ee   :  { %v6805_v5 = vpop.f32.mrb[69].mxu1 }
 0x4ef   :  { %v6806_v53 = vadd.f32 %v6805_v5, %v6804_v41  ;;  %v12289_v41 = vand.u32 4294901760, %v11258_v10  ;;  %v11269_v5 = vsub.f32 %v4795_v30, %v4837_v13  ;;  %v4522_v30 = vpop.permute.xlu0 %4521 }
 0x4f1   :  { %v3645_v20 = vadd.f32 %v6806_v53, %v3430_v23  ;;  %v6807_v50 = vpop.f32.mrb[70].mxu1  ;;  %v4879_v23 = vand.u32 4294901760, %v4809_v33  ;;  %v11274_v53 = vld [vmem:[%s12070_s3 + $0xa0] sm:$0xff] }
 0x4f2   :  { %v6808_v28 = vpop.f32.mrb[71].mxu1 }
 0x4f3   :  { %v6809_v12 = vadd.f32 %v6808_v28, %v6807_v50  ;;  %v11254_v16 = vsub.f32 %v4809_v33, %v4879_v23 }
 0x4f5   :  { %v3652_v37 = vadd.f32 %v6809_v12, %v3441_v21  ;;  %v6810_v27 = vpop.f32.mrb[72].mxu1  ;;  %v4811_v21 = vld [vmem:[%s12070_s3 + $0x90] sm:$0xff]  ;;  %v12291_v38 = vand.u32 4294901760, %v11254_v16  ;;  %v11279_v12 = vsub.f32 %v4796_v14, %v4840_v52 }
 0x4f6   :  { %v6811_v45 = vpop.f32.mrb[73].mxu1  ;;  %v4885_v48 = vand.u32 4294901760, %v4811_v21 }
 0x4f7   :  { %v6812_v8 = vadd.f32 %v6811_v45, %v6810_v27  ;;  %v11289_v27 = vld [vmem:[%s12070_s3 + $0x20] sm:$0xff]  ;;  %v11294_v45 = vld [vmem:[%s12070_s3 + $0x28] sm:$0xff] }
 0x4f9   :  { %v3659_v18 = vadd.f32 %v6812_v8, %v3452_v54  ;;  %v6813_v51 = vpop.f32.mrb[74].mxu1  ;;  %v4888_v54 = vand.u32 4294901760, %v4812_v63 }
 0x4fa   :  { %v6814_v39 = vpop.f32.mrb[75].mxu1 }
 0x4fb   :  { %v6815_v31 = vadd.f32 %v6814_v39, %v6813_v51  ;;  %v11264_v2 = vsub.f32 %v4812_v63, %v4888_v54  ;;  %v11301_v51 = vpack.c.bf16 %v4882_v58, %v4879_v23  ;;  %v11303_v39 = vpack.c.bf16 %v4834_v56, %v4831_v55 }
 0x4fd   :  { %v3666_v49 = vadd.f32 %v6815_v31, %v3463_v7  ;;  %v11256_v7 = vsub.f32 %v4810_v35, %v4882_v58  ;;  %v12286_v28 = vand.u32 4294901760, %v11264_v2  ;;  %12599 = vst [vmem:[#allocation40_spill] sm:$0xff] %v11301_v51  ;;  %12600 = vst [vmem:[#allocation41_spill] sm:$0xff] %v11303_v39  ;;  %v11308_v31 = vld [vmem:[%s12070_s3 + $0xb0] sm:$0xff]  ;;  %8319 = vmatprep.subr.bf16.mxu1 %v11301_v51 }
 0x4fe   :  { %8321 = vmatpush3.bf16.msra.mxu1 %v11303_v39 }
 0x505   :  { %v6848_v57 = vpop.f32.mrb[76].mxu1 }
 0x506   :  { %v6849_v9 = vpop.f32.mrb[77].mxu1 }
 0x507   :  { %v6850_v15 = vadd.f32 %v6849_v9, %v6848_v57  ;;  %v12284_v9 = vand.u32 4294901760, %v11279_v12 }
 0x509   :  { %v6851_v61 = vpop.f32.mrb[78].mxu1  ;;  %v11218_v22 = vadd.f32 %v6850_v15, %v3631_v42  ;;  %v11262_v42 = vsub.f32 %v4811_v21, %v4885_v48  ;;  %v4891_v15 = vand.u32 4294901760, %v11274_v53 }
 0x50a   :  { %v6852_v34 = vpop.f32.mrb[79].mxu1 }
 0x50b   :  { %v6853_v44 = vadd.f32 %v6852_v34, %v6851_v61  ;;  %v12287_v50 = vand.u32 4294901760, %v11262_v42  ;;  %v11323_v61 = vld [vmem:[%s12070_s3 + $0xb8] sm:$0xff] }
 0x50d   :  { %v6854_v1 = vpop.f32.mrb[80].mxu1  ;;  %v11220_v6 = vadd.f32 %v6853_v44, %v3638_v25  ;;  %v12290_v25 = vand.u32 4294901760, %v11256_v7  ;;  %v8450_v57 = vpack.c.bf16 %v12286_v28, %v12287_v50  ;;  %v4843_v44 = vand.u32 4294901760, %v11289_v27 }
 0x50e   :  { %v6855_v62 = vpop.f32.mrb[81].mxu1 }
 0x50f   :  { %v6856_v0 = vadd.f32 %v6855_v62, %v6854_v1  ;;  %v8446_v8 = vpack.c.bf16 %v12290_v25, %v12291_v38  ;;  %v4846_v1 = vand.u32 4294901760, %v11294_v45  ;;  %v11329_v62 = vpack.c.bf16 %v4888_v54, %v4885_v48 }
 0x511   :  { %v6857_v4 = vpop.f32.mrb[82].mxu1  ;;  %v11222_v11 = vadd.f32 %v6856_v0, %v3645_v20  ;;  %v12288_v20 = vand.u32 4294901760, %v11260_v26  ;;  %8447 = vmatprep.subr.bf16.mxu0 %v8446_v8  ;;  %12601 = vst [vmem:[#allocation11_spill] sm:$0xff] %v11329_v62  ;;  %8323 = vmatprep.subr.bf16.mxu1 %v11329_v62 }
 0x512   :  { %v6858_v59 = vpop.f32.mrb[83].mxu1 }
 0x513   :  { %v6859_v40 = vadd.f32 %v6858_v59, %v6857_v4  ;;  %v11339_v4 = vsub.f32 %v11274_v53, %v4891_v15  ;;  %v11341_v59 = vpack.c.bf16 %v4840_v52, %v4837_v13  ;;  %v4818_v53 = vld [vmem:[%s12070_s3 + $0xc8] sm:$0xff] }
 0x515   :  { %v6860_v24 = vpop.f32.mrb[84].mxu1  ;;  %v11224_v17 = vadd.f32 %v6859_v40, %v3652_v37  ;;  %v11284_v37 = vld [vmem:[%s12070_s3 + $0xa8] sm:$0xff]  ;;  %12602 = vst [vmem:[#allocation15_spill] sm:$0xff] %v11341_v59  ;;  %v4897_v40 = vand.u32 4294901760, %v11308_v31  ;;  %8325 = vmatpush3.bf16.msra.mxu1 %v11341_v59 }
 0x516   :  { %v6861_v19 = vpop.f32.mrb[85].mxu1  ;;  %v4894_v34 = vand.u32 4294901760, %v11284_v37 }
 0x517   :  { %v6862_v3 = vadd.f32 %v6861_v19, %v6860_v24  ;;  %v11344_v24 = vpop.permute.xlu1 %4516  ;;  %v11367_v33 = vsub.f32 %v11308_v31, %v4897_v40 }
 0x518   :  { %v11349_v19 = vsub.f32 %v11284_v37, %v4894_v34  ;;  %v4906_v37 = vand.u32 4294901760, %v4818_v53 }
 0x519   :  { %v6863_v43 = vpop.f32.mrb[86].mxu1  ;;  %v11226_v47 = vadd.f32 %v6862_v3, %v3659_v18  ;;  %v12285_v18 = vand.u32 4294901760, %v11269_v5  ;;  %v11354_v3 = vsub.f32 %v11289_v27, %v4843_v44  ;;  %v12279_v60 = vand.u32 4294901760, %v11367_v33 }
 0x51a   :  { %v6864_v46 = vpop.f32.mrb[87].mxu1  ;;  %v12282_v35 = vand.u32 4294901760, %v11349_v19 }
 0x51b   :  { %v6865_v36 = vadd.f32 %v6864_v46, %v6863_v43  ;;  %v8452_v0 = vpack.c.bf16 %v12284_v9, %v12285_v18  ;;  %v11359_v43 = vsub.f32 %v11294_v45, %v4846_v1  ;;  %v12292_v46 = vand.u32 4294901760, %v11323_v61  ;;  %v4527_v56 = vpop.permute.xlu1 %4526 }
 0x51c   :  { %v12281_v29 = vand.u32 4294901760, %v11354_v3 }
 0x51d   :  { %v11228_v32 = vadd.f32 %v6865_v36, %v3666_v49  ;;  %v8448_v49 = vpack.c.bf16 %v12288_v20, %v12289_v41  ;;  %v12283_v36 = vand.u32 4294901760, %v11339_v4  ;;  %v12280_v23 = vand.u32 4294901760, %v11359_v43 }
 0x51e   :  { %v11375_v58 = vsub.f32 %v11323_v61, %v12292_v46 }
 0x51f   :  { %8449 = vmatpush3.bf16.msra.mxu0 %v8448_v49  ;;  %v8454_v55 = vpack.c.bf16 %v12282_v35, %v12283_v36  ;;  %v8456_v21 = vpack.c.bf16 %v12280_v23, %v12281_v29  ;;  %v4537_v35 = vpop.permute.xlu0 %4536 }
 0x520   :  { %8451 = vmatprep.subr.bf16.mxu0 %v8450_v57  ;;  %v12278_v63 = vand.u32 4294901760, %v11375_v58 }
 0x522   :  { %v8458_v48 = vpack.c.bf16 %v12278_v63, %v12279_v60 }
 0x523   :  { %8453 = vmatpush3.bf16.msra.mxu0 %v8452_v0  ;;  %v4532_v0 = vpop.permute.xlu1 %4531 }
 0x524   :  { %8455 = vmatprep.subr.bf16.mxu0 %v8454_v55 }
 0x527   :  { %8457 = vmatpush3.bf16.msra.mxu0 %v8456_v21 }
 0x528   :  { %8459 = vmatprep.subr.bf16.mxu0 %v8458_v48 }
 0x559   :  { %v7765_v54 = vpop.f32.mrb[88].mxu1 }
 0x55a   :  { %v11393_v14 = vadd.f32 %v7765_v54, %v11220_v6  ;;  %v4474_v13 = vpop.f32.mrb[89].mxu1 }
 0x55b   :  { %v11396_v52 = vadd.f32 %v4474_v13, %v11218_v22 }
 0x55c   :  { %v4545_v8 = vmul.f32 %v11393_v14, %v4522_v30 }
 0x55d   :  { %v4544_v49 = vmul.f32 %v11396_v52, %v11344_v24  ;;  %v7768_v57 = vpop.f32.mrb[90].mxu1 }
 0x55e   :  { %v11402_v55 = vadd.f32 %v7768_v57, %v11224_v17  ;;  %v4486_v63 = vpop.f32.mrb[91].mxu1  ;;  %v4551_v6 = vsel %vm2580_vm2, %v4545_v8, 0.0 }
 0x55f   :  { %v4550_v21 = vsel %vm2580_vm2, %v4544_v49, 0.0  ;;  %v11407_v48 = vadd.f32 %v4486_v63, %v11222_v11  ;;  %v4542_v49 = vpop.permute.xlu1 %4541 }
 0x560   :  { %v4547_v22 = vmul.f32 %v11402_v55, %v4532_v0  ;;  %v4552_v60 = vadd.f32 %v4551_v6, %v4550_v21 }
 0x561   :  { %v4546_v54 = vmul.f32 %v11407_v48, %v4527_v56  ;;  %v7771_v13 = vpop.f32.mrb[92].mxu1 }
 0x562   :  { %v11412_v23 = vadd.f32 %v7771_v13, %v11228_v32  ;;  %v4498_v29 = vpop.f32.mrb[93].mxu1  ;;  %v4555_v11 = vsel %vm2580_vm2, %v4547_v22, 0.0 }
 0x563   :  { %v4553_v17 = vsel %vm2580_vm2, %v4546_v54, 0.0  ;;  %v11416_v57 = vadd.f32 %v4498_v29, %v11226_v47 }
 0x564   :  { %v4554_v8 = vadd.f32 %v4553_v17, %v4552_v60  ;;  %v4549_v63 = vmul.f32 %v11412_v23, %v4542_v49 }
 0x565   :  { %v4548_v36 = vmul.f32 %v11416_v57, %v4537_v35 }
 0x566   :  { %v4556_v9 = vadd.f32 %v4555_v11, %v4554_v8  ;;  %v4559_v6 = vsel %vm2580_vm2, %v4549_v63, 0.0 }
 0x567   :  { %v4557_v21 = vsel %vm2580_vm2, %v4548_v36, 0.0 }
 0x568   :  { %v4558_v32 = vadd.f32 %v4557_v21, %v4556_v9 }
 0x56a   :  { %v4560_v13 = vadd.f32 %v4559_v6, %v4558_v32 }
 0x56c   :  { %v4561_v54 = vrot.slane %v4560_v13, 4 }
 0x56e   :  { %v4562_v18 = vadd.f32 %v4561_v54, %v4560_v13 }
 0x570   :  { %v4563_v47 = vrot.slane %v4562_v18, 2 }
 0x572   :  { %v4564_v29 = vadd.f32 %v4563_v47, %v4562_v18 }
 0x574   :  { %v4565_v28 = vrot.slane %v4564_v29, 1 }
 0x576   :  { %v4566_v60 = vadd.f32 %v4565_v28, %v4564_v29 }
 0x578   :  { %v4568_v17 = vmul.f32 0.055555556, %v4566_v60 }
 0x57a   :  { %v4569_v22 = vsub.f32 %v11396_v52, %v4568_v17  ;;  %v4570_v50 = vsub.f32 %v11393_v14, %v4568_v17  ;;  %v4571_v20 = vsub.f32 %v11407_v48, %v4568_v17  ;;  %v4572_v8 = vsub.f32 %v11402_v55, %v4568_v17 }
 0x57b   :  { %v4573_v9 = vsub.f32 %v11416_v57, %v4568_v17  ;;  %v4574_v36 = vsub.f32 %v11412_v23, %v4568_v17 }
 0x57c   :  { %v4575_v11 = vmul.f32 %v4569_v22, %v4569_v22  ;;  %v4576_v63 = vmul.f32 %v4570_v50, %v4570_v50  ;;  %v4577_v21 = vmul.f32 %v4571_v20, %v4571_v20  ;;  %v4578_v32 = vmul.f32 %v4572_v8, %v4572_v8 }
 0x57d   :  { %v4579_v18 = vmul.f32 %v4573_v9, %v4573_v9  ;;  %v4580_v54 = vmul.f32 %v4574_v36, %v4574_v36 }
 0x57e   :  { %v4581_v28 = vmul.f32 %v4575_v11, %v11344_v24  ;;  %v4582_v6 = vmul.f32 %v4576_v63, %v4522_v30  ;;  %v4583_v13 = vmul.f32 %v4577_v21, %v4527_v56  ;;  %v4584_v47 = vmul.f32 %v4578_v32, %v4532_v0 }
 0x57f   :  { %v4585_v25 = vmul.f32 %v4579_v18, %v4537_v35  ;;  %v4586_v22 = vmul.f32 %v4580_v54, %v4542_v49  ;;  %v12603_v18 = vld [vmem:[#allocation24_spill] sm:$0xff] }
 0x580   :  { %v4587_v29 = vsel %vm2580_vm2, %v4581_v28, 0.0  ;;  %v4588_v60 = vsel %vm2580_vm2, %v4582_v6, 0.0  ;;  %v4590_v38 = vsel %vm2580_vm2, %v4583_v13, 0.0  ;;  %v4592_v20 = vsel %vm2580_vm2, %v4584_v47, 0.0 }
 0x581   :  { %v4589_v41 = vadd.f32 %v4588_v60, %v4587_v29  ;;  %v4594_v8 = vsel %vm2580_vm2, %v4585_v25, 0.0  ;;  %v4596_v56 = vsel %vm2580_vm2, %v4586_v22, 0.0  ;;  %v4609_v25 = vld [vmem:[%s12072_s5 + $0x3] sm:$0x1] }
 0x583   :  { %v4591_v46 = vadd.f32 %v4590_v38, %v4589_v41  ;;  %v4605_v38 = vld [vmem:[%s12072_s5 + $0x2] sm:$0x1] }
 0x585   :  { %v4593_v50 = vadd.f32 %v4592_v20, %v4591_v46 }
 0x587   :  { %v4595_v24 = vadd.f32 %v4594_v8, %v4593_v50 }
 0x589   :  { %v4597_v30 = vadd.f32 %v4596_v56, %v4595_v24 }
 0x58b   :  { %v4598_v0 = vrot.slane %v4597_v30, 4 }
 0x58d   :  { %v4599_v9 = vadd.f32 %v4598_v0, %v4597_v30 }
 0x58f   :  { %v4600_v36 = vrot.slane %v4599_v9, 2 }
 0x591   :  { %v4601_v11 = vadd.f32 %v4600_v36, %v4599_v9 }
 0x593   :  { %v4602_v63 = vrot.slane %v4601_v11, 1 }
 0x595   :  { %v4603_v21 = vadd.f32 %v4602_v63, %v4601_v11  ;;  %v11472_v11 = vpack.c.bf16 %v4846_v1, %v4843_v44  ;;  %v4817_v63 = vld [vmem:[%s12070_s3 + $0xc0] sm:$0xff] }
 0x597   :  { %v4604_v35 = vmul.f32 0.055555556, %v4603_v21  ;;  %12605 = vst [vmem:[#allocation23_spill] sm:$0xff] %v11472_v11 }
 0x599   :  { %v4606_v32 = vadd.f32 1e-05, %v4604_v35 }
 0x59b   :  { %8817 = vrsqrt.f32 %v4606_v32  ;;  %v4903_v32 = vand.u32 4294901760, %v4817_v63 }
 0x59d   :  { %v11486_v45 = vsub.f32 %v4817_v63, %v4903_v32 }
 0x5a5   :  { %v8818_v41 = vpop.eup %8817 }
 0x5a6   :  { %v4608_v46 = vmul.f32 %v8818_v41, %v4605_v38  ;;  %v11488_v38 = vsub.f32 %v4818_v53, %v4906_v37  ;;  %v12606_v41 = vand.u32 4294901760, %v11323_v61 }
 0x5a8   :  { %v4610_v49 = vmul.f32 %v4608_v46, %v4568_v17  ;;  %v4615_v28 = vrot.slane %v4608_v46, %v12603_v18  ;;  %v11494_v46 = vpack.c.bf16 %v12606_v41, %v4897_v40  ;;  %v12293_v40 = vand.u32 4294901760, %v11488_v38 }
 0x5aa   :  { %v4611_v6 = vsub.f32 %v4609_v25, %v4610_v49  ;;  %v4616_v13 = vmul.f32 %v11396_v52, %v4615_v28  ;;  %v4617_v54 = vmul.f32 %v11393_v14, %v4615_v28  ;;  %v4619_v47 = vmul.f32 %v11402_v55, %v4615_v28  ;;  %12607 = vst [vmem:[#allocation16_spill] sm:$0xff] %v11494_v46 }
 0x5ab   :  { %v4620_v29 = vmul.f32 %v11416_v57, %v4615_v28  ;;  %v4618_v22 = vmul.f32 %v11407_v48, %v4615_v28  ;;  %v4621_v20 = vmul.f32 %v11412_v23, %v4615_v28  ;;  %v4799_v23 = vld [vmem:[%s12070_s3 + $0x30] sm:$0xff]  ;;  %v4800_v48 = vld [vmem:[%s12070_s3 + $0x38] sm:$0xff]  ;;  %v11466_v57 = vpack.c.bf16 %v4894_v34, %v4891_v15 }
 0x5ac   :  { %v4625_v60 = vrot.slane %v4611_v6, %v12603_v18  ;;  %v4849_v21 = vand.u32 4294901760, %v4799_v23  ;;  %v4852_v35 = vand.u32 4294901760, %v4800_v48 }
 0x5ad   :  { %12604 = vst [vmem:[#allocation13_spill] sm:$0xff] %v11466_v57  ;;  %8327 = vmatprep.subr.bf16.mxu1 %v11466_v57 }
 0x5ae   :  { %v4630_v50 = vadd.f32 %v4625_v60, %v4620_v29  ;;  %v4629_v8 = vadd.f32 %v4625_v60, %v4619_v47  ;;  %v4626_v17 = vadd.f32 %v4625_v60, %v4616_v13  ;;  %v4627_v24 = vadd.f32 %v4625_v60, %v4617_v54  ;;  %8329 = vmatpush3.bf16.msra.mxu1 %v11472_v11 }
 0x5af   :  { %v4631_v56 = vadd.f32 %v4625_v60, %v4621_v20  ;;  %v4628_v30 = vadd.f32 %v4625_v60, %v4618_v22  ;;  %v11481_v15 = vsub.f32 %v4799_v23, %v4849_v21  ;;  %v11483_v27 = vsub.f32 %v4800_v48, %v4852_v35  ;;  %8331 = vmatprep.subr.bf16.mxu1 %v11494_v46 }
 0x5b0   :  { %v4636_v0 = vmax.f32 %v4630_v50, 0.0  ;;  %v4635_v52 = vmax.f32 %v4629_v8, 0.0  ;;  %v4632_v9 = vmax.f32 %v4626_v17, 0.0  ;;  %v4633_v14 = vmax.f32 %v4627_v24, 0.0 }
 0x5b1   :  { %v4637_v36 = vmax.f32 %v4631_v56, 0.0  ;;  %v4634_v55 = vmax.f32 %v4628_v30, 0.0  ;;  %v11496_v25 = vpack.c.bf16 %v4852_v35, %v4849_v21  ;;  %v12298_v54 = vand.u32 4294901760, %v11481_v15 }
 0x5b2   :  { %4642 = vst.msk [vmem:[#allocation3 + $0x20] sm:$0xff] %vm2580_vm2, %v4636_v0  ;;  %4641 = vst.msk [vmem:[#allocation3 + $0x18] sm:$0xff] %vm2580_vm2, %v4635_v52  ;;  %v12295_v47 = vand.u32 4294901760, %v11483_v27  ;;  %v12294_v29 = vand.u32 4294901760, %v11486_v45  ;;  %v11508_v0 = vpack.c.bf16 %v4906_v37, %v4903_v32 }
 0x5b3   :  { %4638 = vst.msk [vmem:[#allocation3] sm:$0xff] %vm2580_vm2, %v4632_v9  ;;  %4639 = vst.msk [vmem:[#allocation3 + $0x8] sm:$0xff] %vm2580_vm2, %v4633_v14  ;;  %8333 = vmatpush3.bf16.msra.mxu1 %v11496_v25 }
 0x5b4   :  { %4643 = vst.msk [vmem:[#allocation3 + $0x28] sm:$0xff] %vm2580_vm2, %v4637_v36  ;;  %4640 = vst.msk [vmem:[#allocation3 + $0x10] sm:$0xff] %vm2580_vm2, %v4634_v55  ;;  %v8460_v30 = vpack.c.bf16 %v12295_v47, %v12298_v54  ;;  %v8462_v32 = vpack.c.bf16 %v12293_v40, %v12294_v29  ;;  %8335 = vmatprep.subr.bf16.mxu1 %v11508_v0  ;;  %v4824_v47 = vld [vmem:[%s12070_s3 + $0xf8] sm:$0xff] }
 0x5b5   :  { %12608 = vst [vmem:[#allocation26_spill] sm:$0xff] %v11496_v25  ;;  %12609 = vst [vmem:[#allocation17_spill] sm:$0xff] %v11508_v0 }
 0x5b6   :  { %8461 = vmatpush3.bf16.msra.mxu0 %v8460_v30 }
 0x5b7   :  { %8463 = vmatprep.subr.bf16.mxu0 %v8462_v32 }
 0x5b9   :  { %v4651_v34 = vld [vmem:[#allocation3 + $0x19] sm:$0xff] }
 0x5ba   :  { %v4655_v44 = vld [vmem:[#allocation3 + $0x1d] sm:$0xff]  ;;  %v4652_v50 = vld [vmem:[#allocation3 + $0x5] sm:$0xff] }
 0x5bb   :  { %v4659_v1 = vld [vmem:[#allocation3 + $0x1e] sm:$0xff]  ;;  %v4656_v61 = vld [vmem:[#allocation3 + $0x6] sm:$0xff] }
 0x5bc   :  { %v4667_v49 = vmax.f32 %v4655_v44, %v4659_v1  ;;  %v4675_v28 = vld [vmem:[#allocation3 + $0x1a] sm:$0xff]  ;;  %v4664_v8 = vmax.f32 %v4652_v50, %v4656_v61  ;;  %v4672_v17 = vld [vmem:[#allocation3 + $0x2] sm:$0xff]  ;;  %v11510_v35 = vld [vmem:[#allocation3 + $0xa] sm:$0xff] }
 0x5bd   :  { %v4679_v6 = vld [vmem:[#allocation3 + $0x1f] sm:$0xff]  ;;  %v4683_v60 = vmax.f32 %v4651_v34, %v4675_v28  ;;  %v4676_v24 = vld [vmem:[#allocation3 + $0x7] sm:$0xff]  ;;  %12610 = vst [vmem:[#allocation31_spill] sm:$0xff] %v11510_v35  ;;  %v4650_v28 = vld [vmem:[#allocation3 + $0x11] sm:$0xff] }
 0x5be   :  { %v4647_v13 = vld [vmem:[#allocation3 + $0x18] sm:$0xff]  ;;  %v4687_v22 = vmax.f32 %v4659_v1, %v4679_v6  ;;  %v4648_v31 = vld [vmem:[#allocation3 + $0x1] sm:$0xff]  ;;  %v4684_v14 = vmax.f32 %v4656_v61, %v4676_v24  ;;  %v4693_v53 = vld [vmem:[#allocation3 + $0xb] sm:$0xff] }
 0x5bf   :  { %v4663_v20 = vmax.f32 %v4647_v13, %v4651_v34  ;;  %v4644_v56 = vld [vmem:[#allocation3] sm:$0xff]  ;;  %v4680_v9 = vmax.f32 %v4648_v31, %v4672_v17  ;;  %v4705_v34 = vld [vmem:[#allocation3 + $0xc] sm:$0xff]  ;;  %v4697_v1 = vmax.f32 %v11510_v35, %v4693_v53  ;;  %v4658_v6 = vld [vmem:[#allocation3 + $0x16] sm:$0xff] }
 0x5c0   :  { %v4691_v52 = vmax.f32 %v4683_v60, %v4687_v22  ;;  %v4660_v36 = vmax.f32 %v4644_v56, %v4648_v31  ;;  %v4692_v55 = vld [vmem:[#allocation3 + $0x22] sm:$0xff]  ;;  %v4709_v41 = vmax.f32 %v4693_v53, %v4705_v34  ;;  %v4674_v31 = vld [vmem:[#allocation3 + $0x12] sm:$0xff] }
 0x5c1   :  { %v4696_v23 = vld [vmem:[#allocation3 + $0x23] sm:$0xff]  ;;  %v11512_v44 = vmax.f32 %v4663_v20, %v4667_v49  ;;  %v4688_v37 = vmax.f32 %v4680_v9, %v4684_v14  ;;  %v4678_v20 = vld [vmem:[#allocation3 + $0x17] sm:$0xff]  ;;  %v4682_v17 = vmax.f32 %v4650_v28, %v4674_v31  ;;  %v11537_v30 = vmax.f32 %v4664_v8, %v4697_v1 }
 0x5c2   :  { %v4708_v48 = vld [vmem:[#allocation3 + $0x24] sm:$0xff]  ;;  %v4700_v63 = vmax.f32 %v4692_v55, %v4696_v23  ;;  %4727 = vrot.lane.b32.xlu1 %v4691_v52, %s8847_s12  ;;  %v11520_v13 = vmax.f32 %v4660_v36, %v4664_v8  ;;  %v4713_v61 = vmax.f32 %v4684_v14, %v4709_v41  ;;  %v11526_v24 = vmax.f32 %v4658_v6, %v4678_v20  ;;  %v4820_v14 = vld [vmem:[%s12070_s3 + $0xd8] sm:$0xff]  ;;  %v4803_v55 = vld [vmem:[%s12070_s3 + $0x50] sm:$0xff] }
 0x5c3   :  { %v4712_v21 = vmax.f32 %v4696_v23, %v4708_v48  ;;  %4721 = vrot.lane.b32.xlu0 %v4688_v37, %s8847_s12  ;;  %v4801_v56 = vld [vmem:[%s12070_s3 + $0x40] sm:$0xff]  ;;  %v4804_v23 = vld [vmem:[%s12070_s3 + $0x58] sm:$0xff]  ;;  %v4912_v48 = vand.u32 4294901760, %v4820_v14  ;;  %v4822_v1 = vld [vmem:[%s12070_s3 + $0xe8] sm:$0xff] }
 0x5c4   :  { %v11522_v50 = vmax.f32 %v4667_v49, %v4700_v63  ;;  %12611 = vst [vmem:[#allocation22_spill] sm:$0xff] %v11526_v24  ;;  %v4819_v49 = vld [vmem:[%s12070_s3 + $0xd0] sm:$0xff]  ;;  %v4855_v52 = vand.u32 4294901760, %v4801_v56  ;;  %v4690_v8 = vmax.f32 %v4682_v17, %v11526_v24  ;;  %v4861_v63 = vand.u32 4294901760, %v4803_v55  ;;  %v4805_v31 = vld [vmem:[%s12070_s3 + $0x60] sm:$0xff]  ;;  %v4806_v20 = vld [vmem:[%s12070_s3 + $0x68] sm:$0xff] }
 0x5c5   :  { %v4716_v60 = vmax.f32 %v4687_v22, %v4712_v21  ;;  %v4802_v22 = vld [vmem:[%s12070_s3 + $0x48] sm:$0xff]  ;;  %v4909_v36 = vand.u32 4294901760, %v4819_v49  ;;  %v4821_v21 = vld [vmem:[%s12070_s3 + $0xe0] sm:$0xff]  ;;  %v4864_v37 = vand.u32 4294901760, %v4804_v23  ;;  %v11563_v41 = vsub.f32 %v4820_v14, %v4912_v48 }
 0x5c6   :  { %v4858_v9 = vand.u32 4294901760, %v4802_v22  ;;  %v11553_v53 = vsub.f32 %v4801_v56, %v4855_v52  ;;  %v11565_v28 = vsub.f32 %v4803_v55, %v4861_v63  ;;  %v4870_v29 = vand.u32 4294901760, %v4806_v20 }
 0x5c7   :  { %4743 = vrot.lane.b32.xlu1 %v4716_v60, %s8847_s12  ;;  %v11557_v32 = vsub.f32 %v4819_v49, %v4909_v36  ;;  %4737 = vrot.lane.b32.xlu0 %v4713_v61, %s8847_s12  ;;  %v4915_v60 = vand.u32 4294901760, %v4821_v21  ;;  %v12307_v49 = vand.u32 4294901760, %v11563_v41  ;;  %v11607_v40 = vpack.c.bf16 %v4912_v48, %v4909_v36 }
 0x5c8   :  { %v11555_v34 = vsub.f32 %v4802_v22, %v4858_v9  ;;  %v11567_v6 = vpack.c.bf16 %v4858_v9, %v4855_v52  ;;  %v12297_v17 = vand.u32 4294901760, %v11553_v53  ;;  %v11578_v22 = vsub.f32 %v4804_v23, %v4864_v37  ;;  %v4808_v52 = vld [vmem:[%s12070_s3 + $0x78] sm:$0xff] }
 0x5c9   :  { %v12308_v61 = vand.u32 4294901760, %v11557_v32  ;;  %v4918_v9 = vand.u32 4294901760, %v4822_v1  ;;  %v11584_v14 = vsub.f32 %v4821_v21, %v4915_v60  ;;  %v4867_v23 = vand.u32 4294901760, %v4805_v31  ;;  %v4807_v21 = vld [vmem:[%s12070_s3 + $0x70] sm:$0xff]  ;;  %12613 = vst [vmem:[#allocation27_spill] sm:$0xff] %v11607_v40 }
 0x5ca   :  { %12612 = vst [vmem:[#allocation25_spill] sm:$0xff] %v11567_v6  ;;  %v12296_v56 = vand.u32 4294901760, %v11555_v34  ;;  %8337 = vmatpush3.bf16.msra.mxu1 %v11567_v6  ;;  %v12614_v24 = vand.u32 4294901760, %v11565_v28  ;;  %v12615_v35 = vand.u32 4294901760, %v11578_v22  ;;  %v11618_v25 = vsub.f32 %v4806_v20, %v4870_v29 }
 0x5cb   :  { %4725 = vrot.lane.b32.xlu1 %v4690_v8, %s8847_s12  ;;  %v4823_v8 = vld [vmem:[%s12070_s3 + $0xf0] sm:$0xff]  ;;  %v11605_v54 = vsub.f32 %v4822_v1, %v4918_v9  ;;  %v11616_v0 = vsub.f32 %v4805_v31, %v4867_v23  ;;  %8339 = vmatprep.subr.bf16.mxu1 %v11607_v40  ;;  %v4924_v1 = vand.u32 4294901760, %v4824_v47 }
 0x5cc   :  { %v8464_v55 = vpack.c.bf16 %v12296_v56, %v12297_v17  ;;  %v8466_v56 = vpack.c.bf16 %v12307_v49, %v12308_v61  ;;  %v8468_v6 = vpack.c.bf16 %v12615_v35, %v12614_v24  ;;  %v11620_v49 = vpack.c.bf16 %v4864_v37, %v4861_v63 }
 0x5cd   :  { %12616 = vst [vmem:[#allocation9_spill] sm:$0xff] %v11616_v0  ;;  %v12315_v36 = vand.u32 4294901760, %v11605_v54  ;;  %v4921_v48 = vand.u32 4294901760, %v4823_v8  ;;  %v4873_v61 = vand.u32 4294901760, %v4807_v21  ;;  %v12313_v17 = vand.u32 4294901760, %v11618_v25 }
 0x5ce   :  { %8465 = vmatpush3.bf16.msra.mxu0 %v8464_v55  ;;  %12617 = vst [vmem:[#allocation28_spill] sm:$0xff] %v11620_v49  ;;  %v12314_v55 = vand.u32 4294901760, %v11616_v0  ;;  %8341 = vmatpush3.bf16.msra.mxu1 %v11620_v49  ;;  %v4876_v35 = vand.u32 4294901760, %v4808_v52  ;;  %v11627_v24 = vpack.c.bf16 %v4918_v9, %v4915_v60  ;;  %v12619_v63 = vand.u32 4294901760, %v11584_v14 }
 0x5cf   :  { %8467 = vmatprep.subr.bf16.mxu0 %v8466_v56  ;;  %v11633_v31 = vsub.f32 %v4823_v8, %v4921_v48  ;;  %v11635_v20 = vsub.f32 %v4824_v47, %v4924_v1  ;;  %v11637_v56 = vsub.f32 %v4807_v21, %v4873_v61  ;;  %v11649_v8 = vpack.c.bf16 %v4870_v29, %v4867_v23 }
 0x5d0   :  { %12618 = vst [vmem:[#allocation29_spill] sm:$0xff] %v11627_v24  ;;  %v8470_v37 = vpack.c.bf16 %v12315_v36, %v12619_v63  ;;  %v8472_v49 = vpack.c.bf16 %v12313_v17, %v12314_v55  ;;  %v11643_v40 = vsub.f32 %v4808_v52, %v4876_v35  ;;  %8343 = vmatprep.subr.bf16.mxu1 %v11627_v24  ;;  %v12626_v63 = vand.u32 4294901760, %v11254_v16 }
 0x5d1   :  { %12620 = vst [vmem:[#allocation32_spill] sm:$0xff] %v11633_v31  ;;  %12621 = vst [vmem:[#allocation19_spill] sm:$0xff] %v11635_v20  ;;  %v5155_v60 = vand.u32 4294901760, %v11633_v31  ;;  %v5162_v9 = vand.u32 4294901760, %v11635_v20  ;;  %v5043_v47 = vand.u32 4294901760, %v11637_v56  ;;  %v11652_v21 = vpack.c.bf16 %v4924_v1, %v4921_v48 }
 0x5d2   :  { %12622 = vst [vmem:[#allocation30_spill] sm:$0xff] %v11637_v56  ;;  %8469 = vmatpush3.bf16.msra.mxu0 %v8468_v6  ;;  %12623 = vst [vmem:[#allocation37_spill] sm:$0xff] %v11643_v40  ;;  %v5050_v6 = vand.u32 4294901760, %v11643_v40  ;;  %v5058_v52 = vsub.f32 %v11254_v16, %v12626_v63  ;;  %8345 = vmatpush3.bf16.msra.mxu1 %v11649_v8  ;;  %v12628_v55 = vand.u32 4294901760, %v11256_v7  ;;  %v11665_v63 = vld [vmem:[#allocation3 + $0x9] sm:$0xff] }
 0x5d3   :  { %8471 = vmatprep.subr.bf16.mxu0 %v8470_v37  ;;  %12624 = vst [vmem:[#allocation33_spill] sm:$0xff] %v11649_v8  ;;  %12625 = vst [vmem:[#allocation35_spill] sm:$0xff] %v11652_v21  ;;  %v8474_v17 = vpack.c.bf16 %v5162_v9, %v5155_v60  ;;  %v11658_v37 = vpack.c.bf16 %v4876_v35, %v4873_v61  ;;  %8347 = vmatprep.subr.bf16.mxu1 %v11652_v21  ;;  %v11667_v61 = vld [vmem:[#allocation3 + $0xe] sm:$0xff]  ;;  %v12633_v21 = vand.u32 4294901760, %v11483_v27 }
 0x5d4   :  { %v5065_v36 = vsub.f32 %v11256_v7, %v12628_v55  ;;  %v8476_v29 = vpack.c.bf16 %v5050_v6, %v5043_v47  ;;  %v5059_v23 = vand.u32 4294901760, %v5058_v52  ;;  %12629 = vst [vmem:[#allocation8_spill] sm:$0xff] %v11665_v63  ;;  %12630 = vst [vmem:[#allocation34_spill] sm:$0xff] %v11667_v61  ;;  %v11669_v35 = vld [vmem:[#allocation3 + $0x13] sm:$0xff]  ;;  %v12632_v55 = vand.u32 4294901760, %v11481_v15  ;;  %v11683_v61 = vld [vmem:[#allocation3 + $0x1b] sm:$0xff] }
 0x5d5   :  { %12627 = vst [vmem:[#allocation38_spill] sm:$0xff] %v11658_v37  ;;  %12631 = vst [vmem:[#allocation36_spill] sm:$0xff] %v11669_v35 }
 0x5d6   :  { %8473 = vmatpush3.bf16.msra.mxu0 %v8472_v49  ;;  %v5066_v48 = vand.u32 4294901760, %v5065_v36  ;;  %8349 = vmatpush3.bf16.msra.mxu1 %v11658_v37  ;;  %v4988_v49 = vsub.f32 %v11481_v15, %v12632_v55  ;;  %12636 = vst [vmem:[#allocation10_spill] sm:$0xff] %v11683_v61  ;;  %v12637_v55 = vand.u32 4294901760, %v11553_v53 }
 0x5d7   :  { %8475 = vmatprep.subr.bf16.mxu0 %v8474_v17  ;;  %v4995_v17 = vsub.f32 %v11483_v27, %v12633_v21  ;;  %v12638_v21 = vand.u32 4294901760, %v11555_v34 }
 0x5d8   :  { %v8350_v1 = vpack.c.bf16 %v5066_v48, %v5059_v23  ;;  %v4989_v36 = vand.u32 4294901760, %v4988_v49  ;;  %v12634_v23 = vand.u32 4294901760, %v11486_v45  ;;  %v12635_v48 = vand.u32 4294901760, %v11488_v38 }
 0x5d9   :  { %v4996_v52 = vand.u32 4294901760, %v4995_v17  ;;  %v5002_v63 = vsub.f32 %v11553_v53, %v12637_v55  ;;  %v5009_v49 = vsub.f32 %v11555_v34, %v12638_v21  ;;  %v12641_v55 = vand.u32 4294901760, %v11565_v28 }
 0x5da   :  { %8477 = vmatpush3.bf16.msra.mxu0 %v8476_v29  ;;  %8351 = vmatprep.subr.bf16.mxu1 %v8350_v1  ;;  %v5114_v29 = vsub.f32 %v11486_v45, %v12634_v23  ;;  %v5121_v1 = vsub.f32 %v11488_v38, %v12635_v48  ;;  %v12639_v48 = vand.u32 4294901760, %v11557_v32 }
 0x5db   :  { %v11685_v35 = vpack.c.bf16 %v4996_v52, %v4989_v36  ;;  %v5003_v8 = vand.u32 4294901760, %v5002_v63  ;;  %v5010_v23 = vand.u32 4294901760, %v5009_v49  ;;  %v12640_v36 = vand.u32 4294901760, %v11563_v41 }
 0x5dc   :  { %v5115_v17 = vand.u32 4294901760, %v5114_v29  ;;  %v5122_v37 = vand.u32 4294901760, %v5121_v1  ;;  %v5128_v61 = vsub.f32 %v11557_v32, %v12639_v48  ;;  %v5016_v21 = vsub.f32 %v11565_v28, %v12641_v55 }
 0x5dd   :  { %v5135_v52 = vsub.f32 %v11563_v41, %v12640_v36  ;;  %v11701_v46 = vpack.c.bf16 %v5010_v23, %v5003_v8  ;;  %v12642_v29 = vand.u32 4294901760, %v11578_v22  ;;  %v12643_v48 = vand.u32 4294901760, %v11584_v14 }
 0x5de   :  { %v11693_v24 = vpack.c.bf16 %v5122_v37, %v5115_v17  ;;  %v5129_v37 = vand.u32 4294901760, %v5128_v61  ;;  %v5017_v49 = vand.u32 4294901760, %v5016_v21  ;;  %v12644_v8 = vand.u32 4294901760, %v11605_v54 }
 0x5df   :  { %v5023_v63 = vsub.f32 %v11578_v22, %v12642_v29  ;;  %v5136_v1 = vand.u32 4294901760, %v5135_v52  ;;  %v5142_v36 = vsub.f32 %v11584_v14, %v12643_v48  ;;  %v12645_v55 = vand.u32 4294901760, %v11616_v0 }
 0x5e0   :  { %v5149_v23 = vsub.f32 %v11605_v54, %v12644_v8  ;;  %v12646_v61 = vand.u32 4294901760, %v11618_v25  ;;  %v5156_v48 = vsub.f32 %v11633_v31, %v5155_v60  ;;  %v5163_v8 = vsub.f32 %v11635_v20, %v5162_v9 }
 0x5e1   :  { %v5024_v17 = vand.u32 4294901760, %v5023_v63  ;;  %v11709_v11 = vpack.c.bf16 %v5136_v1, %v5129_v37  ;;  %v5030_v29 = vsub.f32 %v11616_v0, %v12645_v55  ;;  %v5143_v21 = vand.u32 4294901760, %v5142_v36 }
 0x5e2   :  { %v5037_v52 = vsub.f32 %v11618_v25, %v12646_v61  ;;  %v5150_v63 = vand.u32 4294901760, %v5149_v23  ;;  %v5051_v55 = vsub.f32 %v11643_v40, %v5050_v6  ;;  %v5157_v62 = vand.u32 4294901760, %v5156_v48 }
 0x5e3   :  { %v11717_v57 = vpack.c.bf16 %v5024_v17, %v5017_v49  ;;  %v5031_v37 = vand.u32 4294901760, %v5030_v29  ;;  %v5044_v17 = vsub.f32 %v11637_v56, %v5043_v47  ;;  %v5164_v39 = vand.u32 4294901760, %v5163_v8 }
 0x5e4   :  { %v5038_v1 = vand.u32 4294901760, %v5037_v52  ;;  %v11725_v59 = vpack.c.bf16 %v5150_v63, %v5143_v21  ;;  %v5052_v61 = vand.u32 4294901760, %v5051_v55  ;;  %v12658_v0 = vand.u32 4294901760, %v11367_v33 }
 0x5e5   :  { %v5045_v51 = vand.u32 4294901760, %v5044_v17  ;;  %v11733_v36 = vpack.c.bf16 %v5164_v39, %v5157_v62 }
 0x5e6   :  { %v11729_v49 = vpack.c.bf16 %v5038_v1, %v5031_v37 }
 0x5e7   :  { %v11735_v23 = vpack.c.bf16 %v5052_v61, %v5045_v51  ;;  %v12647_v61 = vld [vmem:[#allocation21_spill] sm:$0xff] }
 0x5e8   :  { %v4775_v62 = vsub.s32 1, %v12647_v61  ;;  %v12651_v61 = vand.u32 4294901760, %v11264_v2 }
 0x634   :  { %v4728_v52 = vpop.permute.xlu1 %4727 }
 0x635   :  { %v4752_v21 = vsel %vm2580_vm2, %v11512_v44, %v4728_v52  ;;  %v4722_v63 = vpop.permute.xlu0 %4721 }
 0x636   :  { %4763 = vst [vmem:[#allocation4 + $0x30] sm:$0xff] %v4752_v21  ;;  %v4749_v37 = vsel %vm2580_vm2, %v11520_v13, %v4722_v63 }
 0x637   :  { %4757 = vst [vmem:[#allocation4] sm:$0xff] %v4749_v37 }
 0x639   :  { %v4744_v1 = vpop.permute.xlu1 %4743  ;;  %v4738_v8 = vpop.permute.xlu0 %4737 }
 0x63a   :  { %v4756_v48 = vsel %vm2580_vm2, %v11522_v50, %v4744_v1  ;;  %v4753_v17 = vsel %vm2580_vm2, %v11537_v30, %v4738_v8  ;;  %v12648_v50 = vand.u32 4294901760, %v11258_v10  ;;  %v12649_v1 = vand.u32 4294901760, %v11260_v26 }
 0x63b   :  { %4764 = vst [vmem:[#allocation4 + $0x38] sm:$0xff] %v4756_v48  ;;  %4758 = vst [vmem:[#allocation4 + $0x8] sm:$0xff] %v4753_v17  ;;  %v12650_v17 = vand.u32 4294901760, %v11262_v42 }
 0x63c   :  { %v4946_v37 = vsub.f32 %v11258_v10, %v12648_v50  ;;  %v4953_v30 = vsub.f32 %v11260_v26, %v12649_v1  ;;  %v12652_v1 = vand.u32 4294901760, %v11269_v5 }
 0x63d   :  { %v4726_v55 = vpop.permute.xlu1 %4725 }
 0x63e   :  { %v5072_v55 = vsub.f32 %v11262_v42, %v12650_v17  ;;  %v4960_v17 = vsub.f32 %v11269_v5, %v12652_v1 }
 0x640   :  { %v4961_v9 = vand.u32 4294901760, %v4960_v17 }
 0x642   :  { %v4767_v44 = vld [vmem:[#allocation4 + $0x31] ss:$8 sm:$0x3]  ;;  %v4765_v51 = vld [vmem:[#allocation4] ss:$8 sm:$0x3] }
 0x643   :  { %v4783_v52 = vrot.slane %v4767_v44, %v12603_v18  ;;  %v4787_v21 = vrot.slane %v4767_v44, %v4775_v62  ;;  %v4772_v13 = vrot.slane %v4765_v51, %v12603_v18  ;;  %v4776_v63 = vrot.slane %v4765_v51, %v4775_v62 }
 0x644   :  { %v5079_v44 = vsub.f32 %v11264_v2, %v12651_v61  ;;  %v12653_v61 = vand.u32 4294901760, %v11279_v12 }
 0x645   :  { %v4792_v48 = vsel %vm4790_vm3, %v4776_v63, %v4787_v21  ;;  %v4791_v8 = vsel %vm4790_vm3, %v4772_v13, %v4783_v52  ;;  %v4947_v52 = vand.u32 4294901760, %v4946_v37  ;;  %v4954_v13 = vand.u32 4294901760, %v4953_v30 }
 0x646   :  { %v11776_v18 = vand.u32 4294901760, %v4792_v48  ;;  %v11778_v51 = vand.u32 4294901760, %v4791_v8  ;;  %v5073_v63 = vand.u32 4294901760, %v5072_v55  ;;  %v5080_v50 = vand.u32 4294901760, %v5079_v44 }
 0x647   :  { %v4967_v39 = vsub.f32 %v11279_v12, %v12653_v61  ;;  %v12655_v30 = vand.u32 4294901760, %v11349_v19  ;;  %v8352_v61 = vpack.c.bf16 %v4954_v13, %v4947_v52  ;;  %v12659_v52 = vand.u32 4294901760, %v11375_v58 }
 0x648   :  { %5581 = vmatprep.mubr.f32.mxu0 %v11776_v18  ;;  %v11782_v62 = vsub.f32 %v4791_v8, %v11778_v51  ;;  %v11785_v21 = vsub.f32 %v4792_v48, %v11776_v18  ;;  %v12654_v48 = vand.u32 4294901760, %v11339_v4  ;;  %v8354_v47 = vpack.c.bf16 %v5080_v50, %v5073_v63 }
 0x649   :  { %5583 = vmatmul.mubr.f32.vlgmr.msra.gmra.mrb[32].mxu0 %v11778_v51  ;;  %v5093_v55 = vsub.f32 %v11349_v19, %v12655_v30  ;;  %v4968_v60 = vand.u32 4294901760, %v4967_v39  ;;  %v12657_v30 = vand.u32 4294901760, %v11359_v43  ;;  %v5107_v39 = vsub.f32 %v11375_v58, %v12659_v52  ;;  %v5698_v52 = vld [vmem:[%s12071_s4 + $0x28] sm:$0xff] }
 0x64a   :  { %v12342_v8 = vand.u32 4294901760, %v11785_v21  ;;  %v12344_v6 = vand.u32 4294901760, %v11782_v62  ;;  %v5086_v37 = vsub.f32 %v11339_v4, %v12654_v48  ;;  %v12656_v48 = vand.u32 4294901760, %v11354_v3 }
 0x64b   :  { %v4981_v31 = vsub.f32 %v11359_v43, %v12657_v30  ;;  %v8356_v13 = vpack.c.bf16 %v4968_v60, %v4961_v9  ;;  %v5697_v30 = vld [vmem:[%s12071_s4 + $0x20] sm:$0xff] }
 0x64c   :  { %v4929_v44 = vsub.f32 %v11785_v21, %v12342_v8  ;;  %v4935_v1 = vsub.f32 %v11782_v62, %v12344_v6  ;;  %v4974_v40 = vsub.f32 %v11354_v3, %v12656_v48  ;;  %v5087_v20 = vand.u32 4294901760, %v5086_v37 }
 0x64d   :  { %v5094_v8 = vand.u32 4294901760, %v5093_v55  ;;  %v5100_v6 = vsub.f32 %v11367_v33, %v12658_v0  ;;  %v4982_v50 = vand.u32 4294901760, %v4981_v31  ;;  %v5108_v55 = vand.u32 4294901760, %v5107_v39  ;;  %v12685_v31 = vld [vmem:[#allocation28_spill] sm:$0xff] }
 0x64e   :  { %v4930_v29 = vand.u32 4294901760, %v4929_v44  ;;  %v4936_v56 = vand.u32 4294901760, %v4935_v1  ;;  %v4975_v63 = vand.u32 4294901760, %v4974_v40  ;;  %v8382_v40 = vpack.c.bf16 %v11256_v7, %v11254_v16 }
 0x64f   :  { %v8358_v17 = vpack.c.bf16 %v5094_v8, %v5087_v20  ;;  %v5101_v37 = vand.u32 4294901760, %v5100_v6  ;;  %v8390_v16 = vpack.c.bf16 %v11349_v19, %v11339_v4  ;;  %v8392_v7 = vpack.c.bf16 %v11359_v43, %v11354_v3  ;;  %v12665_v19 = vld [vmem:[#allocation9_spill] sm:$0xff]  ;;  %v12667_v43 = vld [vmem:[#allocation19_spill] sm:$0xff] }
 0x650   :  { %4931 = vmatprep.mubr.f32.mxu1 %v4930_v29  ;;  %v8360_v44 = vpack.c.bf16 %v4982_v50, %v4975_v63  ;;  %v12664_v4 = vpack.c.bf16 %v11605_v54, %v11584_v14  ;;  %v12666_v3 = vpack.c.bf16 %v11618_v25, %v12665_v19  ;;  %v12676_v54 = vld [vmem:[#allocation11_spill] sm:$0xff]  ;;  %v12686_v20 = vld [vmem:[#allocation29_spill] sm:$0xff]  ;;  %v8853_v39 = vmov 0.0  }
 0x651   :  { %4937 = vmatmul.mubr.f32.vlgmr.msra.gmra.mrb[94].mxu1 %v4936_v56  ;;  %v8362_v0 = vpack.c.bf16 %v5108_v55, %v5101_v37  ;;  %v12677_v25 = vld [vmem:[#allocation15_spill] sm:$0xff]  ;;  %v12687_v56 = vld [vmem:[#allocation33_spill] sm:$0xff]  ;;  %7788 = vmatprep.mubr.msk.f32.mxu0 %vm8852_vm4, %v8853_v39  ;;  %v5722_v63 = vand.u32 4294901760, %v5697_v30  ;;  %v5725_v50 = vand.u32 4294901760, %v5698_v52 }
 0x652   :  { %8353 = vmatpush3.bf16.msra.mxu1 %v8352_v61  ;;  %5167 = vmatprep.mubr.f32.mxu1 %v11776_v18  ;;  %v12684_v14 = vld [vmem:[#allocation27_spill] sm:$0xff]  ;;  %v5696_v61 = vld [vmem:[%s12071_s4 + $0x18] sm:$0xff] }
 0x653   :  { %8355 = vmatprep.subr.bf16.mxu1 %v8354_v47  ;;  %v5700_v37 = vld [vmem:[%s12071_s4 + $0x38] sm:$0xff] }
 0x656   :  { %8357 = vmatpush3.bf16.msra.mxu1 %v8356_v13  ;;  %v5719_v13 = vand.u32 4294901760, %v5696_v61 }
 0x657   :  { %8359 = vmatprep.subr.bf16.mxu1 %v8358_v17  ;;  %v5699_v17 = vld [vmem:[%s12071_s4 + $0x30] sm:$0xff] }
 0x65a   :  { %8361 = vmatpush3.bf16.msra.mxu1 %v8360_v44 }
 0x65b   :  { %8363 = vmatprep.subr.bf16.mxu1 %v8362_v0 }
 0x65e   :  { %8365 = vmatpush3.bf16.msra.mxu1 %v11685_v35  ;;  %v12688_v35 = vld [vmem:[#allocation35_spill] sm:$0xff] }
 0x65f   :  { %8367 = vmatprep.subr.bf16.mxu1 %v11693_v24  ;;  %v8384_v24 = vpack.c.bf16 %v11260_v26, %v11258_v10  ;;  %v8394_v10 = vpack.c.bf16 %v11375_v58, %v11367_v33  ;;  %v8398_v26 = vpack.c.bf16 %v11488_v38, %v11486_v45  ;;  %v12668_v33 = vld [vmem:[#allocation32_spill] sm:$0xff]  ;;  %v12674_v38 = vld [vmem:[#allocation41_spill] sm:$0xff] }
 0x660   :  { %v12669_v58 = vpack.c.bf16 %v12667_v43, %v12668_v33  ;;  %v12673_v45 = vld [vmem:[#allocation40_spill] sm:$0xff] }
 0x662   :  { %8369 = vmatpush3.bf16.msra.mxu1 %v11701_v46  ;;  %v12675_v46 = vand.u32 4294901760, %v11785_v21 }
 0x663   :  { %8371 = vmatprep.subr.bf16.mxu1 %v11709_v11  ;;  %v8386_v11 = vpack.c.bf16 %v11264_v2, %v11262_v42  ;;  %v12660_v42 = vpack.c.bf16 %v11483_v27, %v11481_v15  ;;  %v12661_v2 = vpack.c.bf16 %v11555_v34, %v11553_v53  ;;  %v12671_v15 = vld [vmem:[#allocation30_spill] sm:$0xff]  ;;  %v12678_v53 = vld [vmem:[#allocation13_spill] sm:$0xff]  ;;  %v12679_v34 = vld [vmem:[#allocation23_spill] sm:$0xff] }
 0x666   :  { %8373 = vmatpush3.bf16.msra.mxu1 %v11717_v57  ;;  %v12670_v57 = vld [vmem:[#allocation37_spill] sm:$0xff] }
 0x667   :  { %8375 = vmatprep.subr.bf16.mxu1 %v11725_v59  ;;  %v8388_v59 = vpack.c.bf16 %v11279_v12, %v11269_v5  ;;  %v12662_v5 = vpack.c.bf16 %v11563_v41, %v11557_v32  ;;  %v12663_v12 = vpack.c.bf16 %v11578_v22, %v11565_v28  ;;  %v12672_v27 = vpack.c.bf16 %v12670_v57, %v12671_v15  ;;  %v12680_v32 = vld [vmem:[#allocation16_spill] sm:$0xff]  ;;  %v12681_v41 = vld [vmem:[#allocation26_spill] sm:$0xff]  ;;  %v12682_v28 = vld [vmem:[#allocation17_spill] sm:$0xff] }
 0x668   :  { %v12683_v22 = vld [vmem:[#allocation25_spill] sm:$0xff] }
 0x66a   :  { %8377 = vmatpush3.bf16.msra.mxu1 %v11729_v49  ;;  %v12689_v49 = vld [vmem:[#allocation38_spill] sm:$0xff] }
 0x66b   :  { %8379 = vmatprep.subr.bf16.mxu1 %v11733_v36  ;;  %v12690_v36 = vand.u32 4294901760, %v11782_v62 }
 0x66e   :  { %8381 = vmatpush3.bf16.msra.mxu1 %v11735_v23 }
 0x66f   :  { %8383 = vmatprep.subr.bf16.mxu1 %v8382_v40 }
 0x671   :  { %5169 = vmatmul.mubr.f32.vlgmr.msra.gmra.mrb[96].mxu1 %v11778_v51 }
 0x672   :  { %8385 = vmatpush3.bf16.msra.mxu1 %v8384_v24  ;;  %5304 = vmatprep.mubr.f32.mxu1 %v11785_v21  ;;  %v8851_v21 = vmov 0.0|0.0   ;;  %v11950_v24 = vsub.f32 %v5696_v61, %v5719_v13 }
 0x673   :  { %8387 = vmatprep.subr.bf16.mxu1 %v8386_v11  ;;  %8510 = vmatprep.subr.bf16.mxu0 %v8851_v21  ;;  %v11952_v11 = vsub.f32 %v5697_v30, %v5722_v63 }
 0x674   :  { %v5816_v43 = vand.u32 4294901760, %v11950_v24 }
 0x676   :  { %8389 = vmatpush3.bf16.msra.mxu1 %v8388_v59  ;;  %v5817_v15 = vsub.f32 %v11950_v24, %v5816_v43 }
 0x677   :  { %8391 = vmatprep.subr.bf16.mxu1 %v8390_v16  ;;  %v11957_v16 = vsub.f32 %v5698_v52, %v5725_v50 }
 0x67a   :  { %8393 = vmatpush3.bf16.msra.mxu1 %v8392_v7  ;;  %v5728_v7 = vand.u32 4294901760, %v5699_v17 }
 0x67b   :  { %8395 = vmatprep.subr.bf16.mxu1 %v8394_v10  ;;  %v5731_v10 = vand.u32 4294901760, %v5700_v37 }
 0x67e   :  { %8397 = vmatpush3.bf16.msra.mxu1 %v12660_v42  ;;  %v11962_v42 = vsub.f32 %v5700_v37, %v5731_v10 }
 0x67f   :  { %8399 = vmatprep.subr.bf16.mxu1 %v8398_v26  ;;  %v11960_v26 = vsub.f32 %v5699_v17, %v5728_v7 }
 0x681   :  { %v8544_v61 = vpack.c.bf16 %v11962_v42, %v11960_v26 }
 0x682   :  { %8401 = vmatpush3.bf16.msra.mxu1 %v12661_v2 }
 0x683   :  { %8403 = vmatprep.subr.bf16.mxu1 %v12662_v5 }
 0x686   :  { %8405 = vmatpush3.bf16.msra.mxu1 %v12663_v12  ;;  %v11967_v12 = vpack.c.bf16 %v5725_v50, %v5722_v63 }
 0x687   :  { %8407 = vmatprep.subr.bf16.mxu1 %v12664_v4 }
 0x68a   :  { %8409 = vmatpush3.bf16.msra.mxu1 %v12666_v3 }
 0x68b   :  { %8411 = vmatprep.subr.bf16.mxu1 %v12669_v58 }
 0x68e   :  { %8413 = vmatpush3.bf16.msra.mxu1 %v12672_v27  ;;  %v11977_v27 = vpack.c.bf16 %v5731_v10, %v5728_v7 }
 0x68f   :  { %8415 = vmatprep.subr.bf16.mxu1 %v12673_v45 }
 0x691   :  { %5307 = vmatmul.mubr.f32.vlgmr.msra.gmra.mrb[98].mxu1 %v11782_v62  ;;  %v5694_v62 = vld [vmem:[%s12071_s4 + $0x8] sm:$0xff] }
 0x692   :  { %8417 = vmatpush3.bf16.msra.mxu1 %v12674_v38  ;;  %5411 = vmatprep.mubr.f32.mxu1 %v12675_v46  ;;  %v5713_v1 = vand.u32 4294901760, %v5694_v62  ;;  %v5818_v46 = vand.u32 4294901760, %v5817_v15  ;;  %v12693_v15 = vld [vmem:[#allocation34_spill] sm:$0xff] }
 0x693   :  { %8419 = vmatprep.subr.bf16.mxu1 %v12676_v54 }
 0x694   :  { %v11946_v0 = vsub.f32 %v5694_v62, %v5713_v1 }
 0x696   :  { %8421 = vmatpush3.bf16.msra.mxu1 %v12677_v25  ;;  %v5802_v5 = vand.u32 4294901760, %v11946_v0 }
 0x697   :  { %8423 = vmatprep.subr.bf16.mxu1 %v12678_v53 }
 0x698   :  { %v5803_v19 = vsub.f32 %v11946_v0, %v5802_v5 }
 0x69a   :  { %8425 = vmatpush3.bf16.msra.mxu1 %v12679_v34  ;;  %v5804_v58 = vand.u32 4294901760, %v5803_v19 }
 0x69b   :  { %8427 = vmatprep.subr.bf16.mxu1 %v12680_v32 }
 0x69e   :  { %8429 = vmatpush3.bf16.msra.mxu1 %v12681_v41 }
 0x69f   :  { %8431 = vmatprep.subr.bf16.mxu1 %v12682_v28 }
 0x6a2   :  { %8433 = vmatpush3.bf16.msra.mxu1 %v12683_v22 }
 0x6a3   :  { %8435 = vmatprep.subr.bf16.mxu1 %v12684_v14 }
 0x6a6   :  { %8437 = vmatpush3.bf16.msra.mxu1 %v12685_v31 }
 0x6a7   :  { %8439 = vmatprep.subr.bf16.mxu1 %v12686_v20 }
 0x6aa   :  { %8441 = vmatpush3.bf16.msra.mxu1 %v12687_v56 }
 0x6ab   :  { %8443 = vmatprep.subr.bf16.mxu1 %v12688_v35 }
 0x6ae   :  { %8445 = vmatpush3.bf16.msra.mxu1 %v12689_v49 }
 0x6af   :  { %8479 = vmatprep.subr.bf16.mxu1 %v12673_v45 }
 0x6b1   :  { %5415 = vmatmul.mubr.f32.vlgmr.msra.gmra.mrb[100].mxu1 %v12690_v36 }
 0x6b2   :  { %8481 = vmatpush3.bf16.msra.mxu1 %v12674_v38  ;;  %5685 = vmatprep.mubr.f32.mxu1 %v11776_v18  ;;  %v5693_v18 = vld [vmem:[%s12071_s4] sm:$0xff] }
 0x6b3   :  { %8483 = vmatprep.subr.bf16.mxu1 %v12676_v54  ;;  %v5710_v8 = vand.u32 4294901760, %v5693_v18  ;;  %v5823_v54 = vand.u32 4294901760, %v11952_v11 }
 0x6b5   :  { %v11942_v55 = vpack.c.bf16 %v5713_v1, %v5710_v8  ;;  %v11944_v44 = vsub.f32 %v5693_v18, %v5710_v8  ;;  %v8541_v1 = vpack.c.bf16 %v11957_v16, %v11952_v11 }
 0x6b6   :  { %8485 = vmatpush3.bf16.msra.mxu1 %v12677_v25  ;;  %v5830_v25 = vand.u32 4294901760, %v11957_v16 }
 0x6b7   :  { %8487 = vmatprep.subr.bf16.mxu1 %v12678_v53  ;;  %8512 = vmatpush3.bf16.msra.mxu0 %v11942_v55  ;;  %v5795_v2 = vand.u32 4294901760, %v11944_v44  ;;  %v8535_v62 = vpack.c.bf16 %v11946_v0, %v11944_v44 }
 0x6b8   :  { %8513 = vmatprep.subr.bf16.mxu0 %v8851_v21  ;;  %v8565_v50 = vpack.c.bf16 %v5830_v25, %v5823_v54 }
 0x6b9   :  { %v5796_v4 = vsub.f32 %v11944_v44, %v5795_v2 }
 0x6ba   :  { %8489 = vmatpush3.bf16.msra.mxu1 %v12679_v34  ;;  %v5824_v34 = vsub.f32 %v11952_v11, %v5823_v54 }
 0x6bb   :  { %8491 = vmatprep.subr.bf16.mxu1 %v12680_v32  ;;  %v5797_v33 = vand.u32 4294901760, %v5796_v4  ;;  %v5831_v32 = vsub.f32 %v11957_v16, %v5830_v25 }
 0x6bd   :  { %v8523_v45 = vpack.c.bf16 %v5804_v58, %v5797_v33  ;;  %v12691_v58 = vld [vmem:[#allocation31_spill] sm:$0xff] }
 0x6be   :  { %8493 = vmatpush3.bf16.msra.mxu1 %v12681_v41  ;;  %v5825_v41 = vand.u32 4294901760, %v5824_v34 }
 0x6bf   :  { %8495 = vmatprep.subr.bf16.mxu1 %v12682_v28  ;;  %v5837_v28 = vand.u32 4294901760, %v11960_v26 }
 0x6c2   :  { %8497 = vmatpush3.bf16.msra.mxu1 %v12683_v22  ;;  %v5844_v22 = vand.u32 4294901760, %v11962_v42 }
 0x6c3   :  { %8499 = vmatprep.subr.bf16.mxu1 %v12684_v14  ;;  %v5832_v14 = vand.u32 4294901760, %v5831_v32 }
 0x6c4   :  { %v8568_v17 = vpack.c.bf16 %v5844_v22, %v5837_v28 }
 0x6c6   :  { %8501 = vmatpush3.bf16.msra.mxu1 %v12685_v31  ;;  %v6276_v31 = vld [vmem:[%s12072_s5 + $0x4] ss:$0 sm:$0xff] }
 0x6c7   :  { %8503 = vmatprep.subr.bf16.mxu1 %v12686_v20  ;;  %v5838_v20 = vsub.f32 %v11960_v26, %v5837_v28 }
 0x6ca   :  { %8505 = vmatpush3.bf16.msra.mxu1 %v12687_v56  ;;  %v5845_v56 = vsub.f32 %v11962_v42, %v5844_v22 }
 0x6cb   :  { %8507 = vmatprep.subr.bf16.mxu1 %v12688_v35 }
 0x6ce   :  { %8509 = vmatpush3.bf16.msra.mxu1 %v12689_v49  ;;  %v8529_v49 = vpack.c.bf16 %v5832_v14, %v5825_v41  ;;  %v4707_v14 = vld [vmem:[#allocation3 + $0x1c] sm:$0xff] }
 0x6d1   :  { %5687 = vmatmul.mubr.f32.vlgmr.msra.gmra.mrb[102].mxu1 %v11778_v51  ;;  %v5695_v51 = vld [vmem:[%s12071_s4 + $0x10] sm:$0xff] }
 0x6d2   :  { %v5716_v48 = vand.u32 4294901760, %v5695_v51 }
 0x6d4   :  { %v11948_v40 = vsub.f32 %v5695_v51, %v5716_v48  ;;  %v11955_v59 = vpack.c.bf16 %v5719_v13, %v5716_v48  ;;  %v8559_v13 = vpack.c.bf16 %v5802_v5, %v5795_v2 }
 0x6d6   :  { %8515 = vmatpush3.bf16.msra.mxu0 %v11955_v59  ;;  %v5809_v3 = vand.u32 4294901760, %v11948_v40  ;;  %v8538_v8 = vpack.c.bf16 %v11950_v24, %v11948_v40 }
 0x6d7   :  { %8516 = vmatprep.subr.bf16.mxu0 %v8851_v21 }
 0x6d8   :  { %v5810_v57 = vsub.f32 %v11948_v40, %v5809_v3  ;;  %v8562_v63 = vpack.c.bf16 %v5816_v43, %v5809_v3 }
 0x6da   :  { %8518 = vmatpush3.bf16.msra.mxu0 %v11967_v12  ;;  %v5811_v38 = vand.u32 4294901760, %v5810_v57  ;;  %v12692_v57 = vld [vmem:[#allocation8_spill] sm:$0xff] }
 0x6db   :  { %8519 = vmatprep.subr.bf16.mxu0 %v8851_v21 }
 0x6dc   :  { %v8526_v53 = vpack.c.bf16 %v5818_v46, %v5811_v38  ;;  %v12694_v38 = vld [vmem:[#allocation36_spill] sm:$0xff] }
 0x6de   :  { %8521 = vmatpush3.bf16.msra.mxu0 %v11977_v27 }
 0x6df   :  { %8522 = vmatprep.subr.bf16.mxu0 %v8851_v21 }
 0x71c   :  { %v7098_v23 = vpop.f32.mrb[32].mxu0 }
 0x71d   :  { %v7099_v29 = vpop.f32.mrb[33].mxu0 }
 0x71e   :  { %v11911_v60 = vadd.f32 %v7099_v29, %v7098_v23  ;;  %v5839_v23 = vand.u32 4294901760, %v5838_v20  ;;  %v5846_v29 = vand.u32 4294901760, %v5845_v56  ;;  %v12696_v56 = vld [vmem:[#allocation22_spill] sm:$0xff] }
 0x720   :  { %v8532_v18 = vpack.c.bf16 %v5846_v29, %v5839_v23 }
 0x724   :  { %v6958_v9 = vpop.f32.mrb[94].mxu1 }
 0x725   :  { %v6959_v47 = vpop.f32.mrb[95].mxu1 }
 0x726   :  { %v11913_v6 = vadd.f32 %v6959_v47, %v6958_v9 }
 0x728   :  { %v4939_v9 = vadd.f32 %v11913_v6, %v6276_v31  ;;  %v12695_v31 = vld [vmem:[#allocation10_spill] sm:$0xff] }
 0x729   :  { %v4711_v20 = vmax.f32 %v12695_v31, %v4707_v14 }
 0x744   :  { %v6993_v35 = vpop.f32.mrb[96].mxu1 }
 0x745   :  { %v6994_v36 = vpop.f32.mrb[97].mxu1 }
 0x746   :  { %v6995_v47 = vadd.f32 %v6994_v36, %v6993_v35  ;;  %v4715_v35 = vmax.f32 %v12696_v56, %v4711_v20 }
 0x748   :  { %v5171_v51 = vadd.f32 %v6995_v47, %v4939_v9 }
 0x764   :  { %v7028_v48 = vpop.f32.mrb[98].mxu1 }
 0x765   :  { %v7029_v30 = vpop.f32.mrb[99].mxu1 }
 0x766   :  { %v7030_v52 = vadd.f32 %v7029_v30, %v7028_v48 }
 0x768   :  { %v5309_v6 = vadd.f32 %v7030_v52, %v5171_v51 }
 0x784   :  { %v7063_v37 = vpop.f32.mrb[100].mxu1 }
 0x785   :  { %v7064_v44 = vpop.f32.mrb[101].mxu1 }
 0x786   :  { %v7065_v0 = vadd.f32 %v7064_v44, %v7063_v37 }
 0x788   :  { %v5417_v7 = vadd.f32 %v7065_v0, %v5309_v6 }
 0x78a   :  { %v5585_v40 = vadd.f32 %v11911_v60, %v5417_v7  ;;  %v6277_v60 = vld [vmem:[%s12072_s5 + $0x5] ss:$0 sm:$0xff]  ;;  %s8854_s5 = smov [#allocation5]  }
 0x78b   :  { %s6268_s24 = sshll.u32 %s8854_s5, 4  ;;  %s6269_s24 = int_to_ptr.vmem [resolvable:$true] %s6268_s24 }
 0x78c   :  { %s8823_s0 = scalar_lea.vmem %s6269_s24, 32  ;;  %p8828_p1 = scmp.lt.s32.totalorder %s6269_s24, %s6269_s24 }
 0x78d   :  { %p8824_p0 = scmp.ne.s32.totalorder %s6269_s24, %s8823_s0  ;;  %p8829_p2 = scmp.lt.s32.totalorder %s8823_s0, %s8823_s0 }
 0x78f   :  { %p8830_p3 = por %p8829_p2, %p8828_p1 }
 0x791   :  { %p8831_p4 = pnand %p8830_p3, %p8824_p0 }
 0x7a4   :  { %v7133_v24 = vpop.f32.mrb[102].mxu1 }
 0x7a5   :  { %v7134_v10 = vpop.f32.mrb[103].mxu1 }
 0x7a6   :  { %v7135_v11 = vadd.f32 %v7134_v10, %v7133_v24 }
 0x7a8   :  { %v5689_v16 = vadd.f32 %v7135_v11, %v5585_v40 }
 0x7aa   :  { %v5692_v4 = vmax.f32 %v5689_v16, 0.0 }
 0x7ac   :  { %v5707_v26 = vsel %vm2580_vm2, %v5692_v4, 0 }
 0x7ad   :  { %v5782_v42 = vand.u32 4294901760, %v5707_v26 }
 0x7af   :  { %v5783_v19 = vsub.f32 %v5707_v26, %v5782_v42 }
 0x7b1   :  { %v5784_v2 = vand.u32 4294901760, %v5783_v19 }
 0x7b3   :  { %v5785_v5 = vsub.f32 %v5783_v19, %v5784_v2 }
 0x7b5   :  { %v5786_v3 = vand.u32 4294901760, %v5785_v5 }
 0x7b7   :  { %7789 = vmatmul.mubr.f32.vlgmr.msra.gmra.mrb[34].mxu0 %v5786_v3 }
 0x7b8   :  { %8524 = vmatpush3.bf16.msra.mxu0 %v8523_v45  ;;  %7807 = vmatprep.mubr.msk.f32.mxu0 %vm8852_vm4, %v8853_v39  ;;  %v4706_v45 = vld [vmem:[#allocation3 + $0x14] sm:$0xff] }
 0x7b9   :  { %8525 = vmatprep.subr.bf16.mxu0 %v8851_v21  ;;  %v4710_v46 = vmax.f32 %v12694_v38, %v4706_v45 }
 0x7bc   :  { %8527 = vmatpush3.bf16.msra.mxu0 %v8526_v53 }
 0x7bd   :  { %8528 = vmatprep.subr.bf16.mxu0 %v8851_v21 }
 0x7c0   :  { %8530 = vmatpush3.bf16.msra.mxu0 %v8529_v49 }
 0x7c1   :  { %8531 = vmatprep.subr.bf16.mxu0 %v8851_v21 }
 0x7c4   :  { %8533 = vmatpush3.bf16.msra.mxu0 %v8532_v18 }
 0x7c5   :  { %8534 = vmatprep.subr.bf16.mxu0 %v8851_v21 }
 0x7c7   :  { %7808 = vmatmul.mubr.f32.vlgmr.msra.gmra.mrb[34].mxu0 %v5782_v42 }
 0x7c8   :  { %8536 = vmatpush3.bf16.msra.mxu0 %v8535_v62  ;;  %7826 = vmatprep.mubr.msk.f32.mxu0 %vm8852_vm4, %v8853_v39 }
 0x7c9   :  { %8537 = vmatprep.subr.bf16.mxu0 %v8851_v21 }
 0x7cc   :  { %8539 = vmatpush3.bf16.msra.mxu0 %v8538_v8 }
 0x7cd   :  { %8540 = vmatprep.subr.bf16.mxu0 %v8851_v21 }
 0x7d0   :  { %8542 = vmatpush3.bf16.msra.mxu0 %v8541_v1 }
 0x7d1   :  { %8543 = vmatprep.subr.bf16.mxu0 %v8851_v21 }
 0x7d4   :  { %8545 = vmatpush3.bf16.msra.mxu0 %v8544_v61 }
 0x7d5   :  { %8546 = vmatprep.subr.bf16.mxu0 %v8851_v21 }
 0x7d7   :  { %7827 = vmatmul.mubr.f32.vlgmr.msra.gmra.mrb[34].mxu0 %v5783_v19 }
 0x7d8   :  { %8548 = vmatpush3.bf16.msra.mxu0 %v11942_v55  ;;  %7845 = vmatprep.mubr.msk.f32.mxu0 %vm8852_vm4, %v8853_v39 }
 0x7d9   :  { %8549 = vmatprep.subr.bf16.mxu0 %v8851_v21 }
 0x7dc   :  { %8551 = vmatpush3.bf16.msra.mxu0 %v11955_v59 }
 0x7dd   :  { %8552 = vmatprep.subr.bf16.mxu0 %v8851_v21 }
 0x7e0   :  { %8554 = vmatpush3.bf16.msra.mxu0 %v11967_v12 }
 0x7e1   :  { %8555 = vmatprep.subr.bf16.mxu0 %v8851_v21 }
 0x7e4   :  { %8557 = vmatpush3.bf16.msra.mxu0 %v11977_v27 }
 0x7e5   :  { %8558 = vmatprep.subr.bf16.mxu0 %v8851_v21 }
 0x7e7   :  { %7846 = vmatmul.mubr.f32.vlgmr.msra.gmra.mrb[34].mxu0 %v5784_v2 }
 0x7e8   :  { %8560 = vmatpush3.bf16.msra.mxu0 %v8559_v13  ;;  %7864 = vmatprep.mubr.msk.f32.mxu0 %vm8852_vm4, %v8853_v39 }
 0x7e9   :  { %8561 = vmatprep.subr.bf16.mxu0 %v8851_v21 }
 0x7ec   :  { %8563 = vmatpush3.bf16.msra.mxu0 %v8562_v63 }
 0x7ed   :  { %8564 = vmatprep.subr.bf16.mxu0 %v8851_v21 }
 0x7f0   :  { %8566 = vmatpush3.bf16.msra.mxu0 %v8565_v50 }
 0x7f1   :  { %8567 = vmatprep.subr.bf16.mxu0 %v8851_v21 }
 0x7f4   :  { %8569 = vmatpush3.bf16.msra.mxu0 %v8568_v17 }
 0x7f5   :  { %8570 = vmatprep.subr.bf16.mxu0 %v8851_v21 }
 0x7f7   :  { %7865 = vmatmul.mubr.f32.vlgmr.msra.gmra.mrb[34].mxu0 %v5782_v42 }
 0x7f8   :  { %8572 = vmatpush3.bf16.msra.mxu0 %v11942_v55  ;;  %7883 = vmatprep.mubr.msk.f32.mxu0 %vm8852_vm4, %v8853_v39 }
 0x7f9   :  { %8573 = vmatprep.subr.bf16.mxu0 %v8851_v21 }
 0x7fc   :  { %8575 = vmatpush3.bf16.msra.mxu0 %v11955_v59  ;;  %v4677_v59 = vld [vmem:[#allocation3 + $0xf] sm:$0xff] }
 0x7fd   :  { %8576 = vmatprep.subr.bf16.mxu0 %v8851_v21 }
 0x800   :  { %8578 = vmatpush3.bf16.msra.mxu0 %v11967_v12  ;;  %v4681_v12 = vmax.f32 %v12692_v57, %v12691_v58 }
 0x801   :  { %8579 = vmatprep.subr.bf16.mxu0 %v8851_v21  ;;  %v4685_v21 = vmax.f32 %v12693_v15, %v4677_v59 }
 0x803   :  { %v4714_v54 = vmax.f32 %v4685_v21, %v4710_v46 }
 0x804   :  { %8581 = vmatpush3.bf16.msra.mxu0 %v11977_v27  ;;  %v4689_v27 = vmax.f32 %v4681_v12, %v4685_v21 }
 0x807   :  { %7884 = vmatmul.mubr.f32.vlgmr.msra.gmra.mrb[34].mxu0 %v5782_v42 }
 0x8da   :  { %v6242_v55 = vpop.f32.mrb[34].mxu0 }
 0x8db   :  { %v8620_v39 = vadd.f32 %v6277_v60, %v6242_v55  ;;  %v7885_v43 = vpop.f32.mrb[35].mxu0 }
 0x8dd   :  { %v6247_v33 = vsel %vm6246_vm5, %v8620_v39, -inf }
 0x8de   :  { %6248 = vmax.xlane.f32.xlu0 %v6247_v33 }
 0x8f4   :  { %4723 = vrot.lane.b32.xlu0 %v4689_v27, %s8847_s12 }
 0x8f8   :  { %4739 = vrot.lane.b32.xlu0 %v4714_v54, %s8847_s12 }
 0x96b   :  { %v6249_v25 = vpop.xlane.xlu0 %6248 }
 0x96c   :  { %v6250_v53 = vsub.f32 %v8620_v39, %v6249_v25 }
 0x96e   :  { %v6251_v34 = vmul.f32 1.442695, %v6250_v53 }
 0x96f   :  { %v4724_v32 = vpop.permute.xlu0 %4723 }
 0x970   :  { %8819 = vpow2.f32 %v6251_v34 }
 0x973   :  { %v4740_v41 = vpop.permute.xlu0 %4739 }
 0x97a   :  { %v8820_v28 = vpop.eup %8819 }
 0x97b   :  { %v6253_v22 = vsel %vm6246_vm5, %v8820_v28, 0.0 }
 0x97c   :  { %6254 = vadd.xlane.f32.xlu1 %v6253_v22 }
 0x98d   :  { %4741 = vrot.lane.b32.xlu1 %v4715_v35, %s8847_s12 }
 0xa09   :  { %v6255_v49 = vpop.xlane.xlu1 %6254 }
 0xa0a   :  { %8821 = vrcp.f32 %v6255_v49 }
 0xa0d   :  { %v4742_v36 = vpop.permute.xlu1 %4741 }
 0xa14   :  { %v8822_v23 = vpop.eup %8821 }
 0xa15   :  { %v6257_v29 = vmul.f32 %v8822_v23, %v6255_v49 }
 0xa17   :  { %v6258_v9 = vsub.f32 2.0, %v6257_v29 }
 0xa19   :  { %v6259_v47 = vmul.f32 %v8822_v23, %v6258_v9 }
 0xa1b   :  { %v6260_v18 = vmul.f32 %v8820_v28, %v6259_v47 }
 0xa1d   :  { %6261 = vst [vmem:[#allocation5] sm:$0x3] %v6260_v18 }
 0xa1e   :  { %8834 = shalt.err (!%p8831_p4)
}
 0xa1f   :  { %s8835_s26 = scalar_lea.hbm %s12074_s7, 32 }
 0xa20   :  { %p8836_p5 = scmp.ne.s32.totalorder %s12074_s7, %s8835_s26  ;;  %p8839_p6 = scmp.lt.u32.totalorder %s8835_s26, %s12074_s7 }
 0xa22   :  { %p8841_p7 = pnand %p8839_p6, %p8836_p5 }
 0xa24   :  { %8844 = shalt.err (!%p8841_p7)
}
 0xa25   :  { %6271 = dma.vmem_to_hbm [thread:$0]  %s6269_s24, 32, %s12074_s7, [#allocation6]  }
 0xa26   :  { %8845 = dma.done.wait [#allocation6], 32  }
 0xa27   :  { %8846 = vsyncadd [#allocation6], 4294967264 }
 0xa28   :  { %6275 = vsyncpa [#allocation6], 1 }

</bundles_post_ra>
